<compile_context>
chip_gen: v7x
topology: tpu7x:2x2x1
jax: 0.10.0
libtpu: 0.0.40
codegen_flags: <defaults>
</compile_context>

<pallas_src>
import jax
import jax.numpy as jnp
from jax import lax
from jax.experimental import pallas as pl
from jax.experimental.pallas import tpu as pltpu

WIDTH = 128            # args.width
IN_DIM = 3 * 32 * 32   # 3072
NUM_CLASSES = 10
OUT_PAD = 128          # lane-dense padded logits width
BN_EPS = 1e-5


def _pick_batch_tile(n):
    """Largest batch tile (<= 256) that evenly divides n and keeps sublane
    alignment; falls back to a single full-batch block for odd small n."""
    for tn in (256, 128, 64, 32, 16, 8):
        if n % tn == 0:
            return tn
    return n


# ---------------------------------------------------------------------------
# Kernel 1: linear_3  --  h3[i] = bf16(x[i]) @ W3  (f32 accumulation)
# Grid tiles the batch ("parallel"); W3 is resident in VMEM (index map const).
# ---------------------------------------------------------------------------
def linear3_kernel(x_ref, w3_ref, h3_ref):
    # In-kernel bf16 cast of the streamed x tile (no separate HBM cast pass).
    h3_ref[...] = jnp.dot(x_ref[...].astype(jnp.bfloat16), w3_ref[...],
                          preferred_element_type=jnp.float32)


# ---------------------------------------------------------------------------
# Kernel 2: bn_2 -> linear_2 -> bn_1 -> linear_1 on the (N, 128) activations.
# Whole batch in one block so BN statistics are exact full-batch statistics.
# ---------------------------------------------------------------------------
def _batchnorm(h, gamma, beta):
    """Training-mode BatchNorm1d: two-pass (centered) biased variance."""
    mean = jnp.mean(h, axis=0, keepdims=True)
    c = h - mean
    var = jnp.mean(c * c, axis=0, keepdims=True)
    return c * (gamma * lax.rsqrt(var + BN_EPS)) + beta


def epilogue_kernel(h3_ref, g2_ref, b2_ref, w2_ref, g1_ref, b1_ref, w1_ref,
                    out_ref):
    h = _batchnorm(h3_ref[...], g2_ref[...], b2_ref[...])              # bn_2
    h = jnp.dot(h.astype(jnp.bfloat16), w2_ref[...],
                preferred_element_type=jnp.float32)                    # linear_2
    h = _batchnorm(h, g1_ref[...], b1_ref[...])                        # bn_1
    out_ref[...] = jnp.dot(h.astype(jnp.bfloat16), w1_ref[...],
                           preferred_element_type=jnp.float32)         # linear_1 (padded lanes)


def lnn3_forward(x_nchw, params):
    """x_nchw: (N, 3, 32, 32) float32.  Returns logits (N, 10) float32."""
    n = x_nchw.shape[0]
    x_flat = x_nchw.reshape(n, -1)                 # same order as nn.Flatten
    w3_bf, g2, b2, w2_bf, g1, b1, w1_pad_bf = params

    tn = _pick_batch_tile(n)
    assert n % tn == 0
    n_tiles = n // tn

    # Pass 1: streamed linear_3 over batch tiles, W3 resident, batch "parallel".
    h3 = pl.pallas_call(
        linear3_kernel,
        out_shape=jax.ShapeDtypeStruct((n, WIDTH), jnp.float32),
        grid=(n_tiles,),
        in_specs=[
            pl.BlockSpec((tn, IN_DIM), lambda i: (i, 0)),      # x tile (f32, streamed)
            pl.BlockSpec((IN_DIM, WIDTH), lambda i: (0, 0)),   # W3 (bf16, resident)
        ],
        out_specs=pl.BlockSpec((tn, WIDTH), lambda i: (i, 0)),
        compiler_params=pltpu.CompilerParams(
            dimension_semantics=("parallel",)),
    )(x_flat, w3_bf)

    # Pass 2: full-batch BN -> linear_2 -> BN -> linear_1 (small epilogue).
    out_padded = pl.pallas_call(
        epilogue_kernel,
        out_shape=jax.ShapeDtypeStruct((n, OUT_PAD), jnp.float32),
        grid=(1,),
        in_specs=[
            pl.BlockSpec((n, WIDTH), lambda i: (0, 0)),        # h3 (f32)
            pl.BlockSpec((1, WIDTH), lambda i: (0, 0)),        # bn_2 gamma
            pl.BlockSpec((1, WIDTH), lambda i: (0, 0)),        # bn_2 beta
            pl.BlockSpec((WIDTH, WIDTH), lambda i: (0, 0)),    # W2 (bf16)
            pl.BlockSpec((1, WIDTH), lambda i: (0, 0)),        # bn_1 gamma
            pl.BlockSpec((1, WIDTH), lambda i: (0, 0)),        # bn_1 beta
            pl.BlockSpec((WIDTH, OUT_PAD), lambda i: (0, 0)),  # W1 padded (bf16)
        ],
        out_specs=pl.BlockSpec((n, OUT_PAD), lambda i: (0, 0)),
        compiler_params=pltpu.CompilerParams(
            dimension_semantics=("arbitrary",)),
    )(h3, g2, b2, w2_bf, g1, b1, w1_pad_bf)

    return out_padded[:, :NUM_CLASSES]


def init_params(key):
    """PyTorch defaults: Linear(bias=False) ~ U(-1/sqrt(fan_in), 1/sqrt(fan_in));
       BatchNorm1d: gamma=1, beta=0.  Weights stored pre-transposed (in, out),
       pre-cast to bf16, and W1 pre-padded to 128 output lanes (done once here,
       not per forward call)."""
    k3, k2, k1 = jax.random.split(key, 3)

    def lin(k, fan_in, fan_out):
        bound = 1.0 / jnp.sqrt(jnp.float32(fan_in))
        return jax.random.uniform(k, (fan_in, fan_out), jnp.float32,
                                  minval=-bound, maxval=bound)

    w3_bf = lin(k3, IN_DIM, WIDTH).astype(jnp.bfloat16)
    w2_bf = lin(k2, WIDTH, WIDTH).astype(jnp.bfloat16)
    w1 = lin(k1, WIDTH, NUM_CLASSES)
    w1_pad_bf = (jnp.zeros((WIDTH, OUT_PAD), jnp.float32)
                 .at[:, :NUM_CLASSES].set(w1).astype(jnp.bfloat16))
    g2 = jnp.ones((1, WIDTH), jnp.float32)
    b2 = jnp.zeros((1, WIDTH), jnp.float32)
    g1 = jnp.ones((1, WIDTH), jnp.float32)
    b1 = jnp.zeros((1, WIDTH), jnp.float32)
    return (w3_bf, g2, b2, w2_bf, g1, b1, w1_pad_bf)


def lnn3_reference(x_nchw, params):
    """Pure-JAX reference mirroring the kernel's mixed precision
       (bf16 matmul inputs, f32 accumulation, f32 two-pass BN)."""
    w3_bf, g2, b2, w2_bf, g1, b1, w1_pad_bf = params
    n = x_nchw.shape[0]
    x = x_nchw.reshape(n, -1).astype(jnp.bfloat16)

    def bn(h, gamma, beta):
        mean = jnp.mean(h, axis=0, keepdims=True)
        var = jnp.mean((h - mean) * (h - mean), axis=0, keepdims=True)
        return (h - mean) * lax.rsqrt(var + BN_EPS) * gamma + beta

    h = jnp.dot(x, w3_bf, preferred_element_type=jnp.float32)
    h = bn(h, g2, b2)
    h = jnp.dot(h.astype(jnp.bfloat16), w2_bf, preferred_element_type=jnp.float32)
    h = bn(h, g1, b1)
    out = jnp.dot(h.astype(jnp.bfloat16), w1_pad_bf,
                  preferred_element_type=jnp.float32)
    return out[:, :NUM_CLASSES]


if __name__ == "__main__":
    key = jax.random.PRNGKey(0)
    kx, kp = jax.random.split(key)

    N = 256  # small batch (>1 so batch-norm statistics are meaningful; 2 grid tiles)
    x = jax.random.normal(kx, (N, 3, 32, 32), jnp.float32)
    params = init_params(kp)

    logits = lnn3_forward(x, params)
    logits = jax.block_until_ready(logits)

    ref = lnn3_reference(x, params)
    assert logits.shape == (N, NUM_CLASSES)
    assert jnp.allclose(logits, ref, atol=1e-2, rtol=1e-2), "mismatch vs reference"

    print("KERNEL_OK")
</pallas_src>

<mosaic_0001>
module attributes {stable_mosaic.version = 11 : i64} {
  func.func @linear3_kernel(%arg0: i32, %arg1: memref<256x3072xf32, #tpu.memory_space<vmem>>, %arg2: memref<3072x128xbf16, #tpu.memory_space<vmem>>, %arg3: memref<256x128xf32, #tpu.memory_space<vmem>>) attributes {dimension_semantics = [#tpu.dimension_semantics<parallel>], iteration_bounds = array<i64: 1>, scalar_prefetch = 0 : i64, scratch_operands = 0 : i64, tpu.core_type = #tpu.core_type<tc>, window_params = [{transform_indices = @transform_0, window_bounds = array<i64: 256, 3072>}, {pipeline_mode = #tpu.pipeline_mode<synchronous>, transform_indices = @transform_1, window_bounds = array<i64: 3072, 128>}, {transform_indices = @transform_2, window_bounds = array<i64: 256, 128>}]} {
    %c0 = arith.constant 0 : index
    %c0_0 = arith.constant 0 : index
    %0 = vector.load %arg1[%c0, %c0_0] : memref<256x3072xf32, #tpu.memory_space<vmem>>, vector<256x3072xf32>
    %1 = arith.truncf %0 : vector<256x3072xf32> to vector<256x3072xbf16>
    %c0_1 = arith.constant 0 : index
    %c0_2 = arith.constant 0 : index
    %2 = vector.load %arg2[%c0_1, %c0_2] : memref<3072x128xbf16, #tpu.memory_space<vmem>>, vector<3072x128xbf16>
    %cst = arith.constant dense<0.000000e+00> : vector<256x128xf32>
    %3 = tpu.matmul %1, %2, %cst {dimension_numbers = #tpu.dot_dimension_numbers<[1], [0], [0], [1], [0, 0, 1, 1], [], []>} : vector<256x3072xbf16>, vector<3072x128xbf16>, vector<256x128xf32> -> vector<256x128xf32>
    %c0_3 = arith.constant 0 : index
    %c0_4 = arith.constant 0 : index
    %4 = vector.load %arg3[%c0_3, %c0_4] : memref<256x128xf32, #tpu.memory_space<vmem>>, vector<256x128xf32>
    tpu.vector_store %arg3[%c0_3, %c0_4], %3 {strides = array<i32>} : memref<256x128xf32, #tpu.memory_space<vmem>>, vector<256x128xf32>,
    return
  }
  func.func @transform_0(%arg0: i32) -> (i32, i32) {
    %c0_i32 = arith.constant 0 : i32
    %c0_i32_0 = arith.constant 0 : i32
    return %arg0, %c0_i32 : i32, i32
  }
  func.func @transform_1(%arg0: i32) -> (i32, i32) {
    %c0_i32 = arith.constant 0 : i32
    %c0_i32_0 = arith.constant 0 : i32
    %c0_i32_1 = arith.constant 0 : i32
    return %c0_i32, %c0_i32_0 : i32, i32
  }
  func.func @transform_2(%arg0: i32) -> (i32, i32) {
    %c0_i32 = arith.constant 0 : i32
    %c0_i32_0 = arith.constant 0 : i32
    return %arg0, %c0_i32 : i32, i32
  }
}

</mosaic_0001>

<bundles_post_ra>
// kernel: tpu_custom_call.1
= control target key start
LH: loop header
LB: loop body
LE: loop exit
PB: predicated region body
PF: predicated region fallthrough
CT: control target
= control target key end

     0   :  { %7 = vsyncpa [#allocation3], 0  ;;  %s7060_s0 = inlined_call_operand.hbm [shape: f32[256,3072], index: 0, kind: input, shape index: {}]   ;;  %s7061_s1 = inlined_call_operand.hbm [shape: bf16[3072,128], index: 1, kind: input, shape index: {}]   ;;  %s7062_s2 = inlined_call_operand.hbm [shape: f32[256,128], index: 2, kind: output, shape index: {}]  }
   0x1   :  { %8 = vsyncpa [#allocation6], 0 }
   0x2   :  { %9 = vsyncpa [#allocation4], 0  ;;  %s6520_s9 = smov [#allocation2]   ;;  %s6448_s13 = scalar_lea.hbm %s7060_s0, 98304 }
   0x3   :  { %s15_s10 = sshll.u32 %s6520_s9, 4  ;;  %p6449_p0 = scmp.ne.s32.totalorder %s7060_s0, %s6448_s13  ;;  %s16_s10 = int_to_ptr.vmem [resolvable:$true] %s15_s10 }
   0x4   :  { %p6452_p1 = scmp.lt.u32.totalorder %s6448_s13, %s7060_s0 }
   0x6   :  { %p6454_p2 = pnand %p6452_p1, %p6449_p0 }
   0x8   :  { %6457 = shalt.err (!%p6454_p2)
}
   0x9   :  { %s6458_s18 = scalar_lea.vmem %s16_s10, 98304  ;;  %p6463_p4 = scmp.lt.s32.totalorder %s16_s10, %s16_s10 }
   0xa   :  { %p6459_p3 = scmp.ne.s32.totalorder %s16_s10, %s6458_s18  ;;  %p6464_p5 = scmp.lt.s32.totalorder %s6458_s18, %s6458_s18 }
   0xc   :  { %p6465_p6 = por %p6464_p5, %p6463_p4 }
   0xe   :  { %p6466_p7 = pnand %p6465_p6, %p6459_p3 }
  0x10   :  { %6469 = shalt.err (!%p6466_p7)
}
  0x11   :  { %s6521_s19 = smov 3072   ;;  %s6522_s20 = smov 192  }
  0x12   :  { %21 = dma.hbm_to_vmem [thread:$0]  %s7060_s0, 98304, %s16_s10, [#allocation3], %s6521_s19, %s6521_s19, %s6522_s20  }
  0x13   :  { %s6523_s23 = smov [#allocation5]   ;;  %s6470_s27 = scalar_lea.hbm %s7061_s1, 24576 }
  0x14   :  { %s27_s24 = sshll.u32 %s6523_s23, 4  ;;  %p6471_p8 = scmp.ne.s32.totalorder %s7061_s1, %s6470_s27  ;;  %s28_s24 = int_to_ptr.vmem [resolvable:$true] %s27_s24 }
  0x15   :  { %p6474_p9 = scmp.lt.u32.totalorder %s6470_s27, %s7061_s1 }
  0x17   :  { %p6476_p10 = pnand %p6474_p9, %p6471_p8 }
  0x19   :  { %6479 = shalt.err (!%p6476_p10)
}
  0x1a   :  { %s6480_s4 = scalar_lea.vmem %s28_s24, 24576  ;;  %p6485_p12 = scmp.lt.s32.totalorder %s28_s24, %s28_s24 }
  0x1b   :  { %p6481_p11 = scmp.ne.s32.totalorder %s28_s24, %s6480_s4  ;;  %p6486_p13 = scmp.lt.s32.totalorder %s6480_s4, %s6480_s4 }
  0x1d   :  { %p6487_p0 = por %p6486_p13, %p6485_p12 }
  0x1f   :  { %p6488_p1 = pnand %p6487_p0, %p6481_p11 }
  0x21   :  { %6491 = shalt.err (!%p6488_p1)
}
  0x22   :  { %s6524_s0 = smov 64   ;;  %s6525_s5 = smov 4  }
  0x23   :  { %33 = dma.hbm_to_vmem [thread:$0]  %s7061_s1, 24576, %s28_s24, [#allocation6], %s6524_s0, %s6524_s0, %s6525_s5  }
  0x24   :  { %6514 = dma.done.wait [#allocation3], 98304  }
  0x25   :  { %6515 = vsyncadd [#allocation3], 4294868992 }
  0x26   :  { %6516 = dma.done.wait [#allocation6], 24576  }
  0x27   :  { %6517 = vsyncadd [#allocation6], 4294942720  ;;  %v6256_v0 = vld [vmem:[#allocation5 + $0x40] sm:$0xff]   ;;  %v6260_v4 = vld [vmem:[#allocation5 + $0x48] sm:$0xff]   ;;  %s6526_s1 = smov [#allocation7]  }
  0x28   :  { %v6257_v1 = vld [vmem:[#allocation5 + $0xc0] sm:$0xff]   ;;  %4903 = vmatprep.subr.bf16.mxu0 %v6256_v0  ;;  %v6261_v5 = vld [vmem:[#allocation5 + $0xc8] sm:$0xff]   ;;  %v6264_v8 = vld [vmem:[#allocation5 + $0x50] sm:$0xff]   ;;  %s4698_s8 = sshll.u32 %s6526_s1, 4  ;;  %s4699_s8 = int_to_ptr.vmem [resolvable:$true] %s4698_s8 }
  0x29   :  { %v6258_v2 = vld [vmem:[#allocation5] sm:$0xff]   ;;  %5015 = vmatprep.subr.bf16.mxu1 %v6257_v1  ;;  %v6262_v6 = vld [vmem:[#allocation5 + $0x8] sm:$0xff]   ;;  %v6265_v9 = vld [vmem:[#allocation5 + $0xd0] sm:$0xff]   ;;  %s6492_s9 = scalar_lea.vmem %s4699_s8, 4096  ;;  %p6497_p3 = scmp.lt.s32.totalorder %s4699_s8, %s4699_s8 }
  0x2a   :  { %v6259_v3 = vld [vmem:[#allocation5 + $0x80] sm:$0xff]   ;;  %4904 = vmatpush3.bf16.msra.mxu0 %v6258_v2  ;;  %v6263_v7 = vld [vmem:[#allocation5 + $0x88] sm:$0xff]   ;;  %v6266_v10 = vld [vmem:[#allocation5 + $0x10] sm:$0xff]   ;;  %p6493_p2 = scmp.ne.s32.totalorder %s4699_s8, %s6492_s9  ;;  %p6498_p4 = scmp.lt.s32.totalorder %s6492_s9, %s6492_s9 }
  0x2b   :  { %5016 = vmatpush3.bf16.msra.mxu1 %v6259_v3  ;;  %4905 = vmatprep.subr.bf16.mxu0 %v6260_v4  ;;  %v6267_v11 = vld [vmem:[#allocation5 + $0x90] sm:$0xff]   ;;  %v6268_v12 = vld [vmem:[#allocation5 + $0x58] sm:$0xff]   ;;  %v6272_v16 = vld [vmem:[#allocation5 + $0x60] sm:$0xff]  }
  0x2c   :  { %5017 = vmatprep.subr.bf16.mxu1 %v6261_v5  ;;  %v6269_v13 = vld [vmem:[#allocation5 + $0xd8] sm:$0xff]   ;;  %v6273_v17 = vld [vmem:[#allocation5 + $0xe0] sm:$0xff]   ;;  %v6276_v20 = vld [vmem:[#allocation5 + $0x68] sm:$0xff]   ;;  %p6499_p5 = por %p6498_p4, %p6497_p3 }
  0x2d   :  { %v6270_v14 = vld [vmem:[#allocation5 + $0x18] sm:$0xff]   ;;  %v6274_v18 = vld [vmem:[#allocation5 + $0x20] sm:$0xff]   ;;  %v6277_v21 = vld [vmem:[#allocation5 + $0xe8] sm:$0xff]  }
  0x2e   :  { %4906 = vmatpush3.bf16.msra.mxu0 %v6262_v6  ;;  %v6271_v15 = vld [vmem:[#allocation5 + $0x98] sm:$0xff]   ;;  %v6275_v19 = vld [vmem:[#allocation5 + $0xa0] sm:$0xff]   ;;  %v6278_v22 = vld [vmem:[#allocation5 + $0x28] sm:$0xff]   ;;  %p6500_p6 = pnand %p6499_p5, %p6493_p2 }
  0x2f   :  { %5018 = vmatpush3.bf16.msra.mxu1 %v6263_v7  ;;  %4907 = vmatprep.subr.bf16.mxu0 %v6264_v8  ;;  %v6279_v23 = vld [vmem:[#allocation5 + $0xa8] sm:$0xff]   ;;  %v6280_v24 = vld [vmem:[#allocation5 + $0x70] sm:$0xff]   ;;  %v6284_v28 = vld [vmem:[#allocation5 + $0x78] sm:$0xff]  }
  0x30   :  { %5019 = vmatprep.subr.bf16.mxu1 %v6265_v9  ;;  %v6281_v25 = vld [vmem:[#allocation5 + $0xf0] sm:$0xff]   ;;  %v6285_v29 = vld [vmem:[#allocation5 + $0xf8] sm:$0xff]   ;;  %v42_v32 = vld [vmem:[#allocation2 + $0x8] sm:$0xff] }
  0x31   :  { %v6282_v26 = vld [vmem:[#allocation5 + $0x30] sm:$0xff]   ;;  %v6286_v30 = vld [vmem:[#allocation5 + $0x38] sm:$0xff]   ;;  %v66_v33 = vld [vmem:[#allocation2 + $0xc8] sm:$0xff] }
  0x32   :  { %4908 = vmatpush3.bf16.msra.mxu0 %v6266_v10  ;;  %v6283_v27 = vld [vmem:[#allocation5 + $0xb0] sm:$0xff]   ;;  %v6287_v31 = vld [vmem:[#allocation5 + $0xb8] sm:$0xff]   ;;  %v810_v35 = vpack.c.bf16 %v66_v33, %v42_v32  ;;  %v41_v37 = vld [vmem:[#allocation2] sm:$0xff] }
  0x33   :  { %5020 = vmatpush3.bf16.msra.mxu1 %v6267_v11  ;;  %4909 = vmatprep.subr.bf16.mxu0 %v6268_v12  ;;  %v44_v34 = vld [vmem:[#allocation2 + $0x18] sm:$0xff]  ;;  %v65_v38 = vld [vmem:[#allocation2 + $0xc0] sm:$0xff]  ;;  %v43_v41 = vld [vmem:[#allocation2 + $0x10] sm:$0xff] }
  0x34   :  { %5021 = vmatprep.subr.bf16.mxu1 %v6269_v13  ;;  %v68_v36 = vld [vmem:[#allocation2 + $0xd8] sm:$0xff]  ;;  %v809_v40 = vpack.c.bf16 %v65_v38, %v41_v37  ;;  %v67_v42 = vld [vmem:[#allocation2 + $0xd0] sm:$0xff]  ;;  %2761 = vmatprep.mubr.bf16.mxu0 %v810_v35  ;;  %v6288_v44 = vld [vmem:[#allocation5 + $0x140] sm:$0xff]  }
  0x35   :  { %v812_v39 = vpack.c.bf16 %v68_v36, %v44_v34  ;;  %v811_v43 = vpack.c.bf16 %v67_v42, %v43_v41  ;;  %v6289_v45 = vld [vmem:[#allocation5 + $0x100] sm:$0xff]   ;;  %v90_v48 = vld [vmem:[#allocation2 + $0x188] sm:$0xff]  ;;  %v92_v50 = vld [vmem:[#allocation2 + $0x198] sm:$0xff] }
  0x36   :  { %4910 = vmatpush3.bf16.msra.mxu0 %v6270_v14  ;;  %v6290_v46 = vld [vmem:[#allocation5 + $0x1c0] sm:$0xff]   ;;  %v114_v49 = vld [vmem:[#allocation2 + $0x248] sm:$0xff]  ;;  %v116_v51 = vld [vmem:[#allocation2 + $0x258] sm:$0xff] }
  0x37   :  { %5022 = vmatpush3.bf16.msra.mxu1 %v6271_v15  ;;  %4911 = vmatprep.subr.bf16.mxu0 %v6272_v16  ;;  %v6291_v47 = vld [vmem:[#allocation5 + $0x180] sm:$0xff]   ;;  %v834_v52 = vpack.c.bf16 %v114_v49, %v90_v48  ;;  %v836_v53 = vpack.c.bf16 %v116_v51, %v92_v50  ;;  %v91_v56 = vld [vmem:[#allocation2 + $0x190] sm:$0xff]  ;;  %v138_v59 = vld [vmem:[#allocation2 + $0x308] sm:$0xff] }
  0x38   :  { %5023 = vmatprep.subr.bf16.mxu1 %v6273_v17  ;;  %2922 = vmatprep.mubr.bf16.mxu1 %v812_v39  ;;  %v89_v54 = vld [vmem:[#allocation2 + $0x180] sm:$0xff]  ;;  %v115_v58 = vld [vmem:[#allocation2 + $0x250] sm:$0xff]  ;;  %v162_v60 = vld [vmem:[#allocation2 + $0x3c8] sm:$0xff] }
  0x39   :  { %v113_v55 = vld [vmem:[#allocation2 + $0x240] sm:$0xff]  ;;  %v835_v61 = vpack.c.bf16 %v115_v58, %v91_v56  ;;  %v858_v62 = vpack.c.bf16 %v162_v60, %v138_v59  ;;  %v140_v63 = vld [vmem:[#allocation2 + $0x318] sm:$0xff]  ;;  %v139_v4 = vld [vmem:[#allocation2 + $0x310] sm:$0xff] }
  0x3a   :  { %4912 = vmatpush3.bf16.msra.mxu0 %v6274_v18  ;;  %v833_v57 = vpack.c.bf16 %v113_v55, %v89_v54  ;;  %v164_v0 = vld [vmem:[#allocation2 + $0x3d8] sm:$0xff]  ;;  %v137_v2 = vld [vmem:[#allocation2 + $0x300] sm:$0xff]  ;;  %v163_v5 = vld [vmem:[#allocation2 + $0x3d0] sm:$0xff] }
  0x3b   :  { %5024 = vmatpush3.bf16.msra.mxu1 %v6275_v19  ;;  %4913 = vmatprep.subr.bf16.mxu0 %v6276_v20  ;;  %v860_v1 = vpack.c.bf16 %v164_v0, %v140_v63  ;;  %v161_v3 = vld [vmem:[#allocation2 + $0x3c0] sm:$0xff]  ;;  %v6292_v6 = vld [vmem:[#allocation5 + $0x148] sm:$0xff]   ;;  %v188_v13 = vld [vmem:[#allocation2 + $0x498] sm:$0xff]  ;;  %v859_v14 = vpack.c.bf16 %v163_v5, %v139_v4 }
  0x3c   :  { %5025 = vmatprep.subr.bf16.mxu1 %v6277_v21  ;;  %v6293_v7 = vld [vmem:[#allocation5 + $0x108] sm:$0xff]   ;;  %v857_v10 = vpack.c.bf16 %v161_v3, %v137_v2  ;;  %v212_v16 = vld [vmem:[#allocation2 + $0x558] sm:$0xff]  ;;  %v185_v18 = vld [vmem:[#allocation2 + $0x480] sm:$0xff] }
  0x3d   :  { %v6294_v8 = vld [vmem:[#allocation5 + $0x1c8] sm:$0xff]   ;;  %v884_v17 = vpack.c.bf16 %v212_v16, %v188_v13  ;;  %v209_v19 = vld [vmem:[#allocation2 + $0x540] sm:$0xff]  ;;  %v187_v20 = vld [vmem:[#allocation2 + $0x490] sm:$0xff] }
  0x3e   :  { %4914 = vmatpush3.bf16.msra.mxu0 %v6278_v22  ;;  %v6295_v9 = vld [vmem:[#allocation5 + $0x188] sm:$0xff]   ;;  %v211_v21 = vld [vmem:[#allocation2 + $0x550] sm:$0xff]  ;;  %v233_v34 = vld [vmem:[#allocation2 + $0x600] sm:$0xff] }
  0x3f   :  { %5026 = vmatpush3.bf16.msra.mxu1 %v6279_v23  ;;  %4915 = vmatprep.subr.bf16.mxu0 %v6280_v24  ;;  %v186_v11 = vld [vmem:[#allocation2 + $0x488] sm:$0xff]  ;;  %v236_v24 = vld [vmem:[#allocation2 + $0x618] sm:$0xff]  ;;  %v6299_v32 = vld [vmem:[#allocation5 + $0x190] sm:$0xff]  }
  0x40   :  { %5027 = vmatprep.subr.bf16.mxu1 %v6281_v25  ;;  %v210_v12 = vld [vmem:[#allocation2 + $0x548] sm:$0xff]  ;;  %v260_v25 = vld [vmem:[#allocation2 + $0x6d8] sm:$0xff]  ;;  %v257_v35 = vld [vmem:[#allocation2 + $0x6c0] sm:$0xff] }
  0x41   :  { %v882_v15 = vpack.c.bf16 %v210_v12, %v186_v11  ;;  %v234_v22 = vld [vmem:[#allocation2 + $0x608] sm:$0xff]  ;;  %v908_v33 = vpack.c.bf16 %v260_v25, %v236_v24  ;;  %v235_v36 = vld [vmem:[#allocation2 + $0x610] sm:$0xff]  ;;  %v308_v41 = vld [vmem:[#allocation2 + $0x858] sm:$0xff] }
  0x42   :  { %4916 = vmatpush3.bf16.msra.mxu0 %v6282_v26  ;;  %v258_v23 = vld [vmem:[#allocation2 + $0x6c8] sm:$0xff]  ;;  %v6296_v26 = vld [vmem:[#allocation5 + $0x150] sm:$0xff]   ;;  %v6300_v42 = vld [vmem:[#allocation5 + $0x158] sm:$0xff]  }
  0x43   :  { %5028 = vmatpush3.bf16.msra.mxu1 %v6283_v27  ;;  %4917 = vmatprep.subr.bf16.mxu0 %v6284_v28  ;;  %v6297_v27 = vld [vmem:[#allocation5 + $0x110] sm:$0xff]   ;;  %v881_v28 = vpack.c.bf16 %v209_v19, %v185_v18  ;;  %v282_v38 = vld [vmem:[#allocation2 + $0x788] sm:$0xff]  ;;  %v6303_v49 = vld [vmem:[#allocation5 + $0x198] sm:$0xff]  }
  0x44   :  { %5029 = vmatprep.subr.bf16.mxu1 %v6285_v29  ;;  %v6298_v29 = vld [vmem:[#allocation5 + $0x1d0] sm:$0xff]   ;;  %v306_v39 = vld [vmem:[#allocation2 + $0x848] sm:$0xff]  ;;  %v281_v50 = vld [vmem:[#allocation2 + $0x780] sm:$0xff] }
  0x45   :  { %v259_v37 = vld [vmem:[#allocation2 + $0x6d0] sm:$0xff]  ;;  %v305_v51 = vld [vmem:[#allocation2 + $0x840] sm:$0xff]  ;;  %v330_v54 = vld [vmem:[#allocation2 + $0x908] sm:$0xff] }
  0x46   :  { %4918 = vmatpush3.bf16.msra.mxu0 %v6286_v30  ;;  %v883_v30 = vpack.c.bf16 %v211_v21, %v187_v20  ;;  %v354_v55 = vld [vmem:[#allocation2 + $0x9c8] sm:$0xff]  ;;  %v332_v56 = vld [vmem:[#allocation2 + $0x918] sm:$0xff]  ;;  %v929_v58 = vpack.c.bf16 %v305_v51, %v281_v50  ;;  %v6304_v59 = vld [vmem:[#allocation5 + $0x160] sm:$0xff]  }
  0x47   :  { %5030 = vmatpush3.bf16.msra.mxu1 %v6287_v31  ;;  %5127 = vmatprep.subr.bf16.mxu0 %v6288_v44  ;;  %v906_v31 = vpack.c.bf16 %v258_v23, %v234_v22  ;;  %v6301_v44 = vld [vmem:[#allocation5 + $0x118] sm:$0xff]   ;;  %v6306_v0 = vld [vmem:[#allocation5 + $0x1e0] sm:$0xff]   ;;  %v331_v4 = vld [vmem:[#allocation2 + $0x910] sm:$0xff] }
  0x48   :  { %5239 = vmatprep.subr.bf16.mxu1 %v6290_v46  ;;  %v930_v46 = vpack.c.bf16 %v306_v39, %v282_v38  ;;  %v329_v2 = vld [vmem:[#allocation2 + $0x900] sm:$0xff]  ;;  %v355_v5 = vld [vmem:[#allocation2 + $0x9d0] sm:$0xff]  ;;  %v6309_v16 = vld [vmem:[#allocation5 + $0x128] sm:$0xff]  }
  0x49   :  { %2762 = vmatmul.mubr.bf16.vlgmr.msra.gmra.mrb[0].mxu0 %v809_v40  ;;  %v284_v40 = vld [vmem:[#allocation2 + $0x798] sm:$0xff]  ;;  %v353_v3 = vld [vmem:[#allocation2 + $0x9c0] sm:$0xff]  ;;  %v955_v11 = vpack.c.bf16 %v355_v5, %v331_v4  ;;  %v379_v19 = vld [vmem:[#allocation2 + $0xa90] sm:$0xff] }
  0x4a   :  { %2923 = vmatmul.mubr.bf16.vlgmr.msra.gmra.mrb[0].mxu1 %v811_v43  ;;  %5128 = vmatpush3.bf16.msra.mxu0 %v6289_v45  ;;  %v905_v43 = vpack.c.bf16 %v257_v35, %v233_v34  ;;  %v907_v45 = vpack.c.bf16 %v259_v37, %v235_v36  ;;  %v932_v48 = vpack.c.bf16 %v308_v41, %v284_v40  ;;  %v401_v18 = vld [vmem:[#allocation2 + $0xb40] sm:$0xff]  ;;  %v6311_v20 = vld [vmem:[#allocation5 + $0x1a8] sm:$0xff]   ;;  %v403_v21 = vld [vmem:[#allocation2 + $0xb50] sm:$0xff] }
  0x4b   :  { %5240 = vmatpush3.bf16.msra.mxu1 %v6291_v47  ;;  %2769 = vmatprep.mubr.bf16.mxu0 %v834_v52  ;;  %v6302_v47 = vld [vmem:[#allocation5 + $0x1d8] sm:$0xff]   ;;  %v283_v52 = vld [vmem:[#allocation2 + $0x790] sm:$0xff]  ;;  %v426_v22 = vld [vmem:[#allocation2 + $0xc08] sm:$0xff] }
  0x4c   :  { %2930 = vmatprep.mubr.bf16.mxu1 %v836_v53  ;;  %5129 = vmatprep.subr.bf16.mxu0 %v6292_v6  ;;  %v307_v53 = vld [vmem:[#allocation2 + $0x850] sm:$0xff]  ;;  %v378_v6 = vld [vmem:[#allocation2 + $0xa88] sm:$0xff]  ;;  %v428_v24 = vld [vmem:[#allocation2 + $0xc18] sm:$0xff] }
  0x4d   :  { %5241 = vmatprep.subr.bf16.mxu1 %v6294_v8  ;;  %v931_v60 = vpack.c.bf16 %v307_v53, %v283_v52  ;;  %v380_v8 = vld [vmem:[#allocation2 + $0xa98] sm:$0xff]  ;;  %v450_v23 = vld [vmem:[#allocation2 + $0xcc8] sm:$0xff]  ;;  %v451_v34 = vld [vmem:[#allocation2 + $0xcd0] sm:$0xff] }
  0x4e   :  { %5130 = vmatpush3.bf16.msra.mxu0 %v6293_v7  ;;  %v402_v7 = vld [vmem:[#allocation2 + $0xb48] sm:$0xff]  ;;  %v452_v25 = vld [vmem:[#allocation2 + $0xcd8] sm:$0xff]  ;;  %v6313_v36 = vld [vmem:[#allocation5 + $0x130] sm:$0xff]  }
  0x4f   :  { %5242 = vmatpush3.bf16.msra.mxu1 %v6295_v9  ;;  %5131 = vmatprep.subr.bf16.mxu0 %v6296_v26  ;;  %v404_v9 = vld [vmem:[#allocation2 + $0xb58] sm:$0xff]  ;;  %v978_v12 = vpack.c.bf16 %v402_v7, %v378_v6  ;;  %v474_v35 = vld [vmem:[#allocation2 + $0xd88] sm:$0xff]  ;;  %v6314_v37 = vld [vmem:[#allocation5 + $0x1f0] sm:$0xff]  }
  0x50   :  { %5243 = vmatprep.subr.bf16.mxu1 %v6298_v29  ;;  %v980_v13 = vpack.c.bf16 %v404_v9, %v380_v8  ;;  %v1004_v29 = vpack.c.bf16 %v452_v25, %v428_v24  ;;  %v498_v38 = vld [vmem:[#allocation2 + $0xe48] sm:$0xff]  ;;  %v6315_v39 = vld [vmem:[#allocation5 + $0x1b0] sm:$0xff]   ;;  %v476_v40 = vld [vmem:[#allocation2 + $0xd98] sm:$0xff] }
  0x51   :  { %2770 = vmatmul.mubr.bf16.gmra.mrb[4].mxu0 %v833_v57  ;;  %v356_v57 = vld [vmem:[#allocation2 + $0x9d8] sm:$0xff]  ;;  %v522_v50 = vld [vmem:[#allocation2 + $0xf08] sm:$0xff]  ;;  %v6320_v5 = vld [vmem:[#allocation5 + $0x240] sm:$0xff]  }
  0x52   :  { %2931 = vmatmul.mubr.bf16.gmra.mrb[4].mxu1 %v835_v61  ;;  %2777 = vmatprep.mubr.bf16.mxu0 %v858_v62  ;;  %v954_v61 = vpack.c.bf16 %v354_v55, %v330_v54  ;;  %v6305_v62 = vld [vmem:[#allocation5 + $0x120] sm:$0xff]   ;;  %v956_v63 = vpack.c.bf16 %v356_v57, %v332_v56  ;;  %v500_v41 = vld [vmem:[#allocation2 + $0xe58] sm:$0xff]  ;;  %v546_v51 = vld [vmem:[#allocation2 + $0xfc8] sm:$0xff] }
  0x53   :  { %2938 = vmatprep.mubr.bf16.mxu1 %v860_v1  ;;  %5132 = vmatpush3.bf16.msra.mxu0 %v6297_v27  ;;  %v6307_v1 = vld [vmem:[#allocation5 + $0x1a0] sm:$0xff]   ;;  %v979_v27 = vpack.c.bf16 %v403_v21, %v379_v19  ;;  %v6316_v52 = vld [vmem:[#allocation5 + $0x178] sm:$0xff]  }
  0x54   :  { %5244 = vmatpush3.bf16.msra.mxu1 %v6299_v32  ;;  %5133 = vmatprep.subr.bf16.mxu0 %v6300_v42  ;;  %v6312_v32 = vld [vmem:[#allocation5 + $0x170] sm:$0xff]   ;;  %v524_v53 = vld [vmem:[#allocation2 + $0xf18] sm:$0xff]  ;;  %v6322_v8 = vld [vmem:[#allocation5 + $0x2c0] sm:$0xff]  }
  0x55   :  { %5245 = vmatprep.subr.bf16.mxu1 %v6302_v47  ;;  %v497_v47 = vld [vmem:[#allocation2 + $0xe40] sm:$0xff]  ;;  %v548_v54 = vld [vmem:[#allocation2 + $0xfd8] sm:$0xff] }
  0x56   :  { %v6317_v55 = vld [vmem:[#allocation5 + $0x138] sm:$0xff]   ;;  %v617_v24 = vld [vmem:[#allocation2 + $0x1200] sm:$0xff] }
  0x57   :  { %5134 = vmatpush3.bf16.msra.mxu0 %v6301_v44  ;;  %v1026_v44 = vpack.c.bf16 %v498_v38, %v474_v35  ;;  %v6318_v56 = vld [vmem:[#allocation5 + $0x1f8] sm:$0xff]   ;;  %v641_v25 = vld [vmem:[#allocation2 + $0x12c0] sm:$0xff]  ;;  %v667_v38 = vld [vmem:[#allocation2 + $0x1390] sm:$0xff] }
  0x58   :  { %5246 = vmatpush3.bf16.msra.mxu1 %v6303_v49  ;;  %5135 = vmatprep.subr.bf16.mxu0 %v6304_v59  ;;  %v499_v49 = vld [vmem:[#allocation2 + $0xe50] sm:$0xff]  ;;  %v6319_v57 = vld [vmem:[#allocation5 + $0x1b8] sm:$0xff]  }
  0x59   :  { %2778 = vmatmul.mubr.bf16.gmra.mrb[8].mxu0 %v857_v10  ;;  %5247 = vmatprep.subr.bf16.mxu1 %v6306_v0  ;;  %v953_v10 = vpack.c.bf16 %v353_v3, %v329_v2  ;;  %v523_v0 = vld [vmem:[#allocation2 + $0xf10] sm:$0xff]  ;;  %v570_v2 = vld [vmem:[#allocation2 + $0x1088] sm:$0xff]  ;;  %v572_v4 = vld [vmem:[#allocation2 + $0x1098] sm:$0xff] }
  0x5a   :  { %2939 = vmatmul.mubr.bf16.gmra.mrb[8].mxu1 %v859_v14  ;;  %2785 = vmatprep.mubr.bf16.mxu0 %v882_v15  ;;  %v6308_v14 = vld [vmem:[#allocation5 + $0x168] sm:$0xff]   ;;  %v377_v15 = vld [vmem:[#allocation2 + $0xa80] sm:$0xff]  ;;  %v596_v6 = vld [vmem:[#allocation2 + $0x1158] sm:$0xff] }
  0x5b   :  { %2946 = vmatprep.mubr.bf16.mxu1 %v884_v17  ;;  %5136 = vmatpush3.bf16.msra.mxu0 %v6305_v62  ;;  %v6310_v17 = vld [vmem:[#allocation5 + $0x1e8] sm:$0xff]   ;;  %v977_v26 = vpack.c.bf16 %v401_v18, %v377_v15  ;;  %v521_v62 = vld [vmem:[#allocation2 + $0xf00] sm:$0xff]  ;;  %v595_v15 = vld [vmem:[#allocation2 + $0x1150] sm:$0xff] }
  0x5c   :  { %5248 = vmatpush3.bf16.msra.mxu1 %v6307_v1  ;;  %5137 = vmatprep.subr.bf16.mxu0 %v6308_v14  ;;  %v547_v1 = vld [vmem:[#allocation2 + $0xfd0] sm:$0xff]  ;;  %v594_v3 = vld [vmem:[#allocation2 + $0x1148] sm:$0xff]  ;;  %v620_v18 = vld [vmem:[#allocation2 + $0x1218] sm:$0xff] }
  0x5d   :  { %5249 = vmatprep.subr.bf16.mxu1 %v6310_v17  ;;  %v1051_v9 = vpack.c.bf16 %v547_v1, %v523_v0  ;;  %v571_v14 = vld [vmem:[#allocation2 + $0x1090] sm:$0xff]  ;;  %v642_v17 = vld [vmem:[#allocation2 + $0x12c8] sm:$0xff]  ;;  %v644_v19 = vld [vmem:[#allocation2 + $0x12d8] sm:$0xff] }
  0x5e   :  { %v1075_v21 = vpack.c.bf16 %v595_v15, %v571_v14  ;;  %v46_v0 = vld [vmem:[#allocation2 + $0x28] sm:$0xff]  ;;  %v96_v15 = vld [vmem:[#allocation2 + $0x1b8] sm:$0xff] }
  0x5f   :  { %5138 = vmatpush3.bf16.msra.mxu0 %v6309_v16  ;;  %v618_v16 = vld [vmem:[#allocation2 + $0x1208] sm:$0xff] }
  0x60   :  { %5250 = vmatpush3.bf16.msra.mxu1 %v6311_v20  ;;  %5139 = vmatprep.subr.bf16.mxu0 %v6312_v32  ;;  %v1097_v32 = vpack.c.bf16 %v641_v25, %v617_v24  ;;  %v70_v1 = vld [vmem:[#allocation2 + $0xe8] sm:$0xff]  ;;  %v95_v25 = vld [vmem:[#allocation2 + $0x1b0] sm:$0xff] }
  0x61   :  { %2786 = vmatmul.mubr.bf16.gmra.mrb[12].mxu0 %v881_v28  ;;  %v1002_v28 = vpack.c.bf16 %v450_v23, %v426_v22  ;;  %5251 = vmatprep.subr.bf16.mxu1 %v6314_v37  ;;  %v1098_v22 = vpack.c.bf16 %v642_v17, %v618_v16  ;;  %v1100_v23 = vpack.c.bf16 %v644_v19, %v620_v18  ;;  %v689_v37 = vld [vmem:[#allocation2 + $0x1440] sm:$0xff]  ;;  %v120_v16 = vld [vmem:[#allocation2 + $0x278] sm:$0xff]  ;;  %v6324_v24 = vld [vmem:[#allocation5 + $0x248] sm:$0xff]  }
  0x62   :  { %2947 = vmatmul.mubr.bf16.gmra.mrb[12].mxu1 %v883_v30  ;;  %2793 = vmatprep.mubr.bf16.mxu0 %v906_v31  ;;  %v425_v30 = vld [vmem:[#allocation2 + $0xc00] sm:$0xff] }
  0x63   :  { %2954 = vmatprep.mubr.bf16.mxu1 %v908_v33  ;;  %v449_v31 = vld [vmem:[#allocation2 + $0xcc0] sm:$0xff]  ;;  %v427_v33 = vld [vmem:[#allocation2 + $0xc10] sm:$0xff]  ;;  %5140 = vmatpush3.bf16.msra.mxu0 %v6313_v36 }
  0x64   :  { %v1001_v42 = vpack.c.bf16 %v449_v31, %v425_v30  ;;  %5252 = vmatpush3.bf16.msra.mxu1 %v6315_v39  ;;  %5141 = vmatprep.subr.bf16.mxu0 %v6316_v52  ;;  %v668_v30 = vld [vmem:[#allocation2 + $0x1398] sm:$0xff]  ;;  %v665_v36 = vld [vmem:[#allocation2 + $0x1380] sm:$0xff]  ;;  %v691_v39 = vld [vmem:[#allocation2 + $0x1450] sm:$0xff] }
  0x65   :  { %5253 = vmatprep.subr.bf16.mxu1 %v6318_v56  ;;  %v692_v31 = vld [vmem:[#allocation2 + $0x1458] sm:$0xff]  ;;  %v762_v52 = vld [vmem:[#allocation2 + $0x1688] sm:$0xff]  ;;  %v6321_v18 = vld [vmem:[#allocation5 + $0x200] sm:$0xff]  }
  0x66   :  { %v1124_v35 = vpack.c.bf16 %v692_v31, %v668_v30  ;;  %v6323_v19 = vld [vmem:[#allocation5 + $0x280] sm:$0xff]   ;;  %v6326_v30 = vld [vmem:[#allocation5 + $0x2c8] sm:$0xff]   ;;  %v144_v31 = vld [vmem:[#allocation2 + $0x338] sm:$0xff] }
  0x67   :  { %5142 = vmatpush3.bf16.msra.mxu0 %v6317_v55  ;;  %v788_v55 = vld [vmem:[#allocation2 + $0x1758] sm:$0xff] }
  0x68   :  { %5254 = vmatpush3.bf16.msra.mxu1 %v6319_v57  ;;  %5351 = vmatprep.subr.bf16.mxu0 %v6320_v5 }
  0x69   :  { %2794 = vmatmul.mubr.bf16.gmra.mrb[16].mxu0 %v905_v43  ;;  %v1003_v43 = vpack.c.bf16 %v451_v34, %v427_v33  ;;  %5463 = vmatprep.subr.bf16.mxu1 %v6322_v8  ;;  %v45_v8 = vld [vmem:[#allocation2 + $0x20] sm:$0xff] }
  0x6a   :  { %2955 = vmatmul.mubr.bf16.gmra.mrb[16].mxu1 %v907_v45  ;;  %2801 = vmatprep.mubr.bf16.mxu0 %v930_v46  ;;  %v1028_v45 = vpack.c.bf16 %v500_v41, %v476_v40  ;;  %v473_v46 = vld [vmem:[#allocation2 + $0xd80] sm:$0xff]  ;;  %v714_v40 = vld [vmem:[#allocation2 + $0x1508] sm:$0xff] }
  0x6b   :  { %2962 = vmatprep.mubr.bf16.mxu1 %v932_v48  ;;  %v475_v48 = vld [vmem:[#allocation2 + $0xd90] sm:$0xff]  ;;  %v738_v41 = vld [vmem:[#allocation2 + $0x15c8] sm:$0xff] }
  0x6c   :  { %v1027_v59 = vpack.c.bf16 %v499_v49, %v475_v48  ;;  %v713_v48 = vld [vmem:[#allocation2 + $0x1500] sm:$0xff] }
  0x6d   :  { %v737_v49 = vld [vmem:[#allocation2 + $0x15c0] sm:$0xff] }
  0x6e   :  { %v1145_v56 = vpack.c.bf16 %v737_v49, %v713_v48  ;;  %v6334_v48 = vld [vmem:[#allocation5 + $0x2d8] sm:$0xff]   ;;  %v214_v49 = vld [vmem:[#allocation2 + $0x568] sm:$0xff] }
  0x71   :  { %2802 = vmatmul.mubr.bf16.gmra.mrb[20].mxu0 %v929_v58  ;;  %v1025_v58 = vpack.c.bf16 %v497_v47, %v473_v46  ;;  %v1146_v46 = vpack.c.bf16 %v738_v41, %v714_v40  ;;  %v6329_v40 = vld [vmem:[#allocation5 + $0x210] sm:$0xff]   ;;  %v141_v41 = vld [vmem:[#allocation2 + $0x320] sm:$0xff] }
  0x72   :  { %2963 = vmatmul.mubr.bf16.gmra.mrb[20].mxu1 %v931_v60  ;;  %2809 = vmatprep.mubr.bf16.mxu0 %v954_v61  ;;  %v1050_v60 = vpack.c.bf16 %v546_v51, %v522_v50  ;;  %v1052_v61 = vpack.c.bf16 %v548_v54, %v524_v53  ;;  %v715_v50 = vld [vmem:[#allocation2 + $0x1510] sm:$0xff]  ;;  %v786_v53 = vld [vmem:[#allocation2 + $0x1748] sm:$0xff]  ;;  %v764_v54 = vld [vmem:[#allocation2 + $0x1698] sm:$0xff] }
  0x73   :  { %2970 = vmatprep.mubr.bf16.mxu1 %v956_v63  ;;  %v545_v63 = vld [vmem:[#allocation2 + $0xfc0] sm:$0xff]  ;;  %v739_v51 = vld [vmem:[#allocation2 + $0x15d0] sm:$0xff] }
  0x74   :  { %v1049_v7 = vpack.c.bf16 %v545_v63, %v521_v62  ;;  %v1147_v57 = vpack.c.bf16 %v739_v51, %v715_v50  ;;  %v763_v62 = vld [vmem:[#allocation2 + $0x1690] sm:$0xff]  ;;  %v192_v50 = vld [vmem:[#allocation2 + $0x4b8] sm:$0xff] }
  0x75   :  { %v787_v63 = vld [vmem:[#allocation2 + $0x1750] sm:$0xff]  ;;  %v216_v51 = vld [vmem:[#allocation2 + $0x578] sm:$0xff] }
  0x76   :  { %v1171_v5 = vpack.c.bf16 %v787_v63, %v763_v62  ;;  %v6340_v62 = vld [vmem:[#allocation5 + $0x268] sm:$0xff]   ;;  %v189_v63 = vld [vmem:[#allocation2 + $0x4a0] sm:$0xff] }
  0x79   :  { %2810 = vmatmul.mubr.bf16.gmra.mrb[24].mxu0 %v953_v10  ;;  %v1074_v10 = vpack.c.bf16 %v594_v3, %v570_v2  ;;  %v48_v2 = vld [vmem:[#allocation2 + $0x38] sm:$0xff] }
  0x7a   :  { %2971 = vmatmul.mubr.bf16.gmra.mrb[24].mxu1 %v955_v11  ;;  %2817 = vmatprep.mubr.bf16.mxu0 %v978_v12  ;;  %v1076_v11 = vpack.c.bf16 %v596_v6, %v572_v4  ;;  %v569_v12 = vld [vmem:[#allocation2 + $0x1080] sm:$0xff]  ;;  %v72_v3 = vld [vmem:[#allocation2 + $0xf8] sm:$0xff]  ;;  %v814_v6 = vpack.c.bf16 %v70_v1, %v46_v0  ;;  %v6342_v1 = vld [vmem:[#allocation5 + $0x2e8] sm:$0xff]  }
  0x7b   :  { %2978 = vmatprep.mubr.bf16.mxu1 %v980_v13  ;;  %v593_v13 = vld [vmem:[#allocation2 + $0x1140] sm:$0xff] }
  0x7c   :  { %v1073_v20 = vpack.c.bf16 %v593_v13, %v569_v12  ;;  %v94_v12 = vld [vmem:[#allocation2 + $0x1a8] sm:$0xff]  ;;  %v213_v0 = vld [vmem:[#allocation2 + $0x560] sm:$0xff] }
  0x7d   :  { %v118_v13 = vld [vmem:[#allocation2 + $0x268] sm:$0xff] }
  0x81   :  { %2818 = vmatmul.mubr.bf16.gmra.mrb[28].mxu0 %v977_v26  ;;  %v619_v26 = vld [vmem:[#allocation2 + $0x1210] sm:$0xff] }
  0x82   :  { %2979 = vmatmul.mubr.bf16.gmra.mrb[28].mxu1 %v979_v27  ;;  %2825 = vmatprep.mubr.bf16.mxu0 %v1002_v28  ;;  %v643_v27 = vld [vmem:[#allocation2 + $0x12d0] sm:$0xff]  ;;  %v666_v28 = vld [vmem:[#allocation2 + $0x1388] sm:$0xff] }
  0x83   :  { %2986 = vmatprep.mubr.bf16.mxu1 %v1004_v29  ;;  %v690_v29 = vld [vmem:[#allocation2 + $0x1448] sm:$0xff]  ;;  %v1099_v33 = vpack.c.bf16 %v643_v27, %v619_v26  ;;  %v119_v26 = vld [vmem:[#allocation2 + $0x270] sm:$0xff] }
  0x84   :  { %v1122_v34 = vpack.c.bf16 %v690_v29, %v666_v28  ;;  %v142_v27 = vld [vmem:[#allocation2 + $0x328] sm:$0xff] }
  0x85   :  { %v166_v28 = vld [vmem:[#allocation2 + $0x3e8] sm:$0xff] }
  0x86   :  { %v6325_v29 = vld [vmem:[#allocation5 + $0x208] sm:$0xff]  }
  0x89   :  { %2826 = vmatmul.mubr.bf16.gmra.mrb[32].mxu0 %v1001_v42  ;;  %v716_v42 = vld [vmem:[#allocation2 + $0x1518] sm:$0xff] }
  0x8a   :  { %2987 = vmatmul.mubr.bf16.gmra.mrb[32].mxu1 %v1003_v43  ;;  %2833 = vmatprep.mubr.bf16.mxu0 %v1026_v44  ;;  %v740_v43 = vld [vmem:[#allocation2 + $0x15d8] sm:$0xff]  ;;  %v1121_v44 = vpack.c.bf16 %v689_v37, %v665_v36  ;;  %v839_v37 = vpack.c.bf16 %v119_v26, %v95_v25  ;;  %v310_v25 = vld [vmem:[#allocation2 + $0x868] sm:$0xff] }
  0x8b   :  { %2994 = vmatprep.mubr.bf16.mxu1 %v1028_v45  ;;  %v1123_v45 = vpack.c.bf16 %v691_v39, %v667_v38  ;;  %v1148_v47 = vpack.c.bf16 %v740_v43, %v716_v42  ;;  %v862_v38 = vpack.c.bf16 %v166_v28, %v142_v27  ;;  %v165_v42 = vld [vmem:[#allocation2 + $0x3e0] sm:$0xff]  ;;  %v6331_v43 = vld [vmem:[#allocation5 + $0x290] sm:$0xff]   ;;  %v288_v26 = vld [vmem:[#allocation2 + $0x7b8] sm:$0xff] }
  0x8c   :  { %v6349_v27 = vld [vmem:[#allocation5 + $0x238] sm:$0xff]  }
  0x8d   :  { %v312_v28 = vld [vmem:[#allocation2 + $0x878] sm:$0xff] }
  0x91   :  { %2834 = vmatmul.mubr.bf16.gmra.mrb[36].mxu0 %v1025_v58  ;;  %v1170_v58 = vpack.c.bf16 %v786_v53, %v762_v52  ;;  %v6333_v52 = vld [vmem:[#allocation5 + $0x218] sm:$0xff]  }
  0x92   :  { %2995 = vmatmul.mubr.bf16.gmra.mrb[36].mxu1 %v1027_v59  ;;  %2841 = vmatprep.mubr.bf16.mxu0 %v1050_v60  ;;  %v1172_v59 = vpack.c.bf16 %v788_v55, %v764_v54  ;;  %v761_v60 = vld [vmem:[#allocation2 + $0x1680] sm:$0xff]  ;;  %v6335_v53 = vld [vmem:[#allocation5 + $0x298] sm:$0xff]   ;;  %v861_v55 = vpack.c.bf16 %v165_v42, %v141_v41  ;;  %v358_v41 = vld [vmem:[#allocation2 + $0x9e8] sm:$0xff] }
  0x93   :  { %3002 = vmatprep.mubr.bf16.mxu1 %v1052_v61  ;;  %v785_v61 = vld [vmem:[#allocation2 + $0x1740] sm:$0xff]  ;;  %v336_v42 = vld [vmem:[#allocation2 + $0x938] sm:$0xff] }
  0x94   :  { %v1169_v4 = vpack.c.bf16 %v785_v61, %v761_v60  ;;  %v6336_v54 = vld [vmem:[#allocation5 + $0x260] sm:$0xff]  }
  0x95   :  { %v6337_v60 = vld [vmem:[#allocation5 + $0x220] sm:$0xff]  }
  0x96   :  { %v6339_v61 = vld [vmem:[#allocation5 + $0x2a0] sm:$0xff]  }
  0x99   :  { %2842 = vmatmul.mubr.bf16.gmra.mrb[40].mxu0 %v1049_v7  ;;  %v816_v7 = vpack.c.bf16 %v72_v3, %v48_v2  ;;  %v191_v2 = vld [vmem:[#allocation2 + $0x4b0] sm:$0xff] }
  0x9a   :  { %3003 = vmatmul.mubr.bf16.gmra.mrb[40].mxu1 %v1051_v9  ;;  %2849 = vmatprep.mubr.bf16.mxu0 %v1074_v10  ;;  %v69_v9 = vld [vmem:[#allocation2 + $0xe0] sm:$0xff]  ;;  %v47_v10 = vld [vmem:[#allocation2 + $0x30] sm:$0xff] }
  0x9b   :  { %3010 = vmatprep.mubr.bf16.mxu1 %v1076_v11  ;;  %v71_v11 = vld [vmem:[#allocation2 + $0xf0] sm:$0xff]  ;;  %v813_v14 = vpack.c.bf16 %v69_v9, %v45_v8  ;;  %v264_v8 = vld [vmem:[#allocation2 + $0x6f8] sm:$0xff]  ;;  %v6343_v9 = vld [vmem:[#allocation5 + $0x2a8] sm:$0xff]  }
  0x9c   :  { %v815_v17 = vpack.c.bf16 %v71_v11, %v47_v10  ;;  %v215_v3 = vld [vmem:[#allocation2 + $0x570] sm:$0xff]  ;;  %v885_v11 = vpack.c.bf16 %v213_v0, %v189_v63  ;;  %v430_v0 = vld [vmem:[#allocation2 + $0xc28] sm:$0xff] }
  0x9d   :  { %v6344_v10 = vld [vmem:[#allocation5 + $0x270] sm:$0xff]  }
  0x9e   :  { %v407_v63 = vld [vmem:[#allocation2 + $0xb70] sm:$0xff] }
  0xa1   :  { %2850 = vmatmul.mubr.bf16.gmra.mrb[44].mxu0 %v1073_v20  ;;  %v838_v20 = vpack.c.bf16 %v118_v13, %v94_v12  ;;  %v6346_v12 = vld [vmem:[#allocation5 + $0x2f0] sm:$0xff]   ;;  %v887_v13 = vpack.c.bf16 %v215_v3, %v191_v2  ;;  %v432_v2 = vld [vmem:[#allocation2 + $0xc38] sm:$0xff] }
  0xa2   :  { %3011 = vmatmul.mubr.bf16.gmra.mrb[44].mxu1 %v1075_v21  ;;  %2857 = vmatprep.mubr.bf16.mxu0 %v1098_v22  ;;  %v840_v21 = vpack.c.bf16 %v120_v16, %v96_v15  ;;  %v93_v22 = vld [vmem:[#allocation2 + $0x1a0] sm:$0xff]  ;;  %v6345_v15 = vld [vmem:[#allocation5 + $0x230] sm:$0xff]   ;;  %v456_v3 = vld [vmem:[#allocation2 + $0xcf8] sm:$0xff] }
  0xa3   :  { %3018 = vmatprep.mubr.bf16.mxu1 %v1100_v23  ;;  %v117_v23 = vld [vmem:[#allocation2 + $0x260] sm:$0xff] }
  0xa4   :  { %v837_v36 = vpack.c.bf16 %v117_v23, %v93_v22  ;;  %v239_v22 = vld [vmem:[#allocation2 + $0x630] sm:$0xff] }
  0xa5   :  { %v263_v23 = vld [vmem:[#allocation2 + $0x6f0] sm:$0xff] }
  0xa9   :  { %2858 = vmatmul.mubr.bf16.gmra.mrb[48].mxu0 %v1097_v32  ;;  %v168_v32 = vld [vmem:[#allocation2 + $0x3f8] sm:$0xff] }
  0xaa   :  { %3019 = vmatmul.mubr.bf16.gmra.mrb[48].mxu1 %v1099_v33  ;;  %2865 = vmatprep.mubr.bf16.mxu0 %v1122_v34  ;;  %v6327_v33 = vld [vmem:[#allocation5 + $0x288] sm:$0xff]   ;;  %v6328_v34 = vld [vmem:[#allocation5 + $0x250] sm:$0xff]   ;;  %v864_v39 = vpack.c.bf16 %v168_v32, %v144_v31  ;;  %v6354_v32 = vld [vmem:[#allocation5 + $0x3c0] sm:$0xff]  }
  0xab   :  { %3026 = vmatprep.mubr.bf16.mxu1 %v1124_v35  ;;  %v6330_v35 = vld [vmem:[#allocation5 + $0x2d0] sm:$0xff]  }
  0xb1   :  { %2866 = vmatmul.mubr.bf16.gmra.mrb[52].mxu0 %v1121_v44  ;;  %v6332_v44 = vld [vmem:[#allocation5 + $0x258] sm:$0xff]  }
  0xb2   :  { %3027 = vmatmul.mubr.bf16.gmra.mrb[52].mxu1 %v1123_v45  ;;  %2873 = vmatprep.mubr.bf16.mxu0 %v1146_v46  ;;  %v143_v45 = vld [vmem:[#allocation2 + $0x330] sm:$0xff] }
  0xb3   :  { %3034 = vmatprep.mubr.bf16.mxu1 %v1148_v47  ;;  %v167_v46 = vld [vmem:[#allocation2 + $0x3f0] sm:$0xff]  ;;  %v190_v47 = vld [vmem:[#allocation2 + $0x4a8] sm:$0xff] }
  0xb9   :  { %2874 = vmatmul.mubr.bf16.gmra.mrb[56].mxu0 %v1145_v56  ;;  %v6338_v56 = vld [vmem:[#allocation5 + $0x2e0] sm:$0xff]  }
  0xba   :  { %3035 = vmatmul.mubr.bf16.gmra.mrb[56].mxu1 %v1147_v57  ;;  %2881 = vmatprep.mubr.bf16.mxu0 %v1170_v58  ;;  %v863_v57 = vpack.c.bf16 %v167_v46, %v143_v45  ;;  %v886_v58 = vpack.c.bf16 %v214_v49, %v190_v47  ;;  %v357_v49 = vld [vmem:[#allocation2 + $0x9e0] sm:$0xff] }
  0xbb   :  { %3042 = vmatprep.mubr.bf16.mxu1 %v1172_v59  ;;  %v888_v59 = vpack.c.bf16 %v216_v51, %v192_v50  ;;  %v335_v50 = vld [vmem:[#allocation2 + $0x930] sm:$0xff] }
  0xbc   :  { %v359_v51 = vld [vmem:[#allocation2 + $0x9f0] sm:$0xff] }
  0xc1   :  { %2882 = vmatmul.mubr.bf16.gmra.mrb[60].mxu0 %v1169_v4  ;;  %v238_v4 = vld [vmem:[#allocation2 + $0x628] sm:$0xff] }
  0xc2   :  { %3043 = vmatmul.mubr.bf16.gmra.mrb[60].mxu1 %v1171_v5  ;;  %3083 = vmatprep.mubr.bf16.mxu0 %v814_v6  ;;  %v262_v5 = vld [vmem:[#allocation2 + $0x6e8] sm:$0xff]  ;;  %v240_v6 = vld [vmem:[#allocation2 + $0x638] sm:$0xff] }
  0xc3   :  { %3244 = vmatprep.mubr.bf16.mxu1 %v816_v7  ;;  %v6341_v7 = vld [vmem:[#allocation5 + $0x228] sm:$0xff]   ;;  %v912_v16 = vpack.c.bf16 %v264_v8, %v240_v6  ;;  %v429_v8 = vld [vmem:[#allocation2 + $0xc20] sm:$0xff] }
  0xc9   :  { %3084 = vmatmul.mubr.bf16.vlgmr.msra.gmra.mrb[64].mxu0 %v813_v14  ;;  %v910_v14 = vpack.c.bf16 %v262_v5, %v238_v4 }
  0xca   :  { %3245 = vmatmul.mubr.bf16.vlgmr.msra.gmra.mrb[64].mxu1 %v815_v17  ;;  %5352 = vmatpush3.bf16.msra.mxu0 %v6321_v18  ;;  %v6347_v17 = vld [vmem:[#allocation5 + $0x2b0] sm:$0xff]   ;;  %v6348_v18 = vld [vmem:[#allocation5 + $0x278] sm:$0xff]  }
  0xcb   :  { %5464 = vmatpush3.bf16.msra.mxu1 %v6323_v19  ;;  %3091 = vmatprep.mubr.bf16.mxu0 %v838_v20  ;;  %v237_v19 = vld [vmem:[#allocation2 + $0x620] sm:$0xff] }
  0xcc   :  { %3252 = vmatprep.mubr.bf16.mxu1 %v840_v21  ;;  %5353 = vmatprep.subr.bf16.mxu0 %v6324_v24  ;;  %v261_v20 = vld [vmem:[#allocation2 + $0x6e0] sm:$0xff]  ;;  %v6350_v21 = vld [vmem:[#allocation5 + $0x2f8] sm:$0xff]   ;;  %v286_v24 = vld [vmem:[#allocation2 + $0x7a8] sm:$0xff] }
  0xcd   :  { %5465 = vmatprep.subr.bf16.mxu1 %v6326_v30  ;;  %v6352_v30 = vld [vmem:[#allocation5 + $0x340] sm:$0xff]   ;;  %v909_v31 = vpack.c.bf16 %v261_v20, %v237_v19 }
  0xce   :  { %5354 = vmatpush3.bf16.msra.mxu0 %v6325_v29  ;;  %v6351_v29 = vld [vmem:[#allocation5 + $0x2b8] sm:$0xff]   ;;  %v477_v20 = vld [vmem:[#allocation2 + $0xda0] sm:$0xff] }
  0xcf   :  { %5466 = vmatpush3.bf16.msra.mxu1 %v6327_v33  ;;  %5355 = vmatprep.subr.bf16.mxu0 %v6328_v34  ;;  %v911_v33 = vpack.c.bf16 %v263_v23, %v239_v22  ;;  %v934_v34 = vpack.c.bf16 %v310_v25, %v286_v24  ;;  %v479_v22 = vld [vmem:[#allocation2 + $0xdb0] sm:$0xff]  ;;  %v526_v24 = vld [vmem:[#allocation2 + $0xf28] sm:$0xff] }
  0xd0   :  { %5467 = vmatprep.subr.bf16.mxu1 %v6330_v35  ;;  %v936_v35 = vpack.c.bf16 %v312_v28, %v288_v26  ;;  %v503_v23 = vld [vmem:[#allocation2 + $0xe70] sm:$0xff]  ;;  %v550_v25 = vld [vmem:[#allocation2 + $0xfe8] sm:$0xff]  ;;  %v528_v26 = vld [vmem:[#allocation2 + $0xf38] sm:$0xff] }
  0xd1   :  { %3092 = vmatmul.mubr.bf16.gmra.mrb[68].mxu0 %v837_v36  ;;  %v285_v36 = vld [vmem:[#allocation2 + $0x7a0] sm:$0xff] }
  0xd2   :  { %3253 = vmatmul.mubr.bf16.gmra.mrb[68].mxu1 %v839_v37  ;;  %3099 = vmatprep.mubr.bf16.mxu0 %v862_v38  ;;  %v309_v37 = vld [vmem:[#allocation2 + $0x860] sm:$0xff]  ;;  %v287_v38 = vld [vmem:[#allocation2 + $0x7b0] sm:$0xff] }
  0xd3   :  { %3260 = vmatprep.mubr.bf16.mxu1 %v864_v39  ;;  %5356 = vmatpush3.bf16.msra.mxu0 %v6329_v40  ;;  %v311_v39 = vld [vmem:[#allocation2 + $0x870] sm:$0xff]  ;;  %v334_v40 = vld [vmem:[#allocation2 + $0x928] sm:$0xff] }
  0xd4   :  { %5468 = vmatpush3.bf16.msra.mxu1 %v6331_v43  ;;  %5357 = vmatprep.subr.bf16.mxu0 %v6332_v44  ;;  %v360_v43 = vld [vmem:[#allocation2 + $0x9f8] sm:$0xff]  ;;  %v933_v44 = vpack.c.bf16 %v309_v37, %v285_v36  ;;  %v935_v45 = vpack.c.bf16 %v311_v39, %v287_v38  ;;  %v958_v46 = vpack.c.bf16 %v358_v41, %v334_v40  ;;  %v574_v36 = vld [vmem:[#allocation2 + $0x10a8] sm:$0xff] }
  0xd5   :  { %5469 = vmatprep.subr.bf16.mxu1 %v6334_v48  ;;  %v960_v47 = vpack.c.bf16 %v360_v43, %v336_v42  ;;  %v333_v48 = vld [vmem:[#allocation2 + $0x920] sm:$0xff]  ;;  %v598_v37 = vld [vmem:[#allocation2 + $0x1168] sm:$0xff]  ;;  %v576_v38 = vld [vmem:[#allocation2 + $0x10b8] sm:$0xff] }
  0xd6   :  { %v600_v39 = vld [vmem:[#allocation2 + $0x1178] sm:$0xff]  ;;  %v1078_v42 = vpack.c.bf16 %v598_v37, %v574_v36  ;;  %v742_v36 = vld [vmem:[#allocation2 + $0x15e8] sm:$0xff] }
  0xd7   :  { %5358 = vmatpush3.bf16.msra.mxu0 %v6333_v52  ;;  %v382_v52 = vld [vmem:[#allocation2 + $0xaa8] sm:$0xff]  ;;  %v1080_v43 = vpack.c.bf16 %v600_v39, %v576_v38  ;;  %v720_v37 = vld [vmem:[#allocation2 + $0x1538] sm:$0xff] }
  0xd8   :  { %5470 = vmatpush3.bf16.msra.mxu1 %v6335_v53  ;;  %5359 = vmatprep.subr.bf16.mxu0 %v6336_v54  ;;  %v406_v53 = vld [vmem:[#allocation2 + $0xb68] sm:$0xff]  ;;  %v384_v54 = vld [vmem:[#allocation2 + $0xab8] sm:$0xff] }
  0xd9   :  { %3100 = vmatmul.mubr.bf16.gmra.mrb[72].mxu0 %v861_v55  ;;  %5471 = vmatprep.subr.bf16.mxu1 %v6338_v56  ;;  %v408_v55 = vld [vmem:[#allocation2 + $0xb78] sm:$0xff]  ;;  %v957_v56 = vpack.c.bf16 %v357_v49, %v333_v48  ;;  %v622_v48 = vld [vmem:[#allocation2 + $0x1228] sm:$0xff] }
  0xda   :  { %3261 = vmatmul.mubr.bf16.gmra.mrb[72].mxu1 %v863_v57  ;;  %3107 = vmatprep.mubr.bf16.mxu0 %v886_v58  ;;  %v959_v57 = vpack.c.bf16 %v359_v51, %v335_v50  ;;  %v982_v58 = vpack.c.bf16 %v406_v53, %v382_v52  ;;  %v646_v49 = vld [vmem:[#allocation2 + $0x12e8] sm:$0xff]  ;;  %v624_v50 = vld [vmem:[#allocation2 + $0x1238] sm:$0xff] }
  0xdb   :  { %3268 = vmatprep.mubr.bf16.mxu1 %v888_v59  ;;  %5360 = vmatpush3.bf16.msra.mxu0 %v6337_v60  ;;  %v984_v59 = vpack.c.bf16 %v408_v55, %v384_v54  ;;  %v381_v60 = vld [vmem:[#allocation2 + $0xaa0] sm:$0xff]  ;;  %v648_v52 = vld [vmem:[#allocation2 + $0x12f8] sm:$0xff] }
  0xdc   :  { %5472 = vmatpush3.bf16.msra.mxu1 %v6339_v61  ;;  %5361 = vmatprep.subr.bf16.mxu0 %v6340_v62  ;;  %v405_v61 = vld [vmem:[#allocation2 + $0xb60] sm:$0xff]  ;;  %v383_v62 = vld [vmem:[#allocation2 + $0xab0] sm:$0xff] }
  0xdd   :  { %5473 = vmatprep.subr.bf16.mxu1 %v6342_v1  ;;  %v454_v1 = vld [vmem:[#allocation2 + $0xce8] sm:$0xff]  ;;  %v981_v4 = vpack.c.bf16 %v405_v61, %v381_v60  ;;  %v983_v5 = vpack.c.bf16 %v407_v63, %v383_v62  ;;  %v1102_v60 = vpack.c.bf16 %v646_v49, %v622_v48 }
  0xde   :  { %v1006_v6 = vpack.c.bf16 %v454_v1, %v430_v0  ;;  %v1104_v0 = vpack.c.bf16 %v648_v52, %v624_v50 }
  0xdf   :  { %5362 = vmatpush3.bf16.msra.mxu0 %v6341_v7  ;;  %v1008_v7 = vpack.c.bf16 %v456_v3, %v432_v2  ;;  %v621_v3 = vld [vmem:[#allocation2 + $0x1220] sm:$0xff] }
  0xe0   :  { %5474 = vmatpush3.bf16.msra.mxu1 %v6343_v9  ;;  %5363 = vmatprep.subr.bf16.mxu0 %v6344_v10  ;;  %v453_v9 = vld [vmem:[#allocation2 + $0xce0] sm:$0xff]  ;;  %v431_v10 = vld [vmem:[#allocation2 + $0xc30] sm:$0xff] }
  0xe1   :  { %3108 = vmatmul.mubr.bf16.gmra.mrb[76].mxu0 %v885_v11  ;;  %5475 = vmatprep.subr.bf16.mxu1 %v6346_v12  ;;  %v455_v11 = vld [vmem:[#allocation2 + $0xcf0] sm:$0xff]  ;;  %v478_v12 = vld [vmem:[#allocation2 + $0xda8] sm:$0xff] }
  0xe2   :  { %3269 = vmatmul.mubr.bf16.gmra.mrb[76].mxu1 %v887_v13  ;;  %3115 = vmatprep.mubr.bf16.mxu0 %v910_v14  ;;  %v502_v13 = vld [vmem:[#allocation2 + $0xe68] sm:$0xff]  ;;  %v480_v14 = vld [vmem:[#allocation2 + $0xdb8] sm:$0xff] }
  0xe3   :  { %3276 = vmatprep.mubr.bf16.mxu1 %v912_v16  ;;  %5364 = vmatpush3.bf16.msra.mxu0 %v6345_v15  ;;  %v504_v15 = vld [vmem:[#allocation2 + $0xe78] sm:$0xff]  ;;  %v1005_v16 = vpack.c.bf16 %v453_v9, %v429_v8  ;;  %v647_v8 = vld [vmem:[#allocation2 + $0x12f0] sm:$0xff]  ;;  %v670_v9 = vld [vmem:[#allocation2 + $0x13a8] sm:$0xff] }
  0xe4   :  { %5476 = vmatpush3.bf16.msra.mxu1 %v6347_v17  ;;  %5365 = vmatprep.subr.bf16.mxu0 %v6348_v18  ;;  %v1007_v17 = vpack.c.bf16 %v455_v11, %v431_v10  ;;  %v1030_v18 = vpack.c.bf16 %v502_v13, %v478_v12  ;;  %v1032_v19 = vpack.c.bf16 %v504_v15, %v480_v14  ;;  %v694_v10 = vld [vmem:[#allocation2 + $0x1468] sm:$0xff]  ;;  %v672_v11 = vld [vmem:[#allocation2 + $0x13b8] sm:$0xff] }
  0xe5   :  { %5477 = vmatprep.subr.bf16.mxu1 %v6350_v21  ;;  %v501_v21 = vld [vmem:[#allocation2 + $0xe60] sm:$0xff]  ;;  %v696_v14 = vld [vmem:[#allocation2 + $0x1478] sm:$0xff] }
  0xe6   :  { %v1029_v28 = vpack.c.bf16 %v501_v21, %v477_v20 }
  0xe7   :  { %5366 = vmatpush3.bf16.msra.mxu0 %v6349_v27  ;;  %v552_v27 = vld [vmem:[#allocation2 + $0xff8] sm:$0xff] }
  0xe8   :  { %5478 = vmatpush3.bf16.msra.mxu1 %v6351_v29  ;;  %5575 = vmatprep.subr.bf16.mxu0 %v6352_v30  ;;  %v1031_v29 = vpack.c.bf16 %v503_v23, %v479_v22  ;;  %v1054_v30 = vpack.c.bf16 %v550_v25, %v526_v24  ;;  %v1126_v22 = vpack.c.bf16 %v694_v10, %v670_v9 }
  0xe9   :  { %3116 = vmatmul.mubr.bf16.gmra.mrb[80].mxu0 %v909_v31  ;;  %5687 = vmatprep.subr.bf16.mxu1 %v6354_v32  ;;  %v1056_v31 = vpack.c.bf16 %v552_v27, %v528_v26  ;;  %v525_v32 = vld [vmem:[#allocation2 + $0xf20] sm:$0xff]  ;;  %v1128_v26 = vpack.c.bf16 %v696_v14, %v672_v11 }
  0xea   :  { %3277 = vmatmul.mubr.bf16.gmra.mrb[80].mxu1 %v911_v33  ;;  %3123 = vmatprep.mubr.bf16.mxu0 %v934_v34  ;;  %v549_v33 = vld [vmem:[#allocation2 + $0xfe0] sm:$0xff]  ;;  %v527_v34 = vld [vmem:[#allocation2 + $0xf30] sm:$0xff] }
  0xeb   :  { %3284 = vmatprep.mubr.bf16.mxu1 %v936_v35  ;;  %v551_v35 = vld [vmem:[#allocation2 + $0xff0] sm:$0xff]  ;;  %v1053_v40 = vpack.c.bf16 %v549_v33, %v525_v32 }
  0xec   :  { %v1055_v41 = vpack.c.bf16 %v551_v35, %v527_v34  ;;  %v671_v33 = vld [vmem:[#allocation2 + $0x13b0] sm:$0xff]  ;;  %v718_v35 = vld [vmem:[#allocation2 + $0x1528] sm:$0xff] }
  0xed   :  { %v695_v34 = vld [vmem:[#allocation2 + $0x1470] sm:$0xff]  ;;  %v1150_v48 = vpack.c.bf16 %v742_v36, %v718_v35 }
  0xf1   :  { %3124 = vmatmul.mubr.bf16.gmra.mrb[84].mxu0 %v933_v44  ;;  %v573_v44 = vld [vmem:[#allocation2 + $0x10a0] sm:$0xff] }
  0xf2   :  { %3285 = vmatmul.mubr.bf16.gmra.mrb[84].mxu1 %v935_v45  ;;  %3131 = vmatprep.mubr.bf16.mxu0 %v958_v46  ;;  %v597_v45 = vld [vmem:[#allocation2 + $0x1160] sm:$0xff]  ;;  %v575_v46 = vld [vmem:[#allocation2 + $0x10b0] sm:$0xff] }
  0xf3   :  { %3292 = vmatprep.mubr.bf16.mxu1 %v960_v47  ;;  %v599_v47 = vld [vmem:[#allocation2 + $0x1170] sm:$0xff]  ;;  %v1077_v55 = vpack.c.bf16 %v597_v45, %v573_v44 }
  0xf9   :  { %3132 = vmatmul.mubr.bf16.gmra.mrb[88].mxu0 %v957_v56 }
  0xfa   :  { %3293 = vmatmul.mubr.bf16.gmra.mrb[88].mxu1 %v959_v57  ;;  %3139 = vmatprep.mubr.bf16.mxu0 %v982_v58 }
  0xfb   :  { %3300 = vmatprep.mubr.bf16.mxu1 %v984_v59  ;;  %v1079_v59 = vpack.c.bf16 %v599_v47, %v575_v46  ;;  %v1127_v47 = vpack.c.bf16 %v695_v34, %v671_v33 }
 0x101   :  { %3140 = vmatmul.mubr.bf16.gmra.mrb[92].mxu0 %v981_v4  ;;  %v645_v4 = vld [vmem:[#allocation2 + $0x12e0] sm:$0xff] }
 0x102   :  { %3301 = vmatmul.mubr.bf16.gmra.mrb[92].mxu1 %v983_v5  ;;  %3147 = vmatprep.mubr.bf16.mxu0 %v1006_v6 }
 0x103   :  { %3308 = vmatprep.mubr.bf16.mxu1 %v1008_v7  ;;  %v623_v7 = vld [vmem:[#allocation2 + $0x1230] sm:$0xff] }
 0x104   :  { %v1103_v21 = vpack.c.bf16 %v647_v8, %v623_v7 }
 0x109   :  { %3148 = vmatmul.mubr.bf16.gmra.mrb[96].mxu0 %v1005_v16 }
 0x10a   :  { %3309 = vmatmul.mubr.bf16.gmra.mrb[96].mxu1 %v1007_v17  ;;  %3155 = vmatprep.mubr.bf16.mxu0 %v1030_v18  ;;  %v1101_v17 = vpack.c.bf16 %v645_v4, %v621_v3 }
 0x10b   :  { %3316 = vmatprep.mubr.bf16.mxu1 %v1032_v19 }
 0x111   :  { %3156 = vmatmul.mubr.bf16.gmra.mrb[100].mxu0 %v1029_v28 }
 0x112   :  { %3317 = vmatmul.mubr.bf16.gmra.mrb[100].mxu1 %v1031_v29  ;;  %3163 = vmatprep.mubr.bf16.mxu0 %v1054_v30  ;;  %v669_v29 = vld [vmem:[#allocation2 + $0x13a0] sm:$0xff] }
 0x113   :  { %3324 = vmatprep.mubr.bf16.mxu1 %v1056_v31  ;;  %v693_v30 = vld [vmem:[#allocation2 + $0x1460] sm:$0xff] }
 0x119   :  { %3164 = vmatmul.mubr.bf16.gmra.mrb[104].mxu0 %v1053_v40  ;;  %v744_v40 = vld [vmem:[#allocation2 + $0x15f8] sm:$0xff] }
 0x11a   :  { %3325 = vmatmul.mubr.bf16.gmra.mrb[104].mxu1 %v1055_v41  ;;  %3171 = vmatprep.mubr.bf16.mxu0 %v1078_v42  ;;  %v1152_v52 = vpack.c.bf16 %v744_v40, %v720_v37 }
 0x11b   :  { %3332 = vmatprep.mubr.bf16.mxu1 %v1080_v43  ;;  %v1125_v43 = vpack.c.bf16 %v693_v30, %v669_v29  ;;  %v76_v30 = vld [vmem:[#allocation2 + $0x118] sm:$0xff] }
 0x11c   :  { %v4919_v51 = vpop.f32.mrb[0].mxu0 }
 0x11d   :  { %v5031_v53 = vpop.f32.mrb[0].mxu1  ;;  %v4920_v54 = vpop.f32.mrb[1].mxu0 }
 0x11e   :  { %v4921_v56 = vadd.f32 %v4920_v54, %v4919_v51  ;;  %v5032_v57 = vpop.f32.mrb[1].mxu1  ;;  %v4922_v58 = vpop.f32.mrb[2].mxu0 }
 0x11f   :  { %v5033_v61 = vadd.f32 %v5032_v57, %v5031_v53  ;;  %v5034_v62 = vpop.f32.mrb[2].mxu1  ;;  %v4923_v63 = vpop.f32.mrb[3].mxu0 }
 0x120   :  { %v4924_v1 = vadd.f32 %v4923_v63, %v4922_v58  ;;  %v5035_v2 = vpop.f32.mrb[3].mxu1  ;;  %v768_v63 = vld [vmem:[#allocation2 + $0x16b8] sm:$0xff] }
 0x121   :  { %v6568_v5 = vadd.f32 %v5033_v61, %v4921_v56  ;;  %v5036_v6 = vadd.f32 %v5035_v2, %v5034_v62  ;;  %3172 = vmatmul.mubr.bf16.gmra.mrb[108].mxu0 %v1077_v55  ;;  %v717_v55 = vld [vmem:[#allocation2 + $0x1520] sm:$0xff]  ;;  %v766_v61 = vld [vmem:[#allocation2 + $0x16a8] sm:$0xff]  ;;  %v792_v2 = vld [vmem:[#allocation2 + $0x1778] sm:$0xff] }
 0x122   :  { %3333 = vmatmul.mubr.bf16.gmra.mrb[108].mxu1 %v1079_v59  ;;  %3179 = vmatprep.mubr.bf16.mxu0 %v1102_v60  ;;  %v741_v56 = vld [vmem:[#allocation2 + $0x15e0] sm:$0xff]  ;;  %v719_v59 = vld [vmem:[#allocation2 + $0x1530] sm:$0xff]  ;;  %v790_v62 = vld [vmem:[#allocation2 + $0x1768] sm:$0xff] }
 0x123   :  { %v6570_v12 = vadd.f32 %v5036_v6, %v4924_v1  ;;  %3340 = vmatprep.mubr.bf16.mxu1 %v1104_v0  ;;  %v743_v60 = vld [vmem:[#allocation2 + $0x15f0] sm:$0xff]  ;;  %v1149_v6 = vpack.c.bf16 %v741_v56, %v717_v55  ;;  %v1174_v11 = vpack.c.bf16 %v790_v62, %v766_v61  ;;  %v100_v56 = vld [vmem:[#allocation2 + $0x1d8] sm:$0xff] }
 0x124   :  { %v4925_v13 = vpop.f32.mrb[4].mxu0  ;;  %v1151_v10 = vpack.c.bf16 %v743_v60, %v719_v59  ;;  %v124_v59 = vld [vmem:[#allocation2 + $0x298] sm:$0xff] }
 0x125   :  { %v5037_v15 = vpop.f32.mrb[4].mxu1  ;;  %v4926_v16 = vpop.f32.mrb[5].mxu0 }
 0x126   :  { %v4927_v18 = vadd.f32 %v4926_v16, %v4925_v13  ;;  %v5038_v19 = vpop.f32.mrb[5].mxu1  ;;  %v4928_v20 = vpop.f32.mrb[6].mxu0  ;;  %v1176_v16 = vpack.c.bf16 %v792_v2, %v768_v63 }
 0x127   :  { %v5039_v23 = vadd.f32 %v5038_v19, %v5037_v15  ;;  %v5040_v24 = vpop.f32.mrb[6].mxu1  ;;  %v4929_v25 = vpop.f32.mrb[7].mxu0  ;;  %v765_v19 = vld [vmem:[#allocation2 + $0x16a0] sm:$0xff] }
 0x128   :  { %v4930_v27 = vadd.f32 %v4929_v25, %v4928_v20  ;;  %v5041_v28 = vpop.f32.mrb[7].mxu1  ;;  %v789_v20 = vld [vmem:[#allocation2 + $0x1760] sm:$0xff]  ;;  %v50_v25 = vld [vmem:[#allocation2 + $0x48] sm:$0xff] }
 0x129   :  { %v6572_v31 = vadd.f32 %v5039_v23, %v4927_v18  ;;  %v5042_v32 = vadd.f32 %v5041_v28, %v5040_v24  ;;  %3180 = vmatmul.mubr.bf16.gmra.mrb[112].mxu0 %v1101_v17  ;;  %v767_v23 = vld [vmem:[#allocation2 + $0x16b0] sm:$0xff]  ;;  %v1173_v34 = vpack.c.bf16 %v789_v20, %v765_v19 }
 0x12a   :  { %3341 = vmatmul.mubr.bf16.gmra.mrb[112].mxu1 %v1103_v21  ;;  %3187 = vmatprep.mubr.bf16.mxu0 %v1126_v22  ;;  %v791_v24 = vld [vmem:[#allocation2 + $0x1770] sm:$0xff] }
 0x12b   :  { %v6574_v38 = vadd.f32 %v5042_v32, %v4930_v27  ;;  %3348 = vmatprep.mubr.bf16.mxu1 %v1128_v26  ;;  %v74_v26 = vld [vmem:[#allocation2 + $0x108] sm:$0xff]  ;;  %v52_v27 = vld [vmem:[#allocation2 + $0x58] sm:$0xff] }
 0x12c   :  { %v4931_v39 = vpop.f32.mrb[8].mxu0  ;;  %v818_v40 = vpack.c.bf16 %v74_v26, %v50_v25  ;;  %v170_v25 = vld [vmem:[#allocation2 + $0x408] sm:$0xff]  ;;  %v148_v26 = vld [vmem:[#allocation2 + $0x358] sm:$0xff] }
 0x12d   :  { %v5043_v41 = vpop.f32.mrb[8].mxu1  ;;  %v4932_v42 = vpop.f32.mrb[9].mxu0 }
 0x12e   :  { %v4933_v44 = vadd.f32 %v4932_v42, %v4931_v39  ;;  %v5044_v45 = vpop.f32.mrb[9].mxu1  ;;  %v4934_v46 = vpop.f32.mrb[10].mxu0  ;;  %v1175_v39 = vpack.c.bf16 %v791_v24, %v767_v23  ;;  %v123_v23 = vld [vmem:[#allocation2 + $0x290] sm:$0xff]  ;;  %v146_v24 = vld [vmem:[#allocation2 + $0x348] sm:$0xff] }
 0x12f   :  { %v5045_v49 = vadd.f32 %v5044_v45, %v5043_v41  ;;  %v5046_v50 = vpop.f32.mrb[10].mxu1  ;;  %v4935_v51 = vpop.f32.mrb[11].mxu0 }
 0x130   :  { %v4936_v53 = vadd.f32 %v4935_v51, %v4934_v46  ;;  %v5047_v54 = vpop.f32.mrb[11].mxu1  ;;  %v51_v51 = vld [vmem:[#allocation2 + $0x50] sm:$0xff] }
 0x131   :  { %v6576_v57 = vadd.f32 %v5045_v49, %v4933_v44  ;;  %v5048_v58 = vadd.f32 %v5047_v54, %v5046_v50  ;;  %3188 = vmatmul.mubr.bf16.gmra.mrb[116].mxu0 %v1125_v43  ;;  %v820_v44 = vpack.c.bf16 %v76_v30, %v52_v27  ;;  %v122_v54 = vld [vmem:[#allocation2 + $0x288] sm:$0xff]  ;;  %v172_v27 = vld [vmem:[#allocation2 + $0x418] sm:$0xff] }
 0x132   :  { %3349 = vmatmul.mubr.bf16.gmra.mrb[116].mxu1 %v1127_v47  ;;  %3195 = vmatprep.mubr.bf16.mxu0 %v1150_v48  ;;  %v49_v47 = vld [vmem:[#allocation2 + $0x40] sm:$0xff]  ;;  %v6359_v30 = vld [vmem:[#allocation5 + $0x388] sm:$0xff]  }
 0x133   :  { %v6578_v0 = vadd.f32 %v5048_v58, %v4936_v53  ;;  %3356 = vmatprep.mubr.bf16.mxu1 %v1152_v52  ;;  %v73_v48 = vld [vmem:[#allocation2 + $0x100] sm:$0xff]  ;;  %v75_v52 = vld [vmem:[#allocation2 + $0x110] sm:$0xff]  ;;  %v98_v53 = vld [vmem:[#allocation2 + $0x1c8] sm:$0xff] }
 0x134   :  { %v4937_v1 = vpop.f32.mrb[12].mxu0  ;;  %v817_v62 = vpack.c.bf16 %v73_v48, %v49_v47  ;;  %v868_v48 = vpack.c.bf16 %v172_v27, %v148_v26  ;;  %v6369_v27 = vld [vmem:[#allocation5 + $0x320] sm:$0xff]  }
 0x135   :  { %v5049_v3 = vpop.f32.mrb[12].mxu1  ;;  %v4938_v4 = vpop.f32.mrb[13].mxu0 }
 0x136   :  { %v4939_v7 = vadd.f32 %v4938_v4, %v4937_v1  ;;  %v5050_v8 = vpop.f32.mrb[13].mxu1  ;;  %v4940_v9 = vpop.f32.mrb[14].mxu0  ;;  %v6353_v4 = vld [vmem:[#allocation5 + $0x300] sm:$0xff]  }
 0x137   :  { %v5051_v13 = vadd.f32 %v5050_v8, %v5049_v3  ;;  %v5052_v14 = vpop.f32.mrb[14].mxu1  ;;  %v4941_v15 = vpop.f32.mrb[15].mxu0  ;;  %v819_v3 = vpack.c.bf16 %v75_v52, %v51_v51  ;;  %v6363_v51 = vld [vmem:[#allocation5 + $0x390] sm:$0xff]  }
 0x138   :  { %v4942_v17 = vadd.f32 %v4941_v15, %v4940_v9  ;;  %v5053_v18 = vpop.f32.mrb[15].mxu1  ;;  %v6355_v9 = vld [vmem:[#allocation5 + $0x380] sm:$0xff]  }
 0x139   :  { %v6580_v21 = vadd.f32 %v5051_v13, %v4939_v7  ;;  %v5054_v22 = vadd.f32 %v5053_v18, %v5052_v14  ;;  %3196 = vmatmul.mubr.bf16.gmra.mrb[120].mxu0 %v1149_v6  ;;  %v844_v14 = vpack.c.bf16 %v124_v59, %v100_v56  ;;  %v97_v15 = vld [vmem:[#allocation2 + $0x1c0] sm:$0xff]  ;;  %v6358_v18 = vld [vmem:[#allocation5 + $0x3c8] sm:$0xff]   ;;  %v6366_v59 = vld [vmem:[#allocation5 + $0x3d8] sm:$0xff]  }
 0x13a   :  { %3357 = vmatmul.mubr.bf16.gmra.mrb[120].mxu1 %v1151_v10  ;;  %3203 = vmatprep.mubr.bf16.mxu0 %v1174_v11  ;;  %v842_v10 = vpack.c.bf16 %v122_v54, %v98_v53  ;;  %v145_v54 = vld [vmem:[#allocation2 + $0x340] sm:$0xff] }
 0x13b   :  { %v6582_v28 = vadd.f32 %v5054_v22, %v4942_v17  ;;  %3364 = vmatprep.mubr.bf16.mxu1 %v1176_v16  ;;  %v121_v16 = vld [vmem:[#allocation2 + $0x280] sm:$0xff]  ;;  %v6356_v17 = vld [vmem:[#allocation5 + $0x348] sm:$0xff]   ;;  %v99_v22 = vld [vmem:[#allocation2 + $0x1d0] sm:$0xff] }
 0x13c   :  { %v4943_v29 = vpop.f32.mrb[16].mxu0  ;;  %v169_v56 = vld [vmem:[#allocation2 + $0x400] sm:$0xff] }
 0x13d   :  { %v5055_v32 = vpop.f32.mrb[16].mxu1  ;;  %v4944_v33 = vpop.f32.mrb[17].mxu0 }
 0x13e   :  { %v4945_v35 = vadd.f32 %v4944_v33, %v4943_v29  ;;  %v5056_v36 = vpop.f32.mrb[17].mxu1  ;;  %v4946_v37 = vpop.f32.mrb[18].mxu0  ;;  %v6357_v29 = vld [vmem:[#allocation5 + $0x308] sm:$0xff]  }
 0x13f   :  { %v5057_v41 = vadd.f32 %v5056_v36, %v5055_v32  ;;  %v5058_v42 = vpop.f32.mrb[18].mxu1  ;;  %v4947_v43 = vpop.f32.mrb[19].mxu0  ;;  %v6360_v32 = vld [vmem:[#allocation5 + $0x350] sm:$0xff]  }
 0x140   :  { %v4948_v45 = vadd.f32 %v4947_v43, %v4946_v37  ;;  %v5059_v46 = vpop.f32.mrb[19].mxu1  ;;  %v843_v43 = vpack.c.bf16 %v123_v23, %v99_v22 }
 0x141   :  { %v6584_v49 = vadd.f32 %v5057_v41, %v4945_v35  ;;  %v5060_v50 = vadd.f32 %v5059_v46, %v5058_v42  ;;  %3204 = vmatmul.mubr.bf16.gmra.mrb[124].mxu0 %v1173_v34  ;;  %v6362_v35 = vld [vmem:[#allocation5 + $0x3d0] sm:$0xff]  }
 0x142   :  { %3365 = vmatmul.mubr.bf16.gmra.mrb[124].mxu1 %v1175_v39  ;;  %3405 = vmatprep.mubr.bf16.mxu0 %v818_v40  ;;  %v841_v39 = vpack.c.bf16 %v121_v16, %v97_v15  ;;  %v865_v15 = vpack.c.bf16 %v169_v56, %v145_v54 }
 0x143   :  { %v6586_v55 = vadd.f32 %v5060_v50, %v4948_v45  ;;  %3566 = vmatprep.mubr.bf16.mxu1 %v820_v44  ;;  %v866_v44 = vpack.c.bf16 %v170_v25, %v146_v24  ;;  %v6361_v50 = vld [vmem:[#allocation5 + $0x310] sm:$0xff]  }
 0x144   :  { %v4949_v58 = vpop.f32.mrb[20].mxu0 }
 0x145   :  { %v5061_v60 = vpop.f32.mrb[20].mxu1  ;;  %v4950_v61 = vpop.f32.mrb[21].mxu0 }
 0x146   :  { %v4951_v63 = vadd.f32 %v4950_v61, %v4949_v58  ;;  %v5062_v1 = vpop.f32.mrb[21].mxu1  ;;  %v4952_v2 = vpop.f32.mrb[22].mxu0  ;;  %v6364_v58 = vld [vmem:[#allocation5 + $0x358] sm:$0xff]  }
 0x147   :  { %v5063_v6 = vadd.f32 %v5062_v1, %v5061_v60  ;;  %v5064_v7 = vpop.f32.mrb[22].mxu1  ;;  %v4953_v8 = vpop.f32.mrb[23].mxu0  ;;  %v194_v1 = vld [vmem:[#allocation2 + $0x4c8] sm:$0xff] }
 0x148   :  { %v4954_v11 = vadd.f32 %v4953_v8, %v4952_v2  ;;  %v5065_v13 = vpop.f32.mrb[23].mxu1  ;;  %v218_v2 = vld [vmem:[#allocation2 + $0x588] sm:$0xff]  ;;  %v6368_v8 = vld [vmem:[#allocation5 + $0x360] sm:$0xff]  }
 0x149   :  { %v6588_v19 = vadd.f32 %v5063_v6, %v4951_v63  ;;  %v5066_v20 = vadd.f32 %v5065_v13, %v5064_v7  ;;  %3406 = vmatmul.mubr.bf16.vlgmr.msra.gmra.mrb[128].mxu0 %v817_v62  ;;  %v147_v62 = vld [vmem:[#allocation2 + $0x350] sm:$0xff]  ;;  %v220_v6 = vld [vmem:[#allocation2 + $0x598] sm:$0xff]  ;;  %v890_v22 = vpack.c.bf16 %v218_v2, %v194_v1 }
 0x14a   :  { %3567 = vmatmul.mubr.bf16.vlgmr.msra.gmra.mrb[128].mxu1 %v819_v3  ;;  %5576 = vmatpush3.bf16.msra.mxu0 %v6353_v4  ;;  %v171_v63 = vld [vmem:[#allocation2 + $0x410] sm:$0xff]  ;;  %v6365_v3 = vld [vmem:[#allocation5 + $0x318] sm:$0xff]  }
 0x14b   :  { %v6590_v33 = vadd.f32 %v5066_v20, %v4954_v11  ;;  %5688 = vmatpush3.bf16.msra.mxu1 %v6355_v9  ;;  %3413 = vmatprep.mubr.bf16.mxu0 %v842_v10  ;;  %v196_v4 = vld [vmem:[#allocation2 + $0x4d8] sm:$0xff]  ;;  %v6370_v11 = vld [vmem:[#allocation5 + $0x3e0] sm:$0xff]   ;;  %v867_v20 = vpack.c.bf16 %v171_v63, %v147_v62 }
 0x14c   :  { %v4955_v34 = vpop.f32.mrb[24].mxu0  ;;  %3574 = vmatprep.mubr.bf16.mxu1 %v844_v14  ;;  %5577 = vmatprep.subr.bf16.mxu0 %v6356_v17  ;;  %v6367_v7 = vld [vmem:[#allocation5 + $0x398] sm:$0xff]   ;;  %v892_v26 = vpack.c.bf16 %v220_v6, %v196_v4 }
 0x14d   :  { %v5067_v36 = vpop.f32.mrb[24].mxu1  ;;  %v4956_v37 = vpop.f32.mrb[25].mxu0  ;;  %5689 = vmatprep.subr.bf16.mxu1 %v6358_v18 }
 0x14e   :  { %v4957_v40 = vadd.f32 %v4956_v37, %v4955_v34  ;;  %v5068_v41 = vpop.f32.mrb[25].mxu1  ;;  %v4958_v42 = vpop.f32.mrb[26].mxu0  ;;  %5578 = vmatpush3.bf16.msra.mxu0 %v6357_v29  ;;  %v6371_v29 = vld [vmem:[#allocation5 + $0x3a0] sm:$0xff]   ;;  %v6374_v37 = vld [vmem:[#allocation5 + $0x3e8] sm:$0xff]  }
 0x14f   :  { %v5069_v45 = vadd.f32 %v5068_v41, %v5067_v36  ;;  %v5070_v46 = vpop.f32.mrb[26].mxu1  ;;  %v4959_v47 = vpop.f32.mrb[27].mxu0  ;;  %5690 = vmatpush3.bf16.msra.mxu1 %v6359_v30  ;;  %5579 = vmatprep.subr.bf16.mxu0 %v6360_v32  ;;  %v193_v34 = vld [vmem:[#allocation2 + $0x4c0] sm:$0xff]  ;;  %v6372_v36 = vld [vmem:[#allocation5 + $0x368] sm:$0xff]   ;;  %v195_v41 = vld [vmem:[#allocation2 + $0x4d0] sm:$0xff] }
 0x150   :  { %v4960_v52 = vadd.f32 %v4959_v47, %v4958_v42  ;;  %v5071_v53 = vpop.f32.mrb[27].mxu1  ;;  %5691 = vmatprep.subr.bf16.mxu1 %v6362_v35  ;;  %v217_v35 = vld [vmem:[#allocation2 + $0x580] sm:$0xff]  ;;  %v219_v42 = vld [vmem:[#allocation2 + $0x590] sm:$0xff]  ;;  %v6373_v47 = vld [vmem:[#allocation5 + $0x328] sm:$0xff]  }
 0x151   :  { %v6592_v60 = vadd.f32 %v5069_v45, %v4957_v40  ;;  %v5072_v61 = vadd.f32 %v5071_v53, %v5070_v46  ;;  %3414 = vmatmul.mubr.bf16.gmra.mrb[132].mxu0 %v841_v39  ;;  %v244_v45 = vld [vmem:[#allocation2 + $0x658] sm:$0xff]  ;;  %v889_v56 = vpack.c.bf16 %v217_v35, %v193_v34  ;;  %v891_v63 = vpack.c.bf16 %v219_v42, %v195_v41  ;;  %v6384_v34 = vld [vmem:[#allocation5 + $0x440] sm:$0xff]  }
 0x152   :  { %3575 = vmatmul.mubr.bf16.gmra.mrb[132].mxu1 %v843_v43  ;;  %3421 = vmatprep.mubr.bf16.mxu0 %v866_v44  ;;  %v242_v43 = vld [vmem:[#allocation2 + $0x648] sm:$0xff]  ;;  %v268_v46 = vld [vmem:[#allocation2 + $0x718] sm:$0xff] }
 0x153   :  { %v6594_v9 = vadd.f32 %v5072_v61, %v4960_v52  ;;  %3582 = vmatprep.mubr.bf16.mxu1 %v868_v48  ;;  %5580 = vmatpush3.bf16.msra.mxu0 %v6361_v50  ;;  %v266_v44 = vld [vmem:[#allocation2 + $0x708] sm:$0xff]  ;;  %v6376_v52 = vld [vmem:[#allocation5 + $0x370] sm:$0xff]   ;;  %v916_v6 = vpack.c.bf16 %v268_v46, %v244_v45 }
 0x154   :  { %v4961_v10 = vpop.f32.mrb[28].mxu0  ;;  %5692 = vmatpush3.bf16.msra.mxu1 %v6363_v51  ;;  %5581 = vmatprep.subr.bf16.mxu0 %v6364_v58  ;;  %v6375_v48 = vld [vmem:[#allocation5 + $0x3a8] sm:$0xff]   ;;  %v6378_v58 = vld [vmem:[#allocation5 + $0x3f0] sm:$0xff]   ;;  %v914_v1 = vpack.c.bf16 %v266_v44, %v242_v43 }
 0x155   :  { %v5073_v13 = vpop.f32.mrb[28].mxu1  ;;  %v4962_v14 = vpop.f32.mrb[29].mxu0  ;;  %5693 = vmatprep.subr.bf16.mxu1 %v6366_v59 }
 0x156   :  { %v4963_v16 = vadd.f32 %v4962_v14, %v4961_v10  ;;  %v5074_v17 = vpop.f32.mrb[29].mxu1  ;;  %v4964_v18 = vpop.f32.mrb[30].mxu0  ;;  %v265_v14 = vld [vmem:[#allocation2 + $0x700] sm:$0xff] }
 0x157   :  { %v5075_v23 = vadd.f32 %v5074_v17, %v5073_v13  ;;  %v5076_v24 = vpop.f32.mrb[30].mxu1  ;;  %v4965_v25 = vpop.f32.mrb[31].mxu0  ;;  %5582 = vmatpush3.bf16.msra.mxu0 %v6365_v3  ;;  %v241_v13 = vld [vmem:[#allocation2 + $0x640] sm:$0xff] }
 0x158   :  { %v4966_v30 = vadd.f32 %v4965_v25, %v4964_v18  ;;  %v5077_v32 = vpop.f32.mrb[31].mxu1  ;;  %5694 = vmatpush3.bf16.msra.mxu1 %v6367_v7  ;;  %5583 = vmatprep.subr.bf16.mxu0 %v6368_v8  ;;  %v6377_v7 = vld [vmem:[#allocation5 + $0x330] sm:$0xff]   ;;  %v314_v25 = vld [vmem:[#allocation2 + $0x888] sm:$0xff] }
 0x159   :  { %v6596_v39 = vadd.f32 %v5075_v23, %v4963_v16  ;;  %v5078_v40 = vadd.f32 %v5077_v32, %v5076_v24  ;;  %3422 = vmatmul.mubr.bf16.gmra.mrb[136].mxu0 %v865_v15  ;;  %5695 = vmatprep.subr.bf16.mxu1 %v6370_v11  ;;  %v6379_v8 = vld [vmem:[#allocation5 + $0x3b0] sm:$0xff]   ;;  %v6380_v15 = vld [vmem:[#allocation5 + $0x378] sm:$0xff]   ;;  %v290_v23 = vld [vmem:[#allocation2 + $0x7c8] sm:$0xff] }
 0x15a   :  { %3583 = vmatmul.mubr.bf16.gmra.mrb[136].mxu1 %v867_v20  ;;  %3429 = vmatprep.mubr.bf16.mxu0 %v890_v22  ;;  %v6382_v16 = vld [vmem:[#allocation5 + $0x3f8] sm:$0xff]   ;;  %v243_v20 = vld [vmem:[#allocation2 + $0x650] sm:$0xff]  ;;  %v938_v45 = vpack.c.bf16 %v314_v25, %v290_v23 }
 0x15b   :  { %v6598_v50 = vadd.f32 %v5078_v40, %v4966_v30  ;;  %3590 = vmatprep.mubr.bf16.mxu1 %v892_v26  ;;  %5584 = vmatpush3.bf16.msra.mxu0 %v6369_v27  ;;  %v267_v22 = vld [vmem:[#allocation2 + $0x710] sm:$0xff]  ;;  %v292_v26 = vld [vmem:[#allocation2 + $0x7d8] sm:$0xff]  ;;  %v6386_v40 = vld [vmem:[#allocation5 + $0x4c0] sm:$0xff]  }
 0x15c   :  { %v4967_v51 = vpop.f32.mrb[32].mxu0  ;;  %5696 = vmatpush3.bf16.msra.mxu1 %v6371_v29  ;;  %5585 = vmatprep.subr.bf16.mxu0 %v6372_v36  ;;  %v6381_v27 = vld [vmem:[#allocation5 + $0x338] sm:$0xff]   ;;  %v915_v44 = vpack.c.bf16 %v267_v22, %v243_v20 }
 0x15d   :  { %v5079_v53 = vpop.f32.mrb[32].mxu1  ;;  %v4968_v54 = vpop.f32.mrb[33].mxu0  ;;  %5697 = vmatprep.subr.bf16.mxu1 %v6374_v37  ;;  %v316_v30 = vld [vmem:[#allocation2 + $0x898] sm:$0xff]  ;;  %v913_v37 = vpack.c.bf16 %v265_v14, %v241_v13 }
 0x15e   :  { %v4969_v59 = vadd.f32 %v4968_v54, %v4967_v51  ;;  %v5080_v61 = vpop.f32.mrb[33].mxu1  ;;  %v4970_v62 = vpop.f32.mrb[34].mxu0  ;;  %v6383_v32 = vld [vmem:[#allocation5 + $0x3b8] sm:$0xff]   ;;  %v940_v51 = vpack.c.bf16 %v316_v30, %v292_v26  ;;  %v337_v30 = vld [vmem:[#allocation2 + $0x940] sm:$0xff] }
 0x15f   :  { %v5081_v2 = vadd.f32 %v5080_v61, %v5079_v53  ;;  %v5082_v3 = vpop.f32.mrb[34].mxu1  ;;  %v4971_v4 = vpop.f32.mrb[35].mxu0  ;;  %5586 = vmatpush3.bf16.msra.mxu0 %v6373_v47  ;;  %v291_v61 = vld [vmem:[#allocation2 + $0x7d0] sm:$0xff] }
 0x160   :  { %v4972_v10 = vadd.f32 %v4971_v4, %v4970_v62  ;;  %v5083_v11 = vpop.f32.mrb[35].mxu1  ;;  %5698 = vmatpush3.bf16.msra.mxu1 %v6375_v48  ;;  %5587 = vmatprep.subr.bf16.mxu0 %v6376_v52  ;;  %v340_v4 = vld [vmem:[#allocation2 + $0x958] sm:$0xff] }
 0x161   :  { %v6600_v17 = vadd.f32 %v5081_v2, %v4969_v59  ;;  %v5084_v18 = vadd.f32 %v5083_v11, %v5082_v3  ;;  %3430 = vmatmul.mubr.bf16.gmra.mrb[140].mxu0 %v889_v56  ;;  %5699 = vmatprep.subr.bf16.mxu1 %v6378_v58  ;;  %v289_v58 = vld [vmem:[#allocation2 + $0x7c0] sm:$0xff]  ;;  %v362_v2 = vld [vmem:[#allocation2 + $0xa08] sm:$0xff] }
 0x162   :  { %3591 = vmatmul.mubr.bf16.gmra.mrb[140].mxu1 %v891_v63  ;;  %3437 = vmatprep.mubr.bf16.mxu0 %v914_v1  ;;  %v313_v59 = vld [vmem:[#allocation2 + $0x880] sm:$0xff]  ;;  %v315_v63 = vld [vmem:[#allocation2 + $0x890] sm:$0xff]  ;;  %v338_v1 = vld [vmem:[#allocation2 + $0x948] sm:$0xff] }
 0x163   :  { %v6602_v24 = vadd.f32 %v5084_v18, %v4972_v10  ;;  %3598 = vmatprep.mubr.bf16.mxu1 %v916_v6  ;;  %5588 = vmatpush3.bf16.msra.mxu0 %v6377_v7  ;;  %v364_v6 = vld [vmem:[#allocation2 + $0xa18] sm:$0xff]  ;;  %v937_v10 = vpack.c.bf16 %v313_v59, %v289_v58 }
 0x164   :  { %v4973_v29 = vpop.f32.mrb[36].mxu0  ;;  %5700 = vmatpush3.bf16.msra.mxu1 %v6379_v8  ;;  %5589 = vmatprep.subr.bf16.mxu0 %v6380_v15  ;;  %v939_v15 = vpack.c.bf16 %v315_v63, %v291_v61  ;;  %v964_v23 = vpack.c.bf16 %v364_v6, %v340_v4  ;;  %v385_v4 = vld [vmem:[#allocation2 + $0xac0] sm:$0xff] }
 0x165   :  { %v5085_v35 = vpop.f32.mrb[36].mxu1  ;;  %v4974_v36 = vpop.f32.mrb[37].mxu0  ;;  %5701 = vmatprep.subr.bf16.mxu1 %v6382_v16  ;;  %v962_v16 = vpack.c.bf16 %v362_v2, %v338_v1  ;;  %v409_v6 = vld [vmem:[#allocation2 + $0xb80] sm:$0xff] }
 0x166   :  { %v4975_v41 = vadd.f32 %v4974_v36, %v4973_v29  ;;  %v5086_v42 = vpop.f32.mrb[37].mxu1  ;;  %v4976_v43 = vpop.f32.mrb[38].mxu0  ;;  %v363_v36 = vld [vmem:[#allocation2 + $0xa10] sm:$0xff] }
 0x167   :  { %v5087_v46 = vadd.f32 %v5086_v42, %v5085_v35  ;;  %v5088_v47 = vpop.f32.mrb[38].mxu1  ;;  %v4977_v48 = vpop.f32.mrb[39].mxu0  ;;  %5590 = vmatpush3.bf16.msra.mxu0 %v6381_v27  ;;  %v388_v42 = vld [vmem:[#allocation2 + $0xad8] sm:$0xff] }
 0x168   :  { %v4978_v52 = vadd.f32 %v4977_v48, %v4976_v43  ;;  %v5089_v53 = vpop.f32.mrb[39].mxu1  ;;  %5702 = vmatpush3.bf16.msra.mxu1 %v6383_v32  ;;  %5799 = vmatprep.subr.bf16.mxu0 %v6384_v34  ;;  %v361_v32 = vld [vmem:[#allocation2 + $0xa00] sm:$0xff]  ;;  %v339_v34 = vld [vmem:[#allocation2 + $0x950] sm:$0xff]  ;;  %v412_v43 = vld [vmem:[#allocation2 + $0xb98] sm:$0xff] }
 0x169   :  { %v6604_v54 = vadd.f32 %v5087_v46, %v4975_v41  ;;  %v5090_v56 = vadd.f32 %v5089_v53, %v5088_v47  ;;  %3438 = vmatmul.mubr.bf16.gmra.mrb[144].mxu0 %v913_v37  ;;  %5911 = vmatprep.subr.bf16.mxu1 %v6386_v40  ;;  %v386_v37 = vld [vmem:[#allocation2 + $0xac8] sm:$0xff]  ;;  %v961_v46 = vpack.c.bf16 %v361_v32, %v337_v30 }
 0x16a   :  { %3599 = vmatmul.mubr.bf16.gmra.mrb[144].mxu1 %v915_v44  ;;  %3445 = vmatprep.mubr.bf16.mxu0 %v938_v45  ;;  %v410_v40 = vld [vmem:[#allocation2 + $0xb88] sm:$0xff]  ;;  %v988_v61 = vpack.c.bf16 %v412_v43, %v388_v42 }
 0x16b   :  { %v6606_v62 = vadd.f32 %v5090_v56, %v4978_v52  ;;  %3606 = vmatprep.mubr.bf16.mxu1 %v940_v51  ;;  %v963_v52 = vpack.c.bf16 %v363_v36, %v339_v34  ;;  %v986_v53 = vpack.c.bf16 %v410_v40, %v386_v37 }
 0x16c   :  { %v4979_v3 = vpop.f32.mrb[40].mxu0 }
 0x16d   :  { %v5091_v7 = vpop.f32.mrb[40].mxu1  ;;  %v4980_v8 = vpop.f32.mrb[41].mxu0 }
 0x16e   :  { %v4981_v11 = vadd.f32 %v4980_v8, %v4979_v3  ;;  %v5092_v13 = vpop.f32.mrb[41].mxu1  ;;  %v4982_v14 = vpop.f32.mrb[42].mxu0 }
 0x16f   :  { %v5093_v18 = vadd.f32 %v5092_v13, %v5091_v7  ;;  %v5094_v20 = vpop.f32.mrb[42].mxu1  ;;  %v4983_v22 = vpop.f32.mrb[43].mxu0  ;;  %v387_v7 = vld [vmem:[#allocation2 + $0xad0] sm:$0xff]  ;;  %v458_v13 = vld [vmem:[#allocation2 + $0xd08] sm:$0xff] }
 0x170   :  { %v4984_v25 = vadd.f32 %v4983_v22, %v4982_v14  ;;  %v5095_v26 = vpop.f32.mrb[43].mxu1  ;;  %v985_v22 = vpack.c.bf16 %v409_v6, %v385_v4 }
 0x171   :  { %v6608_v27 = vadd.f32 %v5093_v18, %v4981_v11  ;;  %v5096_v29 = vadd.f32 %v5095_v26, %v5094_v20  ;;  %3446 = vmatmul.mubr.bf16.gmra.mrb[148].mxu0 %v937_v10  ;;  %v411_v10 = vld [vmem:[#allocation2 + $0xb90] sm:$0xff]  ;;  %v434_v11 = vld [vmem:[#allocation2 + $0xc48] sm:$0xff] }
 0x172   :  { %3607 = vmatmul.mubr.bf16.gmra.mrb[148].mxu1 %v939_v15  ;;  %3453 = vmatprep.mubr.bf16.mxu0 %v962_v16  ;;  %v436_v15 = vld [vmem:[#allocation2 + $0xc58] sm:$0xff]  ;;  %v1010_v30 = vpack.c.bf16 %v458_v13, %v434_v11 }
 0x173   :  { %v6610_v35 = vadd.f32 %v5096_v29, %v4984_v25  ;;  %3614 = vmatprep.mubr.bf16.mxu1 %v964_v23  ;;  %v460_v16 = vld [vmem:[#allocation2 + $0xd18] sm:$0xff]  ;;  %v987_v29 = vpack.c.bf16 %v411_v10, %v387_v7 }
 0x174   :  { %v4985_v41 = vpop.f32.mrb[44].mxu0  ;;  %v1012_v37 = vpack.c.bf16 %v460_v16, %v436_v15 }
 0x175   :  { %v5097_v44 = vpop.f32.mrb[44].mxu1  ;;  %v4986_v45 = vpop.f32.mrb[45].mxu0 }
 0x176   :  { %v4987_v47 = vadd.f32 %v4986_v45, %v4985_v41  ;;  %v5098_v48 = vpop.f32.mrb[45].mxu1  ;;  %v4988_v51 = vpop.f32.mrb[46].mxu0  ;;  %v457_v45 = vld [vmem:[#allocation2 + $0xd00] sm:$0xff] }
 0x177   :  { %v5099_v56 = vadd.f32 %v5098_v48, %v5097_v44  ;;  %v5100_v58 = vpop.f32.mrb[46].mxu1  ;;  %v4989_v59 = vpop.f32.mrb[47].mxu0  ;;  %v433_v44 = vld [vmem:[#allocation2 + $0xc40] sm:$0xff]  ;;  %v459_v48 = vld [vmem:[#allocation2 + $0xd10] sm:$0xff] }
 0x178   :  { %v4990_v63 = vadd.f32 %v4989_v59, %v4988_v51  ;;  %v5101_v1 = vpop.f32.mrb[47].mxu1  ;;  %v482_v51 = vld [vmem:[#allocation2 + $0xdc8] sm:$0xff] }
 0x179   :  { %v6612_v2 = vadd.f32 %v5099_v56, %v4987_v47  ;;  %v5102_v3 = vadd.f32 %v5101_v1, %v5100_v58  ;;  %3454 = vmatmul.mubr.bf16.gmra.mrb[152].mxu0 %v961_v46  ;;  %v435_v46 = vld [vmem:[#allocation2 + $0xc50] sm:$0xff]  ;;  %v484_v56 = vld [vmem:[#allocation2 + $0xdd8] sm:$0xff] }
 0x17a   :  { %3615 = vmatmul.mubr.bf16.gmra.mrb[152].mxu1 %v963_v52  ;;  %3461 = vmatprep.mubr.bf16.mxu0 %v986_v53  ;;  %v506_v52 = vld [vmem:[#allocation2 + $0xe88] sm:$0xff]  ;;  %v508_v58 = vld [vmem:[#allocation2 + $0xe98] sm:$0xff]  ;;  %v1011_v6 = vpack.c.bf16 %v459_v48, %v435_v46 }
 0x17b   :  { %v6614_v8 = vadd.f32 %v5102_v3, %v4990_v63  ;;  %3622 = vmatprep.mubr.bf16.mxu1 %v988_v61  ;;  %v1009_v63 = vpack.c.bf16 %v457_v45, %v433_v44  ;;  %v1034_v7 = vpack.c.bf16 %v506_v52, %v482_v51 }
 0x17c   :  { %v4991_v14 = vpop.f32.mrb[48].mxu0 }
 0x17d   :  { %v5103_v18 = vpop.f32.mrb[48].mxu1  ;;  %v4992_v20 = vpop.f32.mrb[49].mxu0 }
 0x17e   :  { %v4993_v23 = vadd.f32 %v4992_v20, %v4991_v14  ;;  %v5104_v25 = vpop.f32.mrb[49].mxu1  ;;  %v4994_v26 = vpop.f32.mrb[50].mxu0  ;;  %v1036_v14 = vpack.c.bf16 %v508_v58, %v484_v56 }
 0x17f   :  { %v5105_v32 = vadd.f32 %v5104_v25, %v5103_v18  ;;  %v5106_v34 = vpop.f32.mrb[50].mxu1  ;;  %v4995_v36 = vpop.f32.mrb[51].mxu0  ;;  %v483_v25 = vld [vmem:[#allocation2 + $0xdd0] sm:$0xff] }
 0x180   :  { %v4996_v40 = vadd.f32 %v4995_v36, %v4994_v26  ;;  %v5107_v41 = vpop.f32.mrb[51].mxu1  ;;  %v532_v36 = vld [vmem:[#allocation2 + $0xf58] sm:$0xff] }
 0x181   :  { %v6616_v42 = vadd.f32 %v5105_v32, %v4993_v23  ;;  %v5108_v43 = vadd.f32 %v5107_v41, %v5106_v34  ;;  %3462 = vmatmul.mubr.bf16.gmra.mrb[156].mxu0 %v985_v22  ;;  %v481_v22 = vld [vmem:[#allocation2 + $0xdc0] sm:$0xff]  ;;  %v554_v32 = vld [vmem:[#allocation2 + $0x1008] sm:$0xff] }
 0x182   :  { %3623 = vmatmul.mubr.bf16.gmra.mrb[156].mxu1 %v987_v29  ;;  %3469 = vmatprep.mubr.bf16.mxu0 %v1010_v30  ;;  %v505_v23 = vld [vmem:[#allocation2 + $0xe80] sm:$0xff]  ;;  %v507_v29 = vld [vmem:[#allocation2 + $0xe90] sm:$0xff]  ;;  %v530_v30 = vld [vmem:[#allocation2 + $0xf48] sm:$0xff] }
 0x183   :  { %v6618_v47 = vadd.f32 %v5108_v43, %v4996_v40  ;;  %3630 = vmatprep.mubr.bf16.mxu1 %v1012_v37  ;;  %v556_v37 = vld [vmem:[#allocation2 + $0x1018] sm:$0xff]  ;;  %v1033_v43 = vpack.c.bf16 %v505_v23, %v481_v22  ;;  %v1035_v48 = vpack.c.bf16 %v507_v29, %v483_v25  ;;  %v1058_v51 = vpack.c.bf16 %v554_v32, %v530_v30 }
 0x184   :  { %v4997_v53 = vpop.f32.mrb[52].mxu0  ;;  %v1060_v58 = vpack.c.bf16 %v556_v37, %v532_v36 }
 0x185   :  { %v5109_v59 = vpop.f32.mrb[52].mxu1  ;;  %v4998_v61 = vpop.f32.mrb[53].mxu0 }
 0x186   :  { %v4999_v1 = vadd.f32 %v4998_v61, %v4997_v53  ;;  %v5110_v3 = vpop.f32.mrb[53].mxu1  ;;  %v5000_v4 = vpop.f32.mrb[54].mxu0 }
 0x187   :  { %v5111_v10 = vadd.f32 %v5110_v3, %v5109_v59  ;;  %v5112_v11 = vpop.f32.mrb[54].mxu1  ;;  %v5001_v13 = vpop.f32.mrb[55].mxu0  ;;  %v529_v3 = vld [vmem:[#allocation2 + $0xf40] sm:$0xff] }
 0x188   :  { %v5002_v15 = vadd.f32 %v5001_v13, %v5000_v4  ;;  %v5113_v16 = vpop.f32.mrb[55].mxu1  ;;  %v553_v4 = vld [vmem:[#allocation2 + $0x1000] sm:$0xff]  ;;  %v602_v13 = vld [vmem:[#allocation2 + $0x1188] sm:$0xff] }
 0x189   :  { %v6620_v18 = vadd.f32 %v5111_v10, %v4999_v1  ;;  %v5114_v20 = vadd.f32 %v5113_v16, %v5112_v11  ;;  %3470 = vmatmul.mubr.bf16.gmra.mrb[160].mxu0 %v1009_v63  ;;  %v555_v10 = vld [vmem:[#allocation2 + $0x1010] sm:$0xff]  ;;  %v578_v11 = vld [vmem:[#allocation2 + $0x10c8] sm:$0xff]  ;;  %v604_v16 = vld [vmem:[#allocation2 + $0x1198] sm:$0xff]  ;;  %v1057_v23 = vpack.c.bf16 %v553_v4, %v529_v3 }
 0x18a   :  { %3631 = vmatmul.mubr.bf16.gmra.mrb[160].mxu1 %v1011_v6  ;;  %3477 = vmatprep.mubr.bf16.mxu0 %v1034_v7  ;;  %v531_v6 = vld [vmem:[#allocation2 + $0xf50] sm:$0xff]  ;;  %v652_v3 = vld [vmem:[#allocation2 + $0x1318] sm:$0xff] }
 0x18b   :  { %v6622_v26 = vadd.f32 %v5114_v20, %v5002_v15  ;;  %3638 = vmatprep.mubr.bf16.mxu1 %v1036_v14  ;;  %v580_v15 = vld [vmem:[#allocation2 + $0x10d8] sm:$0xff]  ;;  %v1059_v32 = vpack.c.bf16 %v555_v10, %v531_v6 }
 0x18c   :  { %v5003_v34 = vpop.f32.mrb[56].mxu0 }
 0x18d   :  { %v5115_v40 = vpop.f32.mrb[56].mxu1  ;;  %v5004_v41 = vpop.f32.mrb[57].mxu0 }
 0x18e   :  { %v5005_v44 = vadd.f32 %v5004_v41, %v5003_v34  ;;  %v5116_v45 = vpop.f32.mrb[57].mxu1  ;;  %v5006_v46 = vpop.f32.mrb[58].mxu0  ;;  %v1082_v34 = vpack.c.bf16 %v602_v13, %v578_v11  ;;  %v1084_v41 = vpack.c.bf16 %v604_v16, %v580_v15 }
 0x18f   :  { %v5117_v52 = vadd.f32 %v5116_v45, %v5115_v40  ;;  %v5118_v53 = vpop.f32.mrb[58].mxu1  ;;  %v5007_v56 = vpop.f32.mrb[59].mxu0 }
 0x190   :  { %v5008_v59 = vadd.f32 %v5007_v56, %v5006_v46  ;;  %v5119_v61 = vpop.f32.mrb[59].mxu1  ;;  %v603_v56 = vld [vmem:[#allocation2 + $0x1190] sm:$0xff] }
 0x191   :  { %v6624_v63 = vadd.f32 %v5117_v52, %v5005_v44  ;;  %v5120_v1 = vadd.f32 %v5119_v61, %v5118_v53  ;;  %3478 = vmatmul.mubr.bf16.gmra.mrb[164].mxu0 %v1033_v43  ;;  %v579_v52 = vld [vmem:[#allocation2 + $0x10d0] sm:$0xff] }
 0x192   :  { %3639 = vmatmul.mubr.bf16.gmra.mrb[164].mxu1 %v1035_v48  ;;  %3485 = vmatprep.mubr.bf16.mxu0 %v1058_v51  ;;  %v577_v48 = vld [vmem:[#allocation2 + $0x10c0] sm:$0xff]  ;;  %v1083_v15 = vpack.c.bf16 %v603_v56, %v579_v52  ;;  %v676_v52 = vld [vmem:[#allocation2 + $0x13d8] sm:$0xff] }
 0x193   :  { %v6626_v7 = vadd.f32 %v5120_v1, %v5008_v59  ;;  %3646 = vmatprep.mubr.bf16.mxu1 %v1060_v58  ;;  %v601_v51 = vld [vmem:[#allocation2 + $0x1180] sm:$0xff]  ;;  %v626_v58 = vld [vmem:[#allocation2 + $0x1248] sm:$0xff]  ;;  %v628_v1 = vld [vmem:[#allocation2 + $0x1258] sm:$0xff] }
 0x194   :  { %v5009_v14 = vpop.f32.mrb[60].mxu0  ;;  %v650_v59 = vld [vmem:[#allocation2 + $0x1308] sm:$0xff]  ;;  %v1081_v10 = vpack.c.bf16 %v601_v51, %v577_v48 }
 0x195   :  { %v5121_v20 = vpop.f32.mrb[60].mxu1  ;;  %v5010_v22 = vpop.f32.mrb[61].mxu0  ;;  %v1106_v16 = vpack.c.bf16 %v650_v59, %v626_v58  ;;  %v698_v48 = vld [vmem:[#allocation2 + $0x1488] sm:$0xff] }
 0x196   :  { %v5011_v25 = vadd.f32 %v5010_v22, %v5009_v14  ;;  %v5122_v29 = vpop.f32.mrb[61].mxu1  ;;  %v5012_v30 = vpop.f32.mrb[62].mxu0 }
 0x197   :  { %v5123_v36 = vadd.f32 %v5122_v29, %v5121_v20  ;;  %v5124_v37 = vpop.f32.mrb[62].mxu1  ;;  %v5013_v40 = vpop.f32.mrb[63].mxu0 }
 0x198   :  { %v5014_v43 = vadd.f32 %v5013_v40, %v5012_v30  ;;  %v5125_v44 = vpop.f32.mrb[63].mxu1  ;;  %v649_v40 = vld [vmem:[#allocation2 + $0x1300] sm:$0xff] }
 0x199   :  { %v6628_v45 = vadd.f32 %v5123_v36, %v5011_v25  ;;  %v5126_v46 = vadd.f32 %v5125_v44, %v5124_v37  ;;  %3486 = vmatmul.mubr.bf16.gmra.mrb[168].mxu0 %v1057_v23  ;;  %v1108_v25 = vpack.c.bf16 %v652_v3, %v628_v1  ;;  %v625_v37 = vld [vmem:[#allocation2 + $0x1240] sm:$0xff]  ;;  %v651_v44 = vld [vmem:[#allocation2 + $0x1310] sm:$0xff] }
 0x19a   :  { %3647 = vmatmul.mubr.bf16.gmra.mrb[168].mxu1 %v1059_v32  ;;  %3493 = vmatprep.mubr.bf16.mxu0 %v1082_v34 }
 0x19b   :  { %v6630_v53 = vadd.f32 %v5126_v46, %v5014_v43  ;;  %3654 = vmatprep.mubr.bf16.mxu1 %v1084_v41  ;;  %v627_v41 = vld [vmem:[#allocation2 + $0x1250] sm:$0xff]  ;;  %v674_v46 = vld [vmem:[#allocation2 + $0x13c8] sm:$0xff] }
 0x19c   :  { %v5143_v61 = vpop.f32.mrb[64].mxu0 }
 0x19d   :  { %v5255_v4 = vpop.f32.mrb[64].mxu1  ;;  %v5144_v6 = vpop.f32.mrb[65].mxu0 }
 0x19e   :  { %v5145_v11 = vadd.f32 %v5144_v6, %v5143_v61  ;;  %v5256_v13 = vpop.f32.mrb[65].mxu1  ;;  %v5146_v14 = vpop.f32.mrb[66].mxu0  ;;  %v1105_v61 = vpack.c.bf16 %v649_v40, %v625_v37  ;;  %v1130_v6 = vpack.c.bf16 %v698_v48, %v674_v46  ;;  %v746_v37 = vld [vmem:[#allocation2 + $0x1608] sm:$0xff] }
 0x19f   :  { %v5257_v20 = vadd.f32 %v5256_v13, %v5255_v4  ;;  %v5258_v22 = vpop.f32.mrb[66].mxu1  ;;  %v5147_v23 = vpop.f32.mrb[67].mxu0  ;;  %v1107_v4 = vpack.c.bf16 %v651_v44, %v627_v41  ;;  %v724_v41 = vld [vmem:[#allocation2 + $0x1558] sm:$0xff] }
 0x1a0   :  { %v3086_v29 = vadd.f32 %v5145_v11, %v6568_v5  ;;  %v5148_v30 = vadd.f32 %v5147_v23, %v5146_v14  ;;  %v5259_v32 = vpop.f32.mrb[67].mxu1  ;;  %v700_v5 = vld [vmem:[#allocation2 + $0x1498] sm:$0xff] }
 0x1a1   :  { %v5260_v34 = vadd.f32 %v5259_v32, %v5258_v22  ;;  %3494 = vmatmul.mubr.bf16.gmra.mrb[172].mxu0 %v1081_v10  ;;  %v1132_v14 = vpack.c.bf16 %v700_v5, %v676_v52 }
 0x1a2   :  { %v3089_v36 = vadd.f32 %v5148_v30, %v6570_v12  ;;  %3655 = vmatmul.mubr.bf16.gmra.mrb[172].mxu1 %v1083_v15  ;;  %3501 = vmatprep.mubr.bf16.mxu0 %v1106_v16  ;;  %v6634_v43 = vadd.f32 %v5257_v20, %v3086_v29  ;;  %v697_v29 = vld [vmem:[#allocation2 + $0x1480] sm:$0xff]  ;;  %v675_v30 = vld [vmem:[#allocation2 + $0x13d0] sm:$0xff] }
 0x1a3   :  { %3662 = vmatprep.mubr.bf16.mxu1 %v1108_v25  ;;  %v673_v25 = vld [vmem:[#allocation2 + $0x13c0] sm:$0xff] }
 0x1a4   :  { %v5149_v51 = vpop.f32.mrb[68].mxu0  ;;  %v6636_v56 = vadd.f32 %v5260_v34, %v3089_v36  ;;  %v699_v34 = vld [vmem:[#allocation2 + $0x1490] sm:$0xff]  ;;  %v722_v36 = vld [vmem:[#allocation2 + $0x1548] sm:$0xff] }
 0x1a5   :  { %v5261_v58 = vpop.f32.mrb[68].mxu1  ;;  %v5150_v59 = vpop.f32.mrb[69].mxu0 }
 0x1a6   :  { %v5151_v12 = vadd.f32 %v5150_v59, %v5149_v51  ;;  %v5262_v1 = vpop.f32.mrb[69].mxu1  ;;  %v5152_v3 = vpop.f32.mrb[70].mxu0  ;;  %v1129_v51 = vpack.c.bf16 %v697_v29, %v673_v25  ;;  %v1154_v59 = vpack.c.bf16 %v746_v37, %v722_v36  ;;  %v794_v25 = vld [vmem:[#allocation2 + $0x1788] sm:$0xff] }
 0x1a7   :  { %v5263_v10 = vadd.f32 %v5262_v1, %v5261_v58  ;;  %v5264_v11 = vpop.f32.mrb[70].mxu1  ;;  %v5153_v13 = vpop.f32.mrb[71].mxu0  ;;  %v1131_v58 = vpack.c.bf16 %v699_v34, %v675_v30  ;;  %v772_v30 = vld [vmem:[#allocation2 + $0x16d8] sm:$0xff] }
 0x1a8   :  { %v3094_v15 = vadd.f32 %v5151_v12, %v6572_v31  ;;  %v5154_v16 = vadd.f32 %v5153_v13, %v5152_v3  ;;  %v5265_v20 = vpop.f32.mrb[71].mxu1  ;;  %v748_v31 = vld [vmem:[#allocation2 + $0x1618] sm:$0xff] }
 0x1a9   :  { %v5266_v22 = vadd.f32 %v5265_v20, %v5264_v11  ;;  %3502 = vmatmul.mubr.bf16.gmra.mrb[176].mxu0 %v1105_v61  ;;  %v1156_v3 = vpack.c.bf16 %v748_v31, %v724_v41 }
 0x1aa   :  { %v3097_v23 = vadd.f32 %v5154_v16, %v6574_v38  ;;  %3663 = vmatmul.mubr.bf16.gmra.mrb[176].mxu1 %v1107_v4  ;;  %3509 = vmatprep.mubr.bf16.mxu0 %v1130_v6  ;;  %v6640_v32 = vadd.f32 %v5263_v10, %v3094_v15  ;;  %v745_v15 = vld [vmem:[#allocation2 + $0x1600] sm:$0xff]  ;;  %v723_v16 = vld [vmem:[#allocation2 + $0x1550] sm:$0xff] }
 0x1ab   :  { %3670 = vmatprep.mubr.bf16.mxu1 %v1132_v14  ;;  %v721_v14 = vld [vmem:[#allocation2 + $0x1540] sm:$0xff] }
 0x1ac   :  { %v5155_v40 = vpop.f32.mrb[72].mxu0  ;;  %v6642_v44 = vadd.f32 %v5266_v22, %v3097_v23  ;;  %v747_v22 = vld [vmem:[#allocation2 + $0x1610] sm:$0xff]  ;;  %v770_v23 = vld [vmem:[#allocation2 + $0x16c8] sm:$0xff] }
 0x1ad   :  { %v5267_v46 = vpop.f32.mrb[72].mxu1  ;;  %v5156_v48 = vpop.f32.mrb[73].mxu0 }
 0x1ae   :  { %v5157_v38 = vadd.f32 %v5156_v48, %v5155_v40  ;;  %v5268_v52 = vpop.f32.mrb[73].mxu1  ;;  %v5158_v5 = vpop.f32.mrb[74].mxu0  ;;  %v1153_v40 = vpack.c.bf16 %v745_v15, %v721_v14  ;;  %v1178_v48 = vpack.c.bf16 %v794_v25, %v770_v23  ;;  %v78_v14 = vld [vmem:[#allocation2 + $0x128] sm:$0xff] }
 0x1af   :  { %v5269_v61 = vadd.f32 %v5268_v52, %v5267_v46  ;;  %v5270_v12 = vpop.f32.mrb[74].mxu1  ;;  %v5159_v1 = vpop.f32.mrb[75].mxu0  ;;  %v1155_v46 = vpack.c.bf16 %v747_v22, %v723_v16  ;;  %v56_v16 = vld [vmem:[#allocation2 + $0x78] sm:$0xff] }
 0x1b0   :  { %v3102_v4 = vadd.f32 %v5157_v38, %v6576_v57  ;;  %v5160_v6 = vadd.f32 %v5159_v1, %v5158_v5  ;;  %v5271_v10 = vpop.f32.mrb[75].mxu1  ;;  %v796_v57 = vld [vmem:[#allocation2 + $0x1798] sm:$0xff] }
 0x1b1   :  { %v5272_v11 = vadd.f32 %v5271_v10, %v5270_v12  ;;  %3510 = vmatmul.mubr.bf16.gmra.mrb[180].mxu0 %v1129_v51  ;;  %v1180_v5 = vpack.c.bf16 %v796_v57, %v772_v30 }
 0x1b2   :  { %v3105_v13 = vadd.f32 %v5160_v6, %v6578_v0  ;;  %3671 = vmatmul.mubr.bf16.gmra.mrb[180].mxu1 %v1131_v58  ;;  %3517 = vmatprep.mubr.bf16.mxu0 %v1154_v59  ;;  %v6646_v20 = vadd.f32 %v5269_v61, %v3102_v4  ;;  %v793_v4 = vld [vmem:[#allocation2 + $0x1780] sm:$0xff]  ;;  %v771_v6 = vld [vmem:[#allocation2 + $0x16d0] sm:$0xff] }
 0x1b3   :  { %3678 = vmatprep.mubr.bf16.mxu1 %v1156_v3  ;;  %v769_v3 = vld [vmem:[#allocation2 + $0x16c0] sm:$0xff] }
 0x1b4   :  { %v5161_v29 = vpop.f32.mrb[76].mxu0  ;;  %v6648_v34 = vadd.f32 %v5272_v11, %v3105_v13  ;;  %v795_v11 = vld [vmem:[#allocation2 + $0x1790] sm:$0xff]  ;;  %v54_v13 = vld [vmem:[#allocation2 + $0x68] sm:$0xff] }
 0x1b5   :  { %v5273_v36 = vpop.f32.mrb[76].mxu1  ;;  %v5162_v37 = vpop.f32.mrb[77].mxu0 }
 0x1b6   :  { %v5163_v0 = vadd.f32 %v5162_v37, %v5161_v29  ;;  %v5274_v41 = vpop.f32.mrb[77].mxu1  ;;  %v5164_v31 = vpop.f32.mrb[78].mxu0  ;;  %v1177_v29 = vpack.c.bf16 %v793_v4, %v769_v3  ;;  %v822_v37 = vpack.c.bf16 %v78_v14, %v54_v13  ;;  %v102_v3 = vld [vmem:[#allocation2 + $0x1e8] sm:$0xff]  ;;  %v104_v14 = vld [vmem:[#allocation2 + $0x1f8] sm:$0xff] }
 0x1b7   :  { %v5275_v51 = vadd.f32 %v5274_v41, %v5273_v36  ;;  %v5276_v38 = vpop.f32.mrb[78].mxu1  ;;  %v5165_v52 = vpop.f32.mrb[79].mxu0  ;;  %v1179_v36 = vpack.c.bf16 %v795_v11, %v771_v6  ;;  %v126_v4 = vld [vmem:[#allocation2 + $0x2a8] sm:$0xff] }
 0x1b8   :  { %v3110_v58 = vadd.f32 %v5163_v0, %v6580_v21  ;;  %v5166_v59 = vadd.f32 %v5165_v52, %v5164_v31  ;;  %v5277_v61 = vpop.f32.mrb[79].mxu1  ;;  %v80_v21 = vld [vmem:[#allocation2 + $0x138] sm:$0xff] }
 0x1b9   :  { %v5278_v12 = vadd.f32 %v5277_v61, %v5276_v38  ;;  %3518 = vmatmul.mubr.bf16.gmra.mrb[184].mxu0 %v1153_v40  ;;  %v824_v31 = vpack.c.bf16 %v80_v21, %v56_v16  ;;  %v55_v61 = vld [vmem:[#allocation2 + $0x70] sm:$0xff] }
 0x1ba   :  { %v3113_v1 = vadd.f32 %v5166_v59, %v6582_v28  ;;  %3679 = vmatmul.mubr.bf16.gmra.mrb[184].mxu1 %v1155_v46  ;;  %3525 = vmatprep.mubr.bf16.mxu0 %v1178_v48  ;;  %v6652_v10 = vadd.f32 %v5275_v51, %v3110_v58  ;;  %v77_v58 = vld [vmem:[#allocation2 + $0x120] sm:$0xff] }
 0x1bb   :  { %3686 = vmatprep.mubr.bf16.mxu1 %v1180_v5  ;;  %v53_v5 = vld [vmem:[#allocation2 + $0x60] sm:$0xff] }
 0x1bc   :  { %v5167_v15 = vpop.f32.mrb[80].mxu0  ;;  %v6654_v22 = vadd.f32 %v5278_v12, %v3113_v1  ;;  %v79_v12 = vld [vmem:[#allocation2 + $0x130] sm:$0xff]  ;;  %v821_v13 = vpack.c.bf16 %v77_v58, %v53_v5 }
 0x1bd   :  { %v5279_v23 = vpop.f32.mrb[80].mxu1  ;;  %v5168_v25 = vpop.f32.mrb[81].mxu0  ;;  %v127_v58 = vld [vmem:[#allocation2 + $0x2b0] sm:$0xff] }
 0x1be   :  { %v5169_v28 = vadd.f32 %v5168_v25, %v5167_v15  ;;  %v5280_v30 = vpop.f32.mrb[81].mxu1  ;;  %v5170_v57 = vpop.f32.mrb[82].mxu0  ;;  %v128_v15 = vld [vmem:[#allocation2 + $0x2b8] sm:$0xff]  ;;  %v6385_v25 = vld [vmem:[#allocation5 + $0x400] sm:$0xff]  }
 0x1bf   :  { %v5281_v40 = vadd.f32 %v5280_v30, %v5279_v23  ;;  %v5282_v0 = vpop.f32.mrb[82].mxu1  ;;  %v5171_v41 = vpop.f32.mrb[83].mxu0  ;;  %v823_v23 = vpack.c.bf16 %v79_v12, %v55_v61  ;;  %v150_v61 = vld [vmem:[#allocation2 + $0x368] sm:$0xff] }
 0x1c0   :  { %v3118_v46 = vadd.f32 %v5169_v28, %v6584_v49  ;;  %v5172_v48 = vadd.f32 %v5171_v41, %v5170_v57  ;;  %v5283_v51 = vpop.f32.mrb[83].mxu1  ;;  %v6387_v57 = vld [vmem:[#allocation5 + $0x480] sm:$0xff]   ;;  %v848_v41 = vpack.c.bf16 %v128_v15, %v104_v14  ;;  %v6389_v12 = vld [vmem:[#allocation5 + $0x408] sm:$0xff]   ;;  %v6394_v14 = vld [vmem:[#allocation5 + $0x4d0] sm:$0xff]  }
 0x1c1   :  { %v5284_v38 = vadd.f32 %v5283_v51, %v5282_v0  ;;  %3526 = vmatmul.mubr.bf16.gmra.mrb[188].mxu0 %v1177_v29  ;;  %v125_v51 = vld [vmem:[#allocation2 + $0x2a0] sm:$0xff] }
 0x1c2   :  { %v3121_v52 = vadd.f32 %v5172_v48, %v6586_v55  ;;  %3687 = vmatmul.mubr.bf16.gmra.mrb[188].mxu1 %v1179_v36  ;;  %3727 = vmatprep.mubr.bf16.mxu0 %v822_v37  ;;  %v6658_v59 = vadd.f32 %v5281_v40, %v3118_v46  ;;  %v846_v36 = vpack.c.bf16 %v126_v4, %v102_v3  ;;  %v6388_v46 = vld [vmem:[#allocation5 + $0x448] sm:$0xff]   ;;  %v6392_v4 = vld [vmem:[#allocation5 + $0x450] sm:$0xff]  }
 0x1c3   :  { %3888 = vmatprep.mubr.bf16.mxu1 %v824_v31  ;;  %v101_v31 = vld [vmem:[#allocation2 + $0x1e0] sm:$0xff]  ;;  %v6391_v3 = vld [vmem:[#allocation5 + $0x488] sm:$0xff]  }
 0x1c4   :  { %v5173_v1 = vpop.f32.mrb[84].mxu0  ;;  %v6660_v6 = vadd.f32 %v5284_v38, %v3121_v52  ;;  %v103_v38 = vld [vmem:[#allocation2 + $0x1f0] sm:$0xff]  ;;  %v6390_v52 = vld [vmem:[#allocation5 + $0x4c8] sm:$0xff]  }
 0x1c5   :  { %v5285_v49 = vpop.f32.mrb[84].mxu1  ;;  %v5174_v11 = vpop.f32.mrb[85].mxu0 }
 0x1c6   :  { %v5175_v55 = vadd.f32 %v5174_v11, %v5173_v1  ;;  %v5286_v16 = vpop.f32.mrb[85].mxu1  ;;  %v5176_v21 = vpop.f32.mrb[86].mxu0  ;;  %v152_v11 = vld [vmem:[#allocation2 + $0x378] sm:$0xff] }
 0x1c7   :  { %v5287_v29 = vadd.f32 %v5286_v16, %v5285_v49  ;;  %v5288_v28 = vpop.f32.mrb[86].mxu1  ;;  %v5177_v30 = vpop.f32.mrb[87].mxu0  ;;  %v845_v16 = vpack.c.bf16 %v125_v51, %v101_v31  ;;  %v6395_v31 = vld [vmem:[#allocation5 + $0x490] sm:$0xff]  }
 0x1c8   :  { %v3126_v37 = vadd.f32 %v5175_v55, %v6588_v19  ;;  %v5178_v40 = vadd.f32 %v5177_v30, %v5176_v21  ;;  %v5289_v0 = vpop.f32.mrb[87].mxu1  ;;  %v174_v19 = vld [vmem:[#allocation2 + $0x428] sm:$0xff] }
 0x1c9   :  { %v5290_v48 = vadd.f32 %v5289_v0, %v5288_v28  ;;  %3728 = vmatmul.mubr.bf16.vlgmr.msra.gmra.mrb[192].mxu0 %v821_v13  ;;  %v176_v13 = vld [vmem:[#allocation2 + $0x438] sm:$0xff]  ;;  %v870_v28 = vpack.c.bf16 %v174_v19, %v150_v61  ;;  %v151_v61 = vld [vmem:[#allocation2 + $0x370] sm:$0xff]  ;;  %v198_v19 = vld [vmem:[#allocation2 + $0x4e8] sm:$0xff] }
 0x1ca   :  { %v3129_v5 = vadd.f32 %v5178_v40, %v6590_v33  ;;  %3889 = vmatmul.mubr.bf16.vlgmr.msra.gmra.mrb[192].mxu1 %v823_v23  ;;  %5800 = vmatpush3.bf16.msra.mxu0 %v6385_v25  ;;  %v6664_v1 = vadd.f32 %v5287_v29, %v3126_v37  ;;  %v847_v29 = vpack.c.bf16 %v127_v58, %v103_v38  ;;  %v6393_v40 = vld [vmem:[#allocation5 + $0x410] sm:$0xff]   ;;  %v173_v38 = vld [vmem:[#allocation2 + $0x420] sm:$0xff] }
 0x1cb   :  { %5912 = vmatpush3.bf16.msra.mxu1 %v6387_v57  ;;  %3735 = vmatprep.mubr.bf16.mxu0 %v846_v36  ;;  %v872_v37 = vpack.c.bf16 %v176_v13, %v152_v11  ;;  %v224_v13 = vld [vmem:[#allocation2 + $0x5b8] sm:$0xff] }
 0x1cc   :  { %v5179_v49 = vpop.f32.mrb[88].mxu0  ;;  %3896 = vmatprep.mubr.bf16.mxu1 %v848_v41  ;;  %5801 = vmatprep.subr.bf16.mxu0 %v6388_v46  ;;  %v6666_v15 = vadd.f32 %v5290_v48, %v3129_v5  ;;  %v6396_v48 = vld [vmem:[#allocation5 + $0x458] sm:$0xff]  }
 0x1cd   :  { %v5291_v33 = vpop.f32.mrb[88].mxu1  ;;  %v5180_v55 = vpop.f32.mrb[89].mxu0  ;;  %5913 = vmatprep.subr.bf16.mxu1 %v6390_v52  ;;  %v149_v52 = vld [vmem:[#allocation2 + $0x360] sm:$0xff]  ;;  %v6398_v5 = vld [vmem:[#allocation5 + $0x4d8] sm:$0xff]  }
 0x1ce   :  { %v5181_v21 = vadd.f32 %v5180_v55, %v5179_v49  ;;  %v5292_v23 = vpop.f32.mrb[89].mxu1  ;;  %v5182_v25 = vpop.f32.mrb[90].mxu0  ;;  %5802 = vmatpush3.bf16.msra.mxu0 %v6389_v12  ;;  %v175_v12 = vld [vmem:[#allocation2 + $0x430] sm:$0xff]  ;;  %v6397_v49 = vld [vmem:[#allocation5 + $0x418] sm:$0xff]  }
 0x1cf   :  { %v5293_v30 = vadd.f32 %v5292_v23, %v5291_v33  ;;  %v5294_v57 = vpop.f32.mrb[90].mxu1  ;;  %v5183_v36 = vpop.f32.mrb[91].mxu0  ;;  %5914 = vmatpush3.bf16.msra.mxu1 %v6391_v3  ;;  %5803 = vmatprep.subr.bf16.mxu0 %v6392_v4  ;;  %v200_v4 = vld [vmem:[#allocation2 + $0x4f8] sm:$0xff]  ;;  %v6400_v33 = vld [vmem:[#allocation5 + $0x460] sm:$0xff]  }
 0x1d0   :  { %v3134_v0 = vadd.f32 %v5181_v21, %v6592_v60  ;;  %v5184_v41 = vadd.f32 %v5183_v36, %v5182_v25  ;;  %v5295_v46 = vpop.f32.mrb[91].mxu1  ;;  %5915 = vmatprep.subr.bf16.mxu1 %v6394_v14  ;;  %v222_v60 = vld [vmem:[#allocation2 + $0x5a8] sm:$0xff]  ;;  %v6399_v14 = vld [vmem:[#allocation5 + $0x498] sm:$0xff]   ;;  %v869_v21 = vpack.c.bf16 %v173_v38, %v149_v52  ;;  %v6402_v23 = vld [vmem:[#allocation5 + $0x4e0] sm:$0xff]  }
 0x1d1   :  { %v5296_v51 = vadd.f32 %v5295_v46, %v5294_v57  ;;  %3736 = vmatmul.mubr.bf16.gmra.mrb[196].mxu0 %v845_v16  ;;  %v894_v57 = vpack.c.bf16 %v222_v60, %v198_v19  ;;  %v6404_v52 = vld [vmem:[#allocation5 + $0x468] sm:$0xff]   ;;  %v199_v19 = vld [vmem:[#allocation2 + $0x4f0] sm:$0xff] }
 0x1d2   :  { %v3137_v58 = vadd.f32 %v5184_v41, %v6594_v9  ;;  %3897 = vmatmul.mubr.bf16.gmra.mrb[196].mxu1 %v847_v29  ;;  %3743 = vmatprep.mubr.bf16.mxu0 %v870_v28  ;;  %v6670_v3 = vadd.f32 %v5293_v30, %v3134_v0  ;;  %v871_v30 = vpack.c.bf16 %v175_v12, %v151_v61  ;;  %v6401_v41 = vld [vmem:[#allocation5 + $0x420] sm:$0xff]   ;;  %v6406_v61 = vld [vmem:[#allocation5 + $0x4e8] sm:$0xff]   ;;  %v223_v60 = vld [vmem:[#allocation2 + $0x5b0] sm:$0xff] }
 0x1d3   :  { %3904 = vmatprep.mubr.bf16.mxu1 %v872_v37  ;;  %5804 = vmatpush3.bf16.msra.mxu0 %v6393_v40  ;;  %v896_v0 = vpack.c.bf16 %v224_v13, %v200_v4  ;;  %v246_v4 = vld [vmem:[#allocation2 + $0x668] sm:$0xff] }
 0x1d4   :  { %v5185_v11 = vpop.f32.mrb[92].mxu0  ;;  %5916 = vmatpush3.bf16.msra.mxu1 %v6395_v31  ;;  %5805 = vmatprep.subr.bf16.mxu0 %v6396_v48  ;;  %v6672_v55 = vadd.f32 %v5296_v51, %v3137_v58  ;;  %v6403_v51 = vld [vmem:[#allocation5 + $0x4a0] sm:$0xff]   ;;  %v6405_v13 = vld [vmem:[#allocation5 + $0x428] sm:$0xff]  }
 0x1d5   :  { %v5297_v9 = vpop.f32.mrb[92].mxu1  ;;  %v5186_v16 = vpop.f32.mrb[93].mxu0  ;;  %5917 = vmatprep.subr.bf16.mxu1 %v6398_v5  ;;  %v197_v5 = vld [vmem:[#allocation2 + $0x4e0] sm:$0xff] }
 0x1d6   :  { %v5187_v25 = vadd.f32 %v5186_v16, %v5185_v11  ;;  %v5298_v29 = vpop.f32.mrb[93].mxu1  ;;  %v5188_v28 = vpop.f32.mrb[94].mxu0  ;;  %v221_v58 = vld [vmem:[#allocation2 + $0x5a0] sm:$0xff]  ;;  %v248_v11 = vld [vmem:[#allocation2 + $0x678] sm:$0xff]  ;;  %v6408_v16 = vld [vmem:[#allocation5 + $0x470] sm:$0xff]  }
 0x1d7   :  { %v5299_v36 = vadd.f32 %v5298_v29, %v5297_v9  ;;  %v5300_v37 = vpop.f32.mrb[94].mxu1  ;;  %v5189_v40 = vpop.f32.mrb[95].mxu0  ;;  %5806 = vmatpush3.bf16.msra.mxu0 %v6397_v49  ;;  %v270_v49 = vld [vmem:[#allocation2 + $0x728] sm:$0xff]  ;;  %v6410_v29 = vld [vmem:[#allocation5 + $0x4f0] sm:$0xff]  }
 0x1d8   :  { %v3142_v46 = vadd.f32 %v5187_v25, %v6596_v39  ;;  %v5190_v31 = vadd.f32 %v5189_v40, %v5188_v28  ;;  %v5301_v48 = vpop.f32.mrb[95].mxu1  ;;  %5918 = vmatpush3.bf16.msra.mxu1 %v6399_v14  ;;  %5807 = vmatprep.subr.bf16.mxu0 %v6400_v33  ;;  %v272_v33 = vld [vmem:[#allocation2 + $0x738] sm:$0xff]  ;;  %v6407_v9 = vld [vmem:[#allocation5 + $0x4a8] sm:$0xff]   ;;  %v893_v25 = vpack.c.bf16 %v221_v58, %v197_v5 }
 0x1d9   :  { %v5302_v38 = vadd.f32 %v5301_v48, %v5300_v37  ;;  %3744 = vmatmul.mubr.bf16.gmra.mrb[200].mxu0 %v869_v21  ;;  %5919 = vmatprep.subr.bf16.mxu1 %v6402_v23  ;;  %v918_v37 = vpack.c.bf16 %v270_v49, %v246_v4  ;;  %v6412_v5 = vld [vmem:[#allocation5 + $0x478] sm:$0xff]   ;;  %v247_v4 = vld [vmem:[#allocation2 + $0x670] sm:$0xff] }
 0x1da   :  { %v3145_v12 = vadd.f32 %v5190_v31, %v6598_v50  ;;  %3905 = vmatmul.mubr.bf16.gmra.mrb[200].mxu1 %v871_v30  ;;  %3751 = vmatprep.mubr.bf16.mxu0 %v894_v57  ;;  %v6676_v39 = vadd.f32 %v5299_v36, %v3142_v46  ;;  %v895_v36 = vpack.c.bf16 %v223_v60, %v199_v19  ;;  %v6409_v31 = vld [vmem:[#allocation5 + $0x430] sm:$0xff]   ;;  %v6414_v19 = vld [vmem:[#allocation5 + $0x4f8] sm:$0xff]  }
 0x1db   :  { %3912 = vmatprep.mubr.bf16.mxu1 %v896_v0  ;;  %5808 = vmatpush3.bf16.msra.mxu0 %v6401_v41  ;;  %v920_v46 = vpack.c.bf16 %v272_v33, %v248_v11  ;;  %v271_v49 = vld [vmem:[#allocation2 + $0x730] sm:$0xff]  ;;  %v294_v11 = vld [vmem:[#allocation2 + $0x7e8] sm:$0xff]  ;;  %v6413_v33 = vld [vmem:[#allocation5 + $0x438] sm:$0xff]  }
 0x1dc   :  { %v5191_v14 = vpop.f32.mrb[96].mxu0  ;;  %5920 = vmatpush3.bf16.msra.mxu1 %v6403_v51  ;;  %5809 = vmatprep.subr.bf16.mxu0 %v6404_v52  ;;  %v6678_v21 = vadd.f32 %v5302_v38, %v3145_v12  ;;  %v6411_v38 = vld [vmem:[#allocation5 + $0x4b0] sm:$0xff]   ;;  %v269_v12 = vld [vmem:[#allocation2 + $0x720] sm:$0xff] }
 0x1dd   :  { %v5303_v50 = vpop.f32.mrb[96].mxu1  ;;  %v5192_v23 = vpop.f32.mrb[97].mxu0  ;;  %5921 = vmatprep.subr.bf16.mxu1 %v6406_v61  ;;  %v245_v61 = vld [vmem:[#allocation2 + $0x660] sm:$0xff] }
 0x1de   :  { %v5193_v28 = vadd.f32 %v5192_v23, %v5191_v14  ;;  %v5304_v30 = vpop.f32.mrb[97].mxu1  ;;  %v5194_v57 = vpop.f32.mrb[98].mxu0  ;;  %v296_v14 = vld [vmem:[#allocation2 + $0x7f8] sm:$0xff]  ;;  %v6416_v23 = vld [vmem:[#allocation5 + $0x540] sm:$0xff]  }
 0x1df   :  { %v5305_v40 = vadd.f32 %v5304_v30, %v5303_v50  ;;  %v5306_v0 = vpop.f32.mrb[98].mxu1  ;;  %v5195_v41 = vpop.f32.mrb[99].mxu0  ;;  %5810 = vmatpush3.bf16.msra.mxu0 %v6405_v13  ;;  %v318_v13 = vld [vmem:[#allocation2 + $0x8a8] sm:$0xff]  ;;  %v6415_v50 = vld [vmem:[#allocation5 + $0x4b8] sm:$0xff]   ;;  %v6418_v30 = vld [vmem:[#allocation5 + $0x5c0] sm:$0xff]  }
 0x1e0   :  { %v3150_v48 = vadd.f32 %v5193_v28, %v6600_v17  ;;  %v5196_v51 = vadd.f32 %v5195_v41, %v5194_v57  ;;  %v5307_v52 = vpop.f32.mrb[99].mxu1  ;;  %5922 = vmatpush3.bf16.msra.mxu1 %v6407_v9  ;;  %5811 = vmatprep.subr.bf16.mxu0 %v6408_v16  ;;  %v320_v16 = vld [vmem:[#allocation2 + $0x8b8] sm:$0xff]  ;;  %v917_v28 = vpack.c.bf16 %v269_v12, %v245_v61  ;;  %v293_v61 = vld [vmem:[#allocation2 + $0x7e0] sm:$0xff] }
 0x1e1   :  { %v5308_v58 = vadd.f32 %v5307_v52, %v5306_v0  ;;  %3752 = vmatmul.mubr.bf16.gmra.mrb[204].mxu0 %v893_v25  ;;  %5923 = vmatprep.subr.bf16.mxu1 %v6410_v29  ;;  %v942_v0 = vpack.c.bf16 %v318_v13, %v294_v11  ;;  %v317_v12 = vld [vmem:[#allocation2 + $0x8a0] sm:$0xff]  ;;  %v344_v13 = vld [vmem:[#allocation2 + $0x978] sm:$0xff] }
 0x1e2   :  { %v3153_v60 = vadd.f32 %v5196_v51, %v6602_v24  ;;  %3913 = vmatmul.mubr.bf16.gmra.mrb[204].mxu1 %v895_v36  ;;  %3759 = vmatprep.mubr.bf16.mxu0 %v918_v37  ;;  %v6682_v17 = vadd.f32 %v5305_v40, %v3150_v48  ;;  %v919_v40 = vpack.c.bf16 %v271_v49, %v247_v4  ;;  %v319_v4 = vld [vmem:[#allocation2 + $0x8b0] sm:$0xff]  ;;  %v342_v49 = vld [vmem:[#allocation2 + $0x968] sm:$0xff] }
 0x1e3   :  { %3920 = vmatprep.mubr.bf16.mxu1 %v920_v46  ;;  %5812 = vmatpush3.bf16.msra.mxu0 %v6409_v31  ;;  %v944_v48 = vpack.c.bf16 %v320_v16, %v296_v14  ;;  %v368_v14 = vld [vmem:[#allocation2 + $0xa38] sm:$0xff] }
 0x1e4   :  { %v5197_v9 = vpop.f32.mrb[100].mxu0  ;;  %5924 = vmatpush3.bf16.msra.mxu1 %v6411_v38  ;;  %5813 = vmatprep.subr.bf16.mxu0 %v6412_v5  ;;  %v6684_v25 = vadd.f32 %v5308_v58, %v3153_v60 }
 0x1e5   :  { %v5309_v24 = vpop.f32.mrb[100].mxu1  ;;  %v5198_v29 = vpop.f32.mrb[101].mxu0  ;;  %5925 = vmatprep.subr.bf16.mxu1 %v6414_v19  ;;  %v295_v19 = vld [vmem:[#allocation2 + $0x7f0] sm:$0xff] }
 0x1e6   :  { %v5199_v57 = vadd.f32 %v5198_v29, %v5197_v9  ;;  %v5310_v36 = vpop.f32.mrb[101].mxu1  ;;  %v5200_v37 = vpop.f32.mrb[102].mxu0  ;;  %v943_v29 = vpack.c.bf16 %v319_v4, %v295_v19  ;;  %v392_v19 = vld [vmem:[#allocation2 + $0xaf8] sm:$0xff] }
 0x1e7   :  { %v5311_v41 = vadd.f32 %v5310_v36, %v5309_v24  ;;  %v5312_v46 = vpop.f32.mrb[102].mxu1  ;;  %v5201_v31 = vpop.f32.mrb[103].mxu0  ;;  %5814 = vmatpush3.bf16.msra.mxu0 %v6413_v33 }
 0x1e8   :  { %v3158_v51 = vadd.f32 %v5199_v57, %v6604_v54  ;;  %v5202_v52 = vadd.f32 %v5201_v31, %v5200_v37  ;;  %v5313_v38 = vpop.f32.mrb[103].mxu1  ;;  %5926 = vmatpush3.bf16.msra.mxu1 %v6415_v50  ;;  %6023 = vmatprep.subr.bf16.mxu0 %v6416_v23  ;;  %v366_v54 = vld [vmem:[#allocation2 + $0xa28] sm:$0xff]  ;;  %v941_v50 = vpack.c.bf16 %v317_v12, %v293_v61 }
 0x1e9   :  { %v5314_v5 = vadd.f32 %v5313_v38, %v5312_v46  ;;  %3760 = vmatmul.mubr.bf16.gmra.mrb[208].mxu0 %v917_v28  ;;  %6135 = vmatprep.subr.bf16.mxu1 %v6418_v30  ;;  %v966_v28 = vpack.c.bf16 %v366_v54, %v342_v49  ;;  %v968_v37 = vpack.c.bf16 %v368_v14, %v344_v13  ;;  %v414_v61 = vld [vmem:[#allocation2 + $0xba8] sm:$0xff] }
 0x1ea   :  { %v3161_v58 = vadd.f32 %v5202_v52, %v6606_v62  ;;  %3921 = vmatmul.mubr.bf16.gmra.mrb[208].mxu1 %v919_v40  ;;  %3767 = vmatprep.mubr.bf16.mxu0 %v942_v0  ;;  %v6688_v60 = vadd.f32 %v5311_v41, %v3158_v51  ;;  %v365_v51 = vld [vmem:[#allocation2 + $0xa20] sm:$0xff]  ;;  %v343_v52 = vld [vmem:[#allocation2 + $0x970] sm:$0xff] }
 0x1eb   :  { %3928 = vmatprep.mubr.bf16.mxu1 %v944_v48  ;;  %v341_v48 = vld [vmem:[#allocation2 + $0x960] sm:$0xff] }
 0x1ec   :  { %v5203_v11 = vpop.f32.mrb[104].mxu0  ;;  %v6690_v33 = vadd.f32 %v5314_v5, %v3161_v58  ;;  %v367_v5 = vld [vmem:[#allocation2 + $0xa30] sm:$0xff]  ;;  %v390_v58 = vld [vmem:[#allocation2 + $0xae8] sm:$0xff] }
 0x1ed   :  { %v5315_v9 = vpop.f32.mrb[104].mxu1  ;;  %v5204_v16 = vpop.f32.mrb[105].mxu0 }
 0x1ee   :  { %v5205_v62 = vadd.f32 %v5204_v16, %v5203_v11  ;;  %v5316_v23 = vpop.f32.mrb[105].mxu1  ;;  %v5206_v24 = vpop.f32.mrb[106].mxu0  ;;  %v965_v11 = vpack.c.bf16 %v365_v51, %v341_v48  ;;  %v990_v16 = vpack.c.bf16 %v414_v61, %v390_v58  ;;  %v462_v48 = vld [vmem:[#allocation2 + $0xd28] sm:$0xff] }
 0x1ef   :  { %v5317_v30 = vadd.f32 %v5316_v23, %v5315_v9  ;;  %v5318_v57 = vpop.f32.mrb[106].mxu1  ;;  %v5207_v36 = vpop.f32.mrb[107].mxu0  ;;  %v967_v9 = vpack.c.bf16 %v367_v5, %v343_v52  ;;  %v440_v52 = vld [vmem:[#allocation2 + $0xc78] sm:$0xff] }
 0x1f0   :  { %v3166_v40 = vadd.f32 %v5205_v62, %v6608_v27  ;;  %v5208_v0 = vadd.f32 %v5207_v36, %v5206_v24  ;;  %v5319_v41 = vpop.f32.mrb[107].mxu1  ;;  %v416_v27 = vld [vmem:[#allocation2 + $0xbb8] sm:$0xff] }
 0x1f1   :  { %v5320_v46 = vadd.f32 %v5319_v41, %v5318_v57  ;;  %3768 = vmatmul.mubr.bf16.gmra.mrb[212].mxu0 %v941_v50  ;;  %v992_v24 = vpack.c.bf16 %v416_v27, %v392_v19 }
 0x1f2   :  { %v3169_v31 = vadd.f32 %v5208_v0, %v6610_v35  ;;  %3929 = vmatmul.mubr.bf16.gmra.mrb[212].mxu1 %v943_v29  ;;  %3775 = vmatprep.mubr.bf16.mxu0 %v966_v28  ;;  %v6694_v38 = vadd.f32 %v5317_v30, %v3166_v40  ;;  %v413_v40 = vld [vmem:[#allocation2 + $0xba0] sm:$0xff]  ;;  %v391_v0 = vld [vmem:[#allocation2 + $0xaf0] sm:$0xff] }
 0x1f3   :  { %3936 = vmatprep.mubr.bf16.mxu1 %v968_v37  ;;  %v389_v37 = vld [vmem:[#allocation2 + $0xae0] sm:$0xff] }
 0x1f4   :  { %v5209_v12 = vpop.f32.mrb[108].mxu0  ;;  %v6696_v4 = vadd.f32 %v5320_v46, %v3169_v31  ;;  %v415_v46 = vld [vmem:[#allocation2 + $0xbb0] sm:$0xff]  ;;  %v438_v31 = vld [vmem:[#allocation2 + $0xc68] sm:$0xff] }
 0x1f5   :  { %v5321_v49 = vpop.f32.mrb[108].mxu1  ;;  %v5210_v54 = vpop.f32.mrb[109].mxu0 }
 0x1f6   :  { %v5211_v35 = vadd.f32 %v5210_v54, %v5209_v12  ;;  %v5322_v13 = vpop.f32.mrb[109].mxu1  ;;  %v5212_v14 = vpop.f32.mrb[110].mxu0  ;;  %v989_v12 = vpack.c.bf16 %v413_v40, %v389_v37  ;;  %v1014_v54 = vpack.c.bf16 %v462_v48, %v438_v31  ;;  %v510_v37 = vld [vmem:[#allocation2 + $0xea8] sm:$0xff] }
 0x1f7   :  { %v5323_v50 = vadd.f32 %v5322_v13, %v5321_v49  ;;  %v5324_v62 = vpop.f32.mrb[110].mxu1  ;;  %v5213_v23 = vpop.f32.mrb[111].mxu0  ;;  %v991_v49 = vpack.c.bf16 %v415_v46, %v391_v0  ;;  %v488_v0 = vld [vmem:[#allocation2 + $0xdf8] sm:$0xff] }
 0x1f8   :  { %v3174_v29 = vadd.f32 %v5211_v35, %v6612_v2  ;;  %v5214_v28 = vadd.f32 %v5213_v23, %v5212_v14  ;;  %v5325_v30 = vpop.f32.mrb[111].mxu1  ;;  %v464_v2 = vld [vmem:[#allocation2 + $0xd38] sm:$0xff] }
 0x1f9   :  { %v5326_v57 = vadd.f32 %v5325_v30, %v5324_v62  ;;  %3776 = vmatmul.mubr.bf16.gmra.mrb[216].mxu0 %v965_v11  ;;  %v1016_v14 = vpack.c.bf16 %v464_v2, %v440_v52 }
 0x1fa   :  { %v3177_v36 = vadd.f32 %v5214_v28, %v6614_v8  ;;  %3937 = vmatmul.mubr.bf16.gmra.mrb[216].mxu1 %v967_v9  ;;  %3783 = vmatprep.mubr.bf16.mxu0 %v990_v16  ;;  %v6700_v41 = vadd.f32 %v5323_v50, %v3174_v29  ;;  %v461_v29 = vld [vmem:[#allocation2 + $0xd20] sm:$0xff]  ;;  %v439_v28 = vld [vmem:[#allocation2 + $0xc70] sm:$0xff] }
 0x1fb   :  { %3944 = vmatprep.mubr.bf16.mxu1 %v992_v24  ;;  %v437_v24 = vld [vmem:[#allocation2 + $0xc60] sm:$0xff] }
 0x1fc   :  { %v5215_v51 = vpop.f32.mrb[112].mxu0  ;;  %v6702_v5 = vadd.f32 %v5326_v57, %v3177_v36  ;;  %v463_v57 = vld [vmem:[#allocation2 + $0xd30] sm:$0xff]  ;;  %v486_v36 = vld [vmem:[#allocation2 + $0xde8] sm:$0xff] }
 0x1fd   :  { %v5327_v58 = vpop.f32.mrb[112].mxu1  ;;  %v5216_v61 = vpop.f32.mrb[113].mxu0 }
 0x1fe   :  { %v5217_v8 = vadd.f32 %v5216_v61, %v5215_v51  ;;  %v5328_v19 = vpop.f32.mrb[113].mxu1  ;;  %v5218_v27 = vpop.f32.mrb[114].mxu0  ;;  %v1013_v51 = vpack.c.bf16 %v461_v29, %v437_v24  ;;  %v1038_v61 = vpack.c.bf16 %v510_v37, %v486_v36  ;;  %v558_v24 = vld [vmem:[#allocation2 + $0x1028] sm:$0xff] }
 0x1ff   :  { %v5329_v11 = vadd.f32 %v5328_v19, %v5327_v58  ;;  %v5330_v35 = vpop.f32.mrb[114].mxu1  ;;  %v5219_v13 = vpop.f32.mrb[115].mxu0  ;;  %v1015_v58 = vpack.c.bf16 %v463_v57, %v439_v28  ;;  %v536_v28 = vld [vmem:[#allocation2 + $0xf78] sm:$0xff] }
 0x200   :  { %v3182_v9 = vadd.f32 %v5217_v8, %v6616_v42  ;;  %v5220_v16 = vadd.f32 %v5219_v13, %v5218_v27  ;;  %v5331_v50 = vpop.f32.mrb[115].mxu1  ;;  %v512_v42 = vld [vmem:[#allocation2 + $0xeb8] sm:$0xff] }
 0x201   :  { %v5332_v62 = vadd.f32 %v5331_v50, %v5330_v35  ;;  %3784 = vmatmul.mubr.bf16.gmra.mrb[220].mxu0 %v989_v12  ;;  %v1040_v27 = vpack.c.bf16 %v512_v42, %v488_v0 }
 0x202   :  { %v3185_v23 = vadd.f32 %v5220_v16, %v6618_v47  ;;  %3945 = vmatmul.mubr.bf16.gmra.mrb[220].mxu1 %v991_v49  ;;  %3791 = vmatprep.mubr.bf16.mxu0 %v1014_v54  ;;  %v6706_v30 = vadd.f32 %v5329_v11, %v3182_v9  ;;  %v509_v9 = vld [vmem:[#allocation2 + $0xea0] sm:$0xff]  ;;  %v487_v16 = vld [vmem:[#allocation2 + $0xdf0] sm:$0xff] }
 0x203   :  { %3952 = vmatprep.mubr.bf16.mxu1 %v1016_v14  ;;  %v485_v14 = vld [vmem:[#allocation2 + $0xde0] sm:$0xff] }
 0x204   :  { %v5221_v40 = vpop.f32.mrb[116].mxu0  ;;  %v6708_v46 = vadd.f32 %v5332_v62, %v3185_v23  ;;  %v511_v62 = vld [vmem:[#allocation2 + $0xeb0] sm:$0xff]  ;;  %v534_v23 = vld [vmem:[#allocation2 + $0xf68] sm:$0xff] }
 0x205   :  { %v5333_v31 = vpop.f32.mrb[116].mxu1  ;;  %v5222_v48 = vpop.f32.mrb[117].mxu0 }
 0x206   :  { %v5223_v47 = vadd.f32 %v5222_v48, %v5221_v40  ;;  %v5334_v52 = vpop.f32.mrb[117].mxu1  ;;  %v5224_v2 = vpop.f32.mrb[118].mxu0  ;;  %v1037_v40 = vpack.c.bf16 %v509_v9, %v485_v14  ;;  %v1062_v48 = vpack.c.bf16 %v558_v24, %v534_v23  ;;  %v606_v14 = vld [vmem:[#allocation2 + $0x11a8] sm:$0xff] }
 0x207   :  { %v5335_v12 = vadd.f32 %v5334_v52, %v5333_v31  ;;  %v5336_v8 = vpop.f32.mrb[118].mxu1  ;;  %v5225_v19 = vpop.f32.mrb[119].mxu0  ;;  %v1039_v31 = vpack.c.bf16 %v511_v62, %v487_v16  ;;  %v584_v16 = vld [vmem:[#allocation2 + $0x10f8] sm:$0xff] }
 0x208   :  { %v3190_v49 = vadd.f32 %v5223_v47, %v6620_v18  ;;  %v5226_v54 = vadd.f32 %v5225_v19, %v5224_v2  ;;  %v5337_v11 = vpop.f32.mrb[119].mxu1  ;;  %v560_v18 = vld [vmem:[#allocation2 + $0x1038] sm:$0xff] }
 0x209   :  { %v5338_v35 = vadd.f32 %v5337_v11, %v5336_v8  ;;  %3792 = vmatmul.mubr.bf16.gmra.mrb[224].mxu0 %v1013_v51  ;;  %v1064_v2 = vpack.c.bf16 %v560_v18, %v536_v28 }
 0x20a   :  { %v3193_v13 = vadd.f32 %v5226_v54, %v6622_v26  ;;  %3953 = vmatmul.mubr.bf16.gmra.mrb[224].mxu1 %v1015_v58  ;;  %3799 = vmatprep.mubr.bf16.mxu0 %v1038_v61  ;;  %v6712_v50 = vadd.f32 %v5335_v12, %v3190_v49  ;;  %v557_v49 = vld [vmem:[#allocation2 + $0x1020] sm:$0xff]  ;;  %v535_v54 = vld [vmem:[#allocation2 + $0xf70] sm:$0xff] }
 0x20b   :  { %3960 = vmatprep.mubr.bf16.mxu1 %v1040_v27  ;;  %v533_v27 = vld [vmem:[#allocation2 + $0xf60] sm:$0xff] }
 0x20c   :  { %v5227_v29 = vpop.f32.mrb[120].mxu0  ;;  %v6714_v57 = vadd.f32 %v5338_v35, %v3193_v13  ;;  %v559_v35 = vld [vmem:[#allocation2 + $0x1030] sm:$0xff]  ;;  %v582_v13 = vld [vmem:[#allocation2 + $0x10e8] sm:$0xff] }
 0x20d   :  { %v5339_v36 = vpop.f32.mrb[120].mxu1  ;;  %v5228_v37 = vpop.f32.mrb[121].mxu0 }
 0x20e   :  { %v5229_v26 = vadd.f32 %v5228_v37, %v5227_v29  ;;  %v5340_v0 = vpop.f32.mrb[121].mxu1  ;;  %v5230_v42 = vpop.f32.mrb[122].mxu0  ;;  %v1061_v29 = vpack.c.bf16 %v557_v49, %v533_v27  ;;  %v1086_v37 = vpack.c.bf16 %v606_v14, %v582_v13  ;;  %v654_v27 = vld [vmem:[#allocation2 + $0x1328] sm:$0xff] }
 0x20f   :  { %v5341_v51 = vadd.f32 %v5340_v0, %v5339_v36  ;;  %v5342_v47 = vpop.f32.mrb[122].mxu1  ;;  %v5231_v52 = vpop.f32.mrb[123].mxu0  ;;  %v1063_v36 = vpack.c.bf16 %v559_v35, %v535_v54  ;;  %v632_v54 = vld [vmem:[#allocation2 + $0x1278] sm:$0xff] }
 0x210   :  { %v3198_v58 = vadd.f32 %v5229_v26, %v6624_v63  ;;  %v5232_v61 = vadd.f32 %v5231_v52, %v5230_v42  ;;  %v5343_v12 = vpop.f32.mrb[123].mxu1  ;;  %v608_v63 = vld [vmem:[#allocation2 + $0x11b8] sm:$0xff] }
 0x211   :  { %v5344_v8 = vadd.f32 %v5343_v12, %v5342_v47  ;;  %3800 = vmatmul.mubr.bf16.gmra.mrb[228].mxu0 %v1037_v40  ;;  %v1088_v42 = vpack.c.bf16 %v608_v63, %v584_v16 }
 0x212   :  { %v3201_v19 = vadd.f32 %v5232_v61, %v6626_v7  ;;  %3961 = vmatmul.mubr.bf16.gmra.mrb[228].mxu1 %v1039_v31  ;;  %3807 = vmatprep.mubr.bf16.mxu0 %v1062_v48  ;;  %v6718_v11 = vadd.f32 %v5341_v51, %v3198_v58  ;;  %v605_v58 = vld [vmem:[#allocation2 + $0x11a0] sm:$0xff]  ;;  %v583_v61 = vld [vmem:[#allocation2 + $0x10f0] sm:$0xff] }
 0x213   :  { %3968 = vmatprep.mubr.bf16.mxu1 %v1064_v2  ;;  %v581_v2 = vld [vmem:[#allocation2 + $0x10e0] sm:$0xff] }
 0x214   :  { %v5233_v9 = vpop.f32.mrb[124].mxu0  ;;  %v6720_v62 = vadd.f32 %v5344_v8, %v3201_v19  ;;  %v607_v8 = vld [vmem:[#allocation2 + $0x11b0] sm:$0xff]  ;;  %v630_v19 = vld [vmem:[#allocation2 + $0x1268] sm:$0xff] }
 0x215   :  { %v5345_v23 = vpop.f32.mrb[124].mxu1  ;;  %v5234_v24 = vpop.f32.mrb[125].mxu0 }
 0x216   :  { %v5235_v7 = vadd.f32 %v5234_v24, %v5233_v9  ;;  %v5346_v28 = vpop.f32.mrb[125].mxu1  ;;  %v5236_v18 = vpop.f32.mrb[126].mxu0  ;;  %v1085_v9 = vpack.c.bf16 %v605_v58, %v581_v2  ;;  %v1110_v24 = vpack.c.bf16 %v654_v27, %v630_v19  ;;  %v702_v2 = vld [vmem:[#allocation2 + $0x14a8] sm:$0xff] }
 0x217   :  { %v5347_v40 = vadd.f32 %v5346_v28, %v5345_v23  ;;  %v5348_v26 = vpop.f32.mrb[126].mxu1  ;;  %v5237_v0 = vpop.f32.mrb[127].mxu0  ;;  %v1087_v23 = vpack.c.bf16 %v607_v8, %v583_v61  ;;  %v680_v61 = vld [vmem:[#allocation2 + $0x13f8] sm:$0xff] }
 0x218   :  { %v3206_v31 = vadd.f32 %v5235_v7, %v6628_v45  ;;  %v5238_v48 = vadd.f32 %v5237_v0, %v5236_v18  ;;  %v5349_v51 = vpop.f32.mrb[127].mxu1  ;;  %v656_v45 = vld [vmem:[#allocation2 + $0x1338] sm:$0xff] }
 0x219   :  { %v5350_v47 = vadd.f32 %v5349_v51, %v5348_v26  ;;  %3808 = vmatmul.mubr.bf16.gmra.mrb[232].mxu0 %v1061_v29  ;;  %v1112_v18 = vpack.c.bf16 %v656_v45, %v632_v54  ;;  %v631_v51 = vld [vmem:[#allocation2 + $0x1270] sm:$0xff]  ;;  %v704_v8 = vld [vmem:[#allocation2 + $0x14b8] sm:$0xff] }
 0x21a   :  { %v3209_v52 = vadd.f32 %v5238_v48, %v6630_v53  ;;  %3969 = vmatmul.mubr.bf16.gmra.mrb[232].mxu1 %v1063_v36  ;;  %3815 = vmatprep.mubr.bf16.mxu0 %v1086_v37  ;;  %v6724_v12 = vadd.f32 %v5347_v40, %v3206_v31  ;;  %v629_v31 = vld [vmem:[#allocation2 + $0x1260] sm:$0xff] }
 0x21b   :  { %3976 = vmatprep.mubr.bf16.mxu1 %v1088_v42  ;;  %v653_v48 = vld [vmem:[#allocation2 + $0x1320] sm:$0xff] }
 0x21c   :  { %v5367_v49 = vpop.f32.mrb[128].mxu0  ;;  %v6726_v35 = vadd.f32 %v5350_v47, %v3209_v52  ;;  %v655_v47 = vld [vmem:[#allocation2 + $0x1330] sm:$0xff]  ;;  %v678_v52 = vld [vmem:[#allocation2 + $0x13e8] sm:$0xff] }
 0x21d   :  { %v5479_v13 = vpop.f32.mrb[128].mxu1  ;;  %v5368_v14 = vpop.f32.mrb[129].mxu0 }
 0x21e   :  { %v5369_v53 = vadd.f32 %v5368_v14, %v5367_v49  ;;  %v5480_v16 = vpop.f32.mrb[129].mxu1  ;;  %v5370_v63 = vpop.f32.mrb[130].mxu0  ;;  %v1109_v49 = vpack.c.bf16 %v653_v48, %v629_v31  ;;  %v1134_v14 = vpack.c.bf16 %v702_v2, %v678_v52  ;;  %v750_v31 = vld [vmem:[#allocation2 + $0x1628] sm:$0xff] }
 0x21f   :  { %v5481_v29 = vadd.f32 %v5480_v16, %v5479_v13  ;;  %v5482_v7 = vpop.f32.mrb[130].mxu1  ;;  %v5371_v28 = vpop.f32.mrb[131].mxu0  ;;  %v1111_v13 = vpack.c.bf16 %v655_v47, %v631_v51  ;;  %v728_v51 = vld [vmem:[#allocation2 + $0x1578] sm:$0xff] }
 0x220   :  { %v3408_v36 = vadd.f32 %v5369_v53, %v6634_v43  ;;  %v5372_v37 = vadd.f32 %v5371_v28, %v5370_v63  ;;  %v5483_v40 = vpop.f32.mrb[131].mxu1  ;;  %v1136_v63 = vpack.c.bf16 %v704_v8, %v680_v61  ;;  %v752_v47 = vld [vmem:[#allocation2 + $0x1638] sm:$0xff] }
 0x221   :  { %v5484_v26 = vadd.f32 %v5483_v40, %v5482_v7  ;;  %3816 = vmatmul.mubr.bf16.gmra.mrb[236].mxu0 %v1085_v9  ;;  %v679_v40 = vld [vmem:[#allocation2 + $0x13f0] sm:$0xff] }
 0x222   :  { %v6729_v0 = vadd.f32 %v5481_v29, %v3408_v36  ;;  %v3411_v42 = vadd.f32 %v5372_v37, %v6636_v56  ;;  %3977 = vmatmul.mubr.bf16.gmra.mrb[236].mxu1 %v1087_v23  ;;  %3823 = vmatprep.mubr.bf16.mxu0 %v1110_v24  ;;  %v677_v36 = vld [vmem:[#allocation2 + $0x13e0] sm:$0xff] }
 0x223   :  { %3984 = vmatprep.mubr.bf16.mxu1 %v1112_v18  ;;  %v701_v37 = vld [vmem:[#allocation2 + $0x14a0] sm:$0xff] }
 0x224   :  { %v6732_v58 = vadd.f32 %v5484_v26, %v3411_v42  ;;  %v5373_v43 = vpop.f32.mrb[132].mxu0  ;;  %v703_v26 = vld [vmem:[#allocation2 + $0x14b0] sm:$0xff]  ;;  %v726_v42 = vld [vmem:[#allocation2 + $0x1568] sm:$0xff] }
 0x225   :  { %v5485_v19 = vpop.f32.mrb[132].mxu1  ;;  %v5374_v27 = vpop.f32.mrb[133].mxu0 }
 0x226   :  { %v5375_v54 = vadd.f32 %v5374_v27, %v5373_v43  ;;  %v5486_v45 = vpop.f32.mrb[133].mxu1  ;;  %v5376_v56 = vpop.f32.mrb[134].mxu0  ;;  %v1133_v43 = vpack.c.bf16 %v701_v37, %v677_v36  ;;  %v1158_v27 = vpack.c.bf16 %v750_v31, %v726_v42  ;;  %v798_v36 = vld [vmem:[#allocation2 + $0x17a8] sm:$0xff] }
 0x227   :  { %v5487_v9 = vadd.f32 %v5486_v45, %v5485_v19  ;;  %v5488_v53 = vpop.f32.mrb[134].mxu1  ;;  %v5377_v16 = vpop.f32.mrb[135].mxu0  ;;  %v1135_v19 = vpack.c.bf16 %v703_v26, %v679_v40  ;;  %v776_v40 = vld [vmem:[#allocation2 + $0x16f8] sm:$0xff] }
 0x228   :  { %v3416_v23 = vadd.f32 %v5375_v54, %v6640_v32  ;;  %v5378_v24 = vadd.f32 %v5377_v16, %v5376_v56  ;;  %v5489_v29 = vpop.f32.mrb[135].mxu1  ;;  %v1160_v56 = vpack.c.bf16 %v752_v47, %v728_v51  ;;  %v800_v26 = vld [vmem:[#allocation2 + $0x17b8] sm:$0xff] }
 0x229   :  { %v5490_v7 = vadd.f32 %v5489_v29, %v5488_v53  ;;  %3824 = vmatmul.mubr.bf16.gmra.mrb[240].mxu0 %v1109_v49  ;;  %v727_v29 = vld [vmem:[#allocation2 + $0x1570] sm:$0xff] }
 0x22a   :  { %v6735_v28 = vadd.f32 %v5487_v9, %v3416_v23  ;;  %v3419_v18 = vadd.f32 %v5378_v24, %v6642_v44  ;;  %3985 = vmatmul.mubr.bf16.gmra.mrb[240].mxu1 %v1111_v13  ;;  %3831 = vmatprep.mubr.bf16.mxu0 %v1134_v14  ;;  %v725_v23 = vld [vmem:[#allocation2 + $0x1560] sm:$0xff] }
 0x22b   :  { %3992 = vmatprep.mubr.bf16.mxu1 %v1136_v63  ;;  %v749_v24 = vld [vmem:[#allocation2 + $0x1620] sm:$0xff] }
 0x22c   :  { %v6738_v48 = vadd.f32 %v5490_v7, %v3419_v18  ;;  %v5379_v32 = vpop.f32.mrb[136].mxu0  ;;  %v751_v7 = vld [vmem:[#allocation2 + $0x1630] sm:$0xff]  ;;  %v774_v18 = vld [vmem:[#allocation2 + $0x16e8] sm:$0xff] }
 0x22d   :  { %v5491_v52 = vpop.f32.mrb[136].mxu1  ;;  %v5380_v2 = vpop.f32.mrb[137].mxu0 }
 0x22e   :  { %v5381_v61 = vadd.f32 %v5380_v2, %v5379_v32  ;;  %v5492_v8 = vpop.f32.mrb[137].mxu1  ;;  %v5382_v44 = vpop.f32.mrb[138].mxu0  ;;  %v1157_v32 = vpack.c.bf16 %v749_v24, %v725_v23  ;;  %v1182_v2 = vpack.c.bf16 %v798_v36, %v774_v18  ;;  %v82_v23 = vld [vmem:[#allocation2 + $0x148] sm:$0xff] }
 0x22f   :  { %v5493_v49 = vadd.f32 %v5492_v8, %v5491_v52  ;;  %v5494_v54 = vpop.f32.mrb[138].mxu1  ;;  %v5383_v45 = vpop.f32.mrb[139].mxu0  ;;  %v1159_v52 = vpack.c.bf16 %v751_v7, %v727_v29  ;;  %v60_v29 = vld [vmem:[#allocation2 + $0x98] sm:$0xff] }
 0x230   :  { %v3424_v13 = vadd.f32 %v5381_v61, %v6646_v20  ;;  %v5384_v14 = vadd.f32 %v5383_v45, %v5382_v44  ;;  %v5495_v9 = vpop.f32.mrb[139].mxu1  ;;  %v1184_v44 = vpack.c.bf16 %v800_v26, %v776_v40  ;;  %v84_v7 = vld [vmem:[#allocation2 + $0x158] sm:$0xff] }
 0x231   :  { %v5496_v53 = vadd.f32 %v5495_v9, %v5494_v54  ;;  %3832 = vmatmul.mubr.bf16.gmra.mrb[244].mxu0 %v1133_v43  ;;  %v775_v9 = vld [vmem:[#allocation2 + $0x16f0] sm:$0xff] }
 0x232   :  { %v6741_v16 = vadd.f32 %v5493_v49, %v3424_v13  ;;  %v3427_v63 = vadd.f32 %v5384_v14, %v6648_v34  ;;  %3993 = vmatmul.mubr.bf16.gmra.mrb[244].mxu1 %v1135_v19  ;;  %3839 = vmatprep.mubr.bf16.mxu0 %v1158_v27  ;;  %v773_v13 = vld [vmem:[#allocation2 + $0x16e0] sm:$0xff] }
 0x233   :  { %4000 = vmatprep.mubr.bf16.mxu1 %v1160_v56  ;;  %v797_v14 = vld [vmem:[#allocation2 + $0x17a0] sm:$0xff] }
 0x234   :  { %v6744_v37 = vadd.f32 %v5496_v53, %v3427_v63  ;;  %v5385_v20 = vpop.f32.mrb[140].mxu0  ;;  %v799_v53 = vld [vmem:[#allocation2 + $0x17b0] sm:$0xff]  ;;  %v58_v63 = vld [vmem:[#allocation2 + $0x88] sm:$0xff] }
 0x235   :  { %v5497_v42 = vpop.f32.mrb[140].mxu1  ;;  %v5386_v31 = vpop.f32.mrb[141].mxu0 }
 0x236   :  { %v5387_v51 = vadd.f32 %v5386_v31, %v5385_v20  ;;  %v5498_v47 = vpop.f32.mrb[141].mxu1  ;;  %v5388_v34 = vpop.f32.mrb[142].mxu0  ;;  %v1181_v20 = vpack.c.bf16 %v797_v14, %v773_v13  ;;  %v826_v31 = vpack.c.bf16 %v82_v23, %v58_v63  ;;  %v106_v14 = vld [vmem:[#allocation2 + $0x208] sm:$0xff]  ;;  %v108_v23 = vld [vmem:[#allocation2 + $0x218] sm:$0xff] }
 0x237   :  { %v5499_v43 = vadd.f32 %v5498_v47, %v5497_v42  ;;  %v5500_v61 = vpop.f32.mrb[142].mxu1  ;;  %v5389_v8 = vpop.f32.mrb[143].mxu0  ;;  %v1183_v42 = vpack.c.bf16 %v799_v53, %v775_v9 }
 0x238   :  { %v3432_v19 = vadd.f32 %v5387_v51, %v6652_v10  ;;  %v5390_v27 = vadd.f32 %v5389_v8, %v5388_v34  ;;  %v5501_v49 = vpop.f32.mrb[143].mxu1  ;;  %v828_v34 = vpack.c.bf16 %v84_v7, %v60_v29 }
 0x239   :  { %v5502_v54 = vadd.f32 %v5501_v49, %v5500_v61  ;;  %3840 = vmatmul.mubr.bf16.gmra.mrb[248].mxu0 %v1157_v32  ;;  %v59_v49 = vld [vmem:[#allocation2 + $0x90] sm:$0xff] }
 0x23a   :  { %v6747_v45 = vadd.f32 %v5499_v43, %v3432_v19  ;;  %v3435_v56 = vadd.f32 %v5390_v27, %v6654_v22  ;;  %4001 = vmatmul.mubr.bf16.gmra.mrb[248].mxu1 %v1159_v52  ;;  %3847 = vmatprep.mubr.bf16.mxu0 %v1182_v2  ;;  %v57_v19 = vld [vmem:[#allocation2 + $0x80] sm:$0xff] }
 0x23b   :  { %4008 = vmatprep.mubr.bf16.mxu1 %v1184_v44  ;;  %v81_v27 = vld [vmem:[#allocation2 + $0x140] sm:$0xff] }
 0x23c   :  { %v6750_v24 = vadd.f32 %v5502_v54, %v3435_v56  ;;  %v5391_v10 = vpop.f32.mrb[144].mxu0  ;;  %v83_v54 = vld [vmem:[#allocation2 + $0x150] sm:$0xff]  ;;  %v825_v63 = vpack.c.bf16 %v81_v27, %v57_v19 }
 0x23d   :  { %v5503_v18 = vpop.f32.mrb[144].mxu1  ;;  %v5392_v36 = vpop.f32.mrb[145].mxu0 }
 0x23e   :  { %v5393_v40 = vadd.f32 %v5392_v36, %v5391_v10  ;;  %v5504_v26 = vpop.f32.mrb[145].mxu1  ;;  %v5394_v22 = vpop.f32.mrb[146].mxu0  ;;  %v132_v10 = vld [vmem:[#allocation2 + $0x2d8] sm:$0xff]  ;;  %v6417_v36 = vld [vmem:[#allocation5 + $0x500] sm:$0xff]  }
 0x23f   :  { %v5505_v32 = vadd.f32 %v5504_v26, %v5503_v18  ;;  %v5506_v51 = vpop.f32.mrb[146].mxu1  ;;  %v5395_v47 = vpop.f32.mrb[147].mxu0  ;;  %v827_v18 = vpack.c.bf16 %v83_v54, %v59_v49  ;;  %v131_v49 = vld [vmem:[#allocation2 + $0x2d0] sm:$0xff]  ;;  %v154_v54 = vld [vmem:[#allocation2 + $0x388] sm:$0xff] }
 0x240   :  { %v3440_v52 = vadd.f32 %v5393_v40, %v6658_v59  ;;  %v5396_v2 = vadd.f32 %v5395_v47, %v5394_v22  ;;  %v5507_v43 = vpop.f32.mrb[147].mxu1  ;;  %v130_v59 = vld [vmem:[#allocation2 + $0x2c8] sm:$0xff]  ;;  %v6419_v22 = vld [vmem:[#allocation5 + $0x580] sm:$0xff]   ;;  %v852_v47 = vpack.c.bf16 %v132_v10, %v108_v23  ;;  %v180_v23 = vld [vmem:[#allocation2 + $0x458] sm:$0xff] }
 0x241   :  { %v5508_v61 = vadd.f32 %v5507_v43, %v5506_v51  ;;  %3848 = vmatmul.mubr.bf16.gmra.mrb[252].mxu0 %v1181_v20  ;;  %v129_v43 = vld [vmem:[#allocation2 + $0x2c0] sm:$0xff]  ;;  %v6426_v10 = vld [vmem:[#allocation5 + $0x5d0] sm:$0xff]  }
 0x242   :  { %v6753_v8 = vadd.f32 %v5505_v32, %v3440_v52  ;;  %v3443_v44 = vadd.f32 %v5396_v2, %v6660_v6  ;;  %4009 = vmatmul.mubr.bf16.gmra.mrb[252].mxu1 %v1183_v42  ;;  %4049 = vmatprep.mubr.bf16.mxu0 %v826_v31  ;;  %v850_v42 = vpack.c.bf16 %v130_v59, %v106_v14  ;;  %v6420_v52 = vld [vmem:[#allocation5 + $0x548] sm:$0xff]   ;;  %v6424_v59 = vld [vmem:[#allocation5 + $0x550] sm:$0xff]  }
 0x243   :  { %4210 = vmatprep.mubr.bf16.mxu1 %v828_v34  ;;  %v105_v34 = vld [vmem:[#allocation2 + $0x200] sm:$0xff]  ;;  %v6423_v14 = vld [vmem:[#allocation5 + $0x588] sm:$0xff]  }
 0x244   :  { %v6756_v56 = vadd.f32 %v5508_v61, %v3443_v44  ;;  %v5397_v13 = vpop.f32.mrb[148].mxu0  ;;  %v107_v61 = vld [vmem:[#allocation2 + $0x210] sm:$0xff]  ;;  %v6422_v44 = vld [vmem:[#allocation5 + $0x5c8] sm:$0xff]  }
 0x245   :  { %v5509_v9 = vpop.f32.mrb[148].mxu1  ;;  %v5398_v53 = vpop.f32.mrb[149].mxu0 }
 0x246   :  { %v5399_v29 = vadd.f32 %v5398_v53, %v5397_v13  ;;  %v5510_v7 = vpop.f32.mrb[149].mxu1  ;;  %v5400_v6 = vpop.f32.mrb[150].mxu0  ;;  %v6421_v13 = vld [vmem:[#allocation5 + $0x508] sm:$0xff]  }
 0x247   :  { %v5511_v20 = vadd.f32 %v5510_v7, %v5509_v9  ;;  %v5512_v40 = vpop.f32.mrb[150].mxu1  ;;  %v5401_v26 = vpop.f32.mrb[151].mxu0  ;;  %v849_v7 = vpack.c.bf16 %v129_v43, %v105_v34  ;;  %v6427_v34 = vld [vmem:[#allocation5 + $0x590] sm:$0xff]  }
 0x248   :  { %v3448_v31 = vadd.f32 %v5399_v29, %v6664_v1  ;;  %v5402_v32 = vadd.f32 %v5401_v26, %v5400_v6  ;;  %v5513_v51 = vpop.f32.mrb[151].mxu1  ;;  %v178_v1 = vld [vmem:[#allocation2 + $0x448] sm:$0xff] }
 0x249   :  { %v5514_v2 = vadd.f32 %v5513_v51, %v5512_v40  ;;  %4050 = vmatmul.mubr.bf16.vlgmr.msra.gmra.mrb[0].mxu0 %v825_v63  ;;  %v156_v63 = vld [vmem:[#allocation2 + $0x398] sm:$0xff]  ;;  %v874_v40 = vpack.c.bf16 %v178_v1, %v154_v54  ;;  %v179_v1 = vld [vmem:[#allocation2 + $0x450] sm:$0xff] }
 0x24a   :  { %v6759_v19 = vadd.f32 %v5511_v20, %v3448_v31  ;;  %v3451_v27 = vadd.f32 %v5402_v32, %v6666_v15  ;;  %4211 = vmatmul.mubr.bf16.vlgmr.msra.gmra.mrb[0].mxu1 %v827_v18  ;;  %6024 = vmatpush3.bf16.msra.mxu0 %v6417_v36  ;;  %v851_v20 = vpack.c.bf16 %v131_v49, %v107_v61  ;;  %v6425_v32 = vld [vmem:[#allocation5 + $0x510] sm:$0xff]   ;;  %v177_v61 = vld [vmem:[#allocation2 + $0x440] sm:$0xff] }
 0x24b   :  { %6136 = vmatpush3.bf16.msra.mxu1 %v6419_v22  ;;  %4057 = vmatprep.mubr.bf16.mxu0 %v850_v42  ;;  %v876_v31 = vpack.c.bf16 %v180_v23, %v156_v63 }
 0x24c   :  { %v6762_v9 = vadd.f32 %v5514_v2, %v3451_v27  ;;  %v5403_v53 = vpop.f32.mrb[152].mxu0  ;;  %4218 = vmatprep.mubr.bf16.mxu1 %v852_v47  ;;  %6025 = vmatprep.subr.bf16.mxu0 %v6420_v52  ;;  %v6428_v2 = vld [vmem:[#allocation5 + $0x558] sm:$0xff]  }
 0x24d   :  { %v5515_v29 = vpop.f32.mrb[152].mxu1  ;;  %v5404_v15 = vpop.f32.mrb[153].mxu0  ;;  %6137 = vmatprep.subr.bf16.mxu1 %v6422_v44  ;;  %v153_v44 = vld [vmem:[#allocation2 + $0x380] sm:$0xff]  ;;  %v6430_v27 = vld [vmem:[#allocation5 + $0x5d8] sm:$0xff]  }
 0x24e   :  { %v5405_v6 = vadd.f32 %v5404_v15, %v5403_v53  ;;  %v5516_v18 = vpop.f32.mrb[153].mxu1  ;;  %v5406_v36 = vpop.f32.mrb[154].mxu0  ;;  %6026 = vmatpush3.bf16.msra.mxu0 %v6421_v13  ;;  %v155_v13 = vld [vmem:[#allocation2 + $0x390] sm:$0xff]  ;;  %v6429_v53 = vld [vmem:[#allocation5 + $0x518] sm:$0xff]   ;;  %v6432_v15 = vld [vmem:[#allocation5 + $0x560] sm:$0xff]  }
 0x24f   :  { %v5517_v26 = vadd.f32 %v5516_v18, %v5515_v29  ;;  %v5518_v22 = vpop.f32.mrb[154].mxu1  ;;  %v5407_v42 = vpop.f32.mrb[155].mxu0  ;;  %6138 = vmatpush3.bf16.msra.mxu1 %v6423_v14  ;;  %6027 = vmatprep.subr.bf16.mxu0 %v6424_v59  ;;  %v202_v14 = vld [vmem:[#allocation2 + $0x508] sm:$0xff]  ;;  %v204_v59 = vld [vmem:[#allocation2 + $0x518] sm:$0xff]  ;;  %v6434_v18 = vld [vmem:[#allocation5 + $0x5e0] sm:$0xff]  }
 0x250   :  { %v3456_v51 = vadd.f32 %v5405_v6, %v6670_v3  ;;  %v5408_v47 = vadd.f32 %v5407_v42, %v5406_v36  ;;  %v5519_v52 = vpop.f32.mrb[155].mxu1  ;;  %6139 = vmatprep.subr.bf16.mxu1 %v6426_v10  ;;  %v226_v3 = vld [vmem:[#allocation2 + $0x5c8] sm:$0xff]  ;;  %v228_v10 = vld [vmem:[#allocation2 + $0x5d8] sm:$0xff]  ;;  %v873_v6 = vpack.c.bf16 %v177_v61, %v153_v44 }
 0x251   :  { %v5520_v43 = vadd.f32 %v5519_v52, %v5518_v22  ;;  %4058 = vmatmul.mubr.bf16.gmra.mrb[4].mxu0 %v849_v7  ;;  %v6431_v29 = vld [vmem:[#allocation5 + $0x598] sm:$0xff]   ;;  %v898_v22 = vpack.c.bf16 %v226_v3, %v202_v14  ;;  %v6436_v44 = vld [vmem:[#allocation5 + $0x568] sm:$0xff]   ;;  %v203_v3 = vld [vmem:[#allocation2 + $0x510] sm:$0xff] }
 0x252   :  { %v6765_v49 = vadd.f32 %v5517_v26, %v3456_v51  ;;  %v3459_v54 = vadd.f32 %v5408_v47, %v6672_v55  ;;  %4219 = vmatmul.mubr.bf16.gmra.mrb[4].mxu1 %v851_v20  ;;  %4065 = vmatprep.mubr.bf16.mxu0 %v874_v40  ;;  %v875_v26 = vpack.c.bf16 %v179_v1, %v155_v13  ;;  %v6433_v47 = vld [vmem:[#allocation5 + $0x520] sm:$0xff]   ;;  %v6438_v13 = vld [vmem:[#allocation5 + $0x5e8] sm:$0xff]  }
 0x253   :  { %4226 = vmatprep.mubr.bf16.mxu1 %v876_v31  ;;  %6028 = vmatpush3.bf16.msra.mxu0 %v6425_v32  ;;  %v900_v51 = vpack.c.bf16 %v228_v10, %v204_v59  ;;  %v250_v59 = vld [vmem:[#allocation2 + $0x688] sm:$0xff] }
 0x254   :  { %v6768_v63 = vadd.f32 %v5520_v43, %v3459_v54  ;;  %v5409_v23 = vpop.f32.mrb[156].mxu0  ;;  %6140 = vmatpush3.bf16.msra.mxu1 %v6427_v34  ;;  %6029 = vmatprep.subr.bf16.mxu0 %v6428_v2  ;;  %v6435_v43 = vld [vmem:[#allocation5 + $0x5a0] sm:$0xff]   ;;  %v6437_v10 = vld [vmem:[#allocation5 + $0x528] sm:$0xff]  }
 0x255   :  { %v5521_v7 = vpop.f32.mrb[156].mxu1  ;;  %v5410_v55 = vpop.f32.mrb[157].mxu0  ;;  %6141 = vmatprep.subr.bf16.mxu1 %v6430_v27  ;;  %v201_v27 = vld [vmem:[#allocation2 + $0x500] sm:$0xff] }
 0x256   :  { %v5411_v36 = vadd.f32 %v5410_v55, %v5409_v23  ;;  %v5522_v20 = vpop.f32.mrb[157].mxu1  ;;  %v5412_v40 = vpop.f32.mrb[158].mxu0  ;;  %v225_v54 = vld [vmem:[#allocation2 + $0x5c0] sm:$0xff]  ;;  %v252_v23 = vld [vmem:[#allocation2 + $0x698] sm:$0xff]  ;;  %v6439_v55 = vld [vmem:[#allocation5 + $0x5a8] sm:$0xff]  }
 0x257   :  { %v5523_v42 = vadd.f32 %v5522_v20, %v5521_v7  ;;  %v5524_v31 = vpop.f32.mrb[158].mxu1  ;;  %v5413_v32 = vpop.f32.mrb[159].mxu0  ;;  %6030 = vmatpush3.bf16.msra.mxu0 %v6429_v53  ;;  %v274_v53 = vld [vmem:[#allocation2 + $0x748] sm:$0xff]  ;;  %v276_v7 = vld [vmem:[#allocation2 + $0x758] sm:$0xff]  ;;  %v6442_v20 = vld [vmem:[#allocation5 + $0x5f0] sm:$0xff]  }
 0x258   :  { %v3464_v52 = vadd.f32 %v5411_v36, %v6676_v39  ;;  %v5414_v34 = vadd.f32 %v5413_v32, %v5412_v40  ;;  %v5525_v2 = vpop.f32.mrb[159].mxu1  ;;  %6142 = vmatpush3.bf16.msra.mxu1 %v6431_v29  ;;  %6031 = vmatprep.subr.bf16.mxu0 %v6432_v15  ;;  %v227_v39 = vld [vmem:[#allocation2 + $0x5d0] sm:$0xff]  ;;  %v897_v36 = vpack.c.bf16 %v225_v54, %v201_v27  ;;  %v6444_v27 = vld [vmem:[#allocation5 + $0x578] sm:$0xff]  }
 0x259   :  { %v5526_v61 = vadd.f32 %v5525_v2, %v5524_v31  ;;  %4066 = vmatmul.mubr.bf16.gmra.mrb[8].mxu0 %v873_v6  ;;  %6143 = vmatprep.subr.bf16.mxu1 %v6434_v18  ;;  %v6440_v6 = vld [vmem:[#allocation5 + $0x570] sm:$0xff]   ;;  %v922_v31 = vpack.c.bf16 %v274_v53, %v250_v59  ;;  %v273_v59 = vld [vmem:[#allocation2 + $0x740] sm:$0xff] }
 0x25a   :  { %v6771_v1 = vadd.f32 %v5523_v42, %v3464_v52  ;;  %v3467_v14 = vadd.f32 %v5414_v34, %v6678_v21  ;;  %4227 = vmatmul.mubr.bf16.gmra.mrb[8].mxu1 %v875_v26  ;;  %4073 = vmatprep.mubr.bf16.mxu0 %v898_v22  ;;  %v899_v42 = vpack.c.bf16 %v227_v39, %v203_v3  ;;  %v6441_v34 = vld [vmem:[#allocation5 + $0x530] sm:$0xff]  }
 0x25b   :  { %4234 = vmatprep.mubr.bf16.mxu1 %v900_v51  ;;  %6032 = vmatpush3.bf16.msra.mxu0 %v6433_v47  ;;  %v924_v52 = vpack.c.bf16 %v276_v7, %v252_v23  ;;  %v251_v53 = vld [vmem:[#allocation2 + $0x690] sm:$0xff]  ;;  %v298_v23 = vld [vmem:[#allocation2 + $0x808] sm:$0xff] }
 0x25c   :  { %v6774_v29 = vadd.f32 %v5526_v61, %v3467_v14  ;;  %v5415_v15 = vpop.f32.mrb[160].mxu0  ;;  %6144 = vmatpush3.bf16.msra.mxu1 %v6435_v43  ;;  %6033 = vmatprep.subr.bf16.mxu0 %v6436_v44  ;;  %v6443_v61 = vld [vmem:[#allocation5 + $0x5b0] sm:$0xff]   ;;  %v6446_v14 = vld [vmem:[#allocation5 + $0x5f8] sm:$0xff]  }
 0x25d   :  { %v5527_v18 = vpop.f32.mrb[160].mxu1  ;;  %v5416_v21 = vpop.f32.mrb[161].mxu0  ;;  %6145 = vmatprep.subr.bf16.mxu1 %v6438_v13  ;;  %v249_v13 = vld [vmem:[#allocation2 + $0x680] sm:$0xff] }
 0x25e   :  { %v5417_v40 = vadd.f32 %v5416_v21, %v5415_v15  ;;  %v5528_v26 = vpop.f32.mrb[161].mxu1  ;;  %v5418_v22 = vpop.f32.mrb[162].mxu0  ;;  %v6445_v15 = vld [vmem:[#allocation5 + $0x538] sm:$0xff]  }
 0x25f   :  { %v5529_v32 = vadd.f32 %v5528_v26, %v5527_v18  ;;  %v5530_v51 = vpop.f32.mrb[162].mxu1  ;;  %v5419_v47 = vpop.f32.mrb[163].mxu0  ;;  %6034 = vmatpush3.bf16.msra.mxu0 %v6437_v10  ;;  %v322_v10 = vld [vmem:[#allocation2 + $0x8c8] sm:$0xff]  ;;  %v324_v18 = vld [vmem:[#allocation2 + $0x8d8] sm:$0xff] }
 0x260   :  { %v3472_v2 = vadd.f32 %v5417_v40, %v6682_v17  ;;  %v5420_v43 = vadd.f32 %v5419_v47, %v5418_v22  ;;  %v5531_v44 = vpop.f32.mrb[163].mxu1  ;;  %6146 = vmatpush3.bf16.msra.mxu1 %v6439_v55  ;;  %6035 = vmatprep.subr.bf16.mxu0 %v6440_v6  ;;  %v275_v17 = vld [vmem:[#allocation2 + $0x750] sm:$0xff]  ;;  %v300_v6 = vld [vmem:[#allocation2 + $0x818] sm:$0xff] }
 0x261   :  { %v5532_v54 = vadd.f32 %v5531_v44, %v5530_v51  ;;  %4074 = vmatmul.mubr.bf16.gmra.mrb[12].mxu0 %v897_v36  ;;  %6147 = vmatprep.subr.bf16.mxu1 %v6442_v20  ;;  %v6447_v21 = vld [vmem:[#allocation5 + $0x5b8] sm:$0xff]   ;;  %v921_v20 = vpack.c.bf16 %v273_v59, %v249_v13  ;;  %v321_v13 = vld [vmem:[#allocation2 + $0x8c0] sm:$0xff]  ;;  %v346_v59 = vld [vmem:[#allocation2 + $0x988] sm:$0xff] }
 0x262   :  { %v6777_v3 = vadd.f32 %v5529_v32, %v3472_v2  ;;  %v3475_v39 = vadd.f32 %v5420_v43, %v6684_v25  ;;  %4235 = vmatmul.mubr.bf16.gmra.mrb[12].mxu1 %v899_v42  ;;  %4081 = vmatprep.mubr.bf16.mxu0 %v922_v31  ;;  %v923_v42 = vpack.c.bf16 %v275_v17, %v251_v53  ;;  %v370_v53 = vld [vmem:[#allocation2 + $0xa48] sm:$0xff] }
 0x263   :  { %4242 = vmatprep.mubr.bf16.mxu1 %v924_v52  ;;  %6036 = vmatpush3.bf16.msra.mxu0 %v6441_v34  ;;  %v946_v31 = vpack.c.bf16 %v322_v10, %v298_v23  ;;  %v948_v52 = vpack.c.bf16 %v324_v18, %v300_v6  ;;  %v348_v23 = vld [vmem:[#allocation2 + $0x998] sm:$0xff] }
 0x264   :  { %v6780_v7 = vadd.f32 %v5532_v54, %v3475_v39  ;;  %v5421_v55 = vpop.f32.mrb[164].mxu0  ;;  %6148 = vmatpush3.bf16.msra.mxu1 %v6443_v61  ;;  %6037 = vmatprep.subr.bf16.mxu0 %v6444_v27  ;;  %v297_v54 = vld [vmem:[#allocation2 + $0x800] sm:$0xff]  ;;  %v323_v39 = vld [vmem:[#allocation2 + $0x8d0] sm:$0xff]  ;;  %v372_v10 = vld [vmem:[#allocation2 + $0xa58] sm:$0xff] }
 0x265   :  { %v5533_v36 = vpop.f32.mrb[164].mxu1  ;;  %v5422_v25 = vpop.f32.mrb[165].mxu0  ;;  %6149 = vmatprep.subr.bf16.mxu1 %v6446_v14  ;;  %v299_v14 = vld [vmem:[#allocation2 + $0x810] sm:$0xff]  ;;  %v945_v6 = vpack.c.bf16 %v321_v13, %v297_v54  ;;  %v418_v54 = vld [vmem:[#allocation2 + $0xbc8] sm:$0xff] }
 0x266   :  { %v5423_v40 = vadd.f32 %v5422_v25, %v5421_v55  ;;  %v5534_v26 = vpop.f32.mrb[165].mxu1  ;;  %v5424_v22 = vpop.f32.mrb[166].mxu0  ;;  %v970_v25 = vpack.c.bf16 %v370_v53, %v346_v59 }
 0x267   :  { %v5535_v32 = vadd.f32 %v5534_v26, %v5533_v36  ;;  %v5536_v51 = vpop.f32.mrb[166].mxu1  ;;  %v5425_v47 = vpop.f32.mrb[167].mxu0  ;;  %6038 = vmatpush3.bf16.msra.mxu0 %v6445_v15  ;;  %v947_v36 = vpack.c.bf16 %v323_v39, %v299_v14  ;;  %v396_v14 = vld [vmem:[#allocation2 + $0xb18] sm:$0xff] }
 0x268   :  { %v3480_v34 = vadd.f32 %v5423_v40, %v6688_v60  ;;  %v5426_v2 = vadd.f32 %v5425_v47, %v5424_v22  ;;  %v5537_v43 = vpop.f32.mrb[167].mxu1  ;;  %6150 = vmatpush3.bf16.msra.mxu1 %v6447_v21  ;;  %v972_v22 = vpack.c.bf16 %v372_v10, %v348_v23  ;;  %v420_v39 = vld [vmem:[#allocation2 + $0xbd8] sm:$0xff] }
 0x269   :  { %v5538_v44 = vadd.f32 %v5537_v43, %v5536_v51  ;;  %4082 = vmatmul.mubr.bf16.gmra.mrb[16].mxu0 %v921_v20  ;;  %v347_v43 = vld [vmem:[#allocation2 + $0x990] sm:$0xff] }
 0x26a   :  { %v6783_v61 = vadd.f32 %v5535_v32, %v3480_v34  ;;  %v3483_v27 = vadd.f32 %v5426_v2, %v6690_v33  ;;  %4243 = vmatmul.mubr.bf16.gmra.mrb[16].mxu1 %v923_v42  ;;  %4089 = vmatprep.mubr.bf16.mxu0 %v946_v31  ;;  %v345_v34 = vld [vmem:[#allocation2 + $0x980] sm:$0xff] }
 0x26b   :  { %4250 = vmatprep.mubr.bf16.mxu1 %v948_v52  ;;  %v369_v2 = vld [vmem:[#allocation2 + $0xa40] sm:$0xff] }
 0x26c   :  { %v6786_v17 = vadd.f32 %v5538_v44, %v3483_v27  ;;  %v5427_v60 = vpop.f32.mrb[168].mxu0  ;;  %v371_v44 = vld [vmem:[#allocation2 + $0xa50] sm:$0xff]  ;;  %v394_v27 = vld [vmem:[#allocation2 + $0xb08] sm:$0xff] }
 0x26d   :  { %v5539_v15 = vpop.f32.mrb[168].mxu1  ;;  %v5428_v55 = vpop.f32.mrb[169].mxu0 }
 0x26e   :  { %v5429_v18 = vadd.f32 %v5428_v55, %v5427_v60  ;;  %v5540_v21 = vpop.f32.mrb[169].mxu1  ;;  %v5430_v33 = vpop.f32.mrb[170].mxu0  ;;  %v969_v60 = vpack.c.bf16 %v369_v2, %v345_v34  ;;  %v994_v55 = vpack.c.bf16 %v418_v54, %v394_v27  ;;  %v466_v34 = vld [vmem:[#allocation2 + $0xd48] sm:$0xff] }
 0x26f   :  { %v5541_v20 = vadd.f32 %v5540_v21, %v5539_v15  ;;  %v5542_v40 = vpop.f32.mrb[170].mxu1  ;;  %v5431_v26 = vpop.f32.mrb[171].mxu0  ;;  %v971_v15 = vpack.c.bf16 %v371_v44, %v347_v43  ;;  %v444_v43 = vld [vmem:[#allocation2 + $0xc98] sm:$0xff] }
 0x270   :  { %v3488_v42 = vadd.f32 %v5429_v18, %v6694_v38  ;;  %v5432_v31 = vadd.f32 %v5431_v26, %v5430_v33  ;;  %v5543_v32 = vpop.f32.mrb[171].mxu1  ;;  %v996_v33 = vpack.c.bf16 %v420_v39, %v396_v14  ;;  %v468_v44 = vld [vmem:[#allocation2 + $0xd58] sm:$0xff] }
 0x271   :  { %v5544_v51 = vadd.f32 %v5543_v32, %v5542_v40  ;;  %4090 = vmatmul.mubr.bf16.gmra.mrb[20].mxu0 %v945_v6  ;;  %v395_v32 = vld [vmem:[#allocation2 + $0xb10] sm:$0xff] }
 0x272   :  { %v6789_v47 = vadd.f32 %v5541_v20, %v3488_v42  ;;  %v3491_v52 = vadd.f32 %v5432_v31, %v6696_v4  ;;  %4251 = vmatmul.mubr.bf16.gmra.mrb[20].mxu1 %v947_v36  ;;  %4097 = vmatprep.mubr.bf16.mxu0 %v970_v25  ;;  %v393_v42 = vld [vmem:[#allocation2 + $0xb00] sm:$0xff] }
 0x273   :  { %4258 = vmatprep.mubr.bf16.mxu1 %v972_v22  ;;  %v417_v31 = vld [vmem:[#allocation2 + $0xbc0] sm:$0xff] }
 0x274   :  { %v6792_v13 = vadd.f32 %v5544_v51, %v3491_v52  ;;  %v5433_v38 = vpop.f32.mrb[172].mxu0  ;;  %v419_v51 = vld [vmem:[#allocation2 + $0xbd0] sm:$0xff]  ;;  %v442_v52 = vld [vmem:[#allocation2 + $0xc88] sm:$0xff] }
 0x275   :  { %v5545_v59 = vpop.f32.mrb[172].mxu1  ;;  %v5434_v53 = vpop.f32.mrb[173].mxu0 }
 0x276   :  { %v5435_v23 = vadd.f32 %v5434_v53, %v5433_v38  ;;  %v5546_v10 = vpop.f32.mrb[173].mxu1  ;;  %v5436_v4 = vpop.f32.mrb[174].mxu0  ;;  %v993_v38 = vpack.c.bf16 %v417_v31, %v393_v42  ;;  %v1018_v53 = vpack.c.bf16 %v466_v34, %v442_v52  ;;  %v514_v42 = vld [vmem:[#allocation2 + $0xec8] sm:$0xff] }
 0x277   :  { %v5547_v6 = vadd.f32 %v5546_v10, %v5545_v59  ;;  %v5548_v18 = vpop.f32.mrb[174].mxu1  ;;  %v5437_v21 = vpop.f32.mrb[175].mxu0  ;;  %v995_v59 = vpack.c.bf16 %v419_v51, %v395_v32  ;;  %v492_v32 = vld [vmem:[#allocation2 + $0xe18] sm:$0xff] }
 0x278   :  { %v3496_v36 = vadd.f32 %v5435_v23, %v6700_v41  ;;  %v5438_v25 = vadd.f32 %v5437_v21, %v5436_v4  ;;  %v5549_v20 = vpop.f32.mrb[175].mxu1  ;;  %v1020_v4 = vpack.c.bf16 %v468_v44, %v444_v43  ;;  %v516_v51 = vld [vmem:[#allocation2 + $0xed8] sm:$0xff] }
 0x279   :  { %v5550_v40 = vadd.f32 %v5549_v20, %v5548_v18  ;;  %4098 = vmatmul.mubr.bf16.gmra.mrb[24].mxu0 %v969_v60  ;;  %v443_v20 = vld [vmem:[#allocation2 + $0xc90] sm:$0xff] }
 0x27a   :  { %v6795_v26 = vadd.f32 %v5547_v6, %v3496_v36  ;;  %v3499_v22 = vadd.f32 %v5438_v25, %v6702_v5  ;;  %4259 = vmatmul.mubr.bf16.gmra.mrb[24].mxu1 %v971_v15  ;;  %4105 = vmatprep.mubr.bf16.mxu0 %v994_v55  ;;  %v441_v36 = vld [vmem:[#allocation2 + $0xc80] sm:$0xff] }
 0x27b   :  { %4266 = vmatprep.mubr.bf16.mxu1 %v996_v33  ;;  %v465_v25 = vld [vmem:[#allocation2 + $0xd40] sm:$0xff] }
 0x27c   :  { %v6798_v2 = vadd.f32 %v5550_v40, %v3499_v22  ;;  %v5439_v41 = vpop.f32.mrb[176].mxu0  ;;  %v467_v40 = vld [vmem:[#allocation2 + $0xd50] sm:$0xff]  ;;  %v490_v22 = vld [vmem:[#allocation2 + $0xe08] sm:$0xff] }
 0x27d   :  { %v5551_v27 = vpop.f32.mrb[176].mxu1  ;;  %v5440_v54 = vpop.f32.mrb[177].mxu0 }
 0x27e   :  { %v5441_v14 = vadd.f32 %v5440_v54, %v5439_v41  ;;  %v5552_v39 = vpop.f32.mrb[177].mxu1  ;;  %v5442_v5 = vpop.f32.mrb[178].mxu0  ;;  %v1017_v41 = vpack.c.bf16 %v465_v25, %v441_v36  ;;  %v1042_v54 = vpack.c.bf16 %v514_v42, %v490_v22  ;;  %v562_v36 = vld [vmem:[#allocation2 + $0x1048] sm:$0xff] }
 0x27f   :  { %v5553_v60 = vadd.f32 %v5552_v39, %v5551_v27  ;;  %v5554_v23 = vpop.f32.mrb[178].mxu1  ;;  %v5443_v10 = vpop.f32.mrb[179].mxu0  ;;  %v1019_v27 = vpack.c.bf16 %v467_v40, %v443_v20  ;;  %v540_v20 = vld [vmem:[#allocation2 + $0xf98] sm:$0xff] }
 0x280   :  { %v3504_v15 = vadd.f32 %v5441_v14, %v6706_v30  ;;  %v5444_v55 = vadd.f32 %v5443_v10, %v5442_v5  ;;  %v5555_v6 = vpop.f32.mrb[179].mxu1  ;;  %v1044_v5 = vpack.c.bf16 %v516_v51, %v492_v32  ;;  %v564_v40 = vld [vmem:[#allocation2 + $0x1058] sm:$0xff] }
 0x281   :  { %v5556_v18 = vadd.f32 %v5555_v6, %v5554_v23  ;;  %4106 = vmatmul.mubr.bf16.gmra.mrb[28].mxu0 %v993_v38  ;;  %v491_v6 = vld [vmem:[#allocation2 + $0xe10] sm:$0xff] }
 0x282   :  { %v6801_v21 = vadd.f32 %v5553_v60, %v3504_v15  ;;  %v3507_v33 = vadd.f32 %v5444_v55, %v6708_v46  ;;  %4267 = vmatmul.mubr.bf16.gmra.mrb[28].mxu1 %v995_v59  ;;  %4113 = vmatprep.mubr.bf16.mxu0 %v1018_v53  ;;  %v489_v15 = vld [vmem:[#allocation2 + $0xe00] sm:$0xff] }
 0x283   :  { %4274 = vmatprep.mubr.bf16.mxu1 %v1020_v4  ;;  %v513_v55 = vld [vmem:[#allocation2 + $0xec0] sm:$0xff] }
 0x284   :  { %v6804_v31 = vadd.f32 %v5556_v18, %v3507_v33  ;;  %v5445_v30 = vpop.f32.mrb[180].mxu0  ;;  %v515_v18 = vld [vmem:[#allocation2 + $0xed0] sm:$0xff]  ;;  %v538_v33 = vld [vmem:[#allocation2 + $0xf88] sm:$0xff] }
 0x285   :  { %v5557_v52 = vpop.f32.mrb[180].mxu1  ;;  %v5446_v34 = vpop.f32.mrb[181].mxu0 }
 0x286   :  { %v5447_v43 = vadd.f32 %v5446_v34, %v5445_v30  ;;  %v5558_v44 = vpop.f32.mrb[181].mxu1  ;;  %v5448_v46 = vpop.f32.mrb[182].mxu0  ;;  %v1041_v30 = vpack.c.bf16 %v513_v55, %v489_v15  ;;  %v1066_v34 = vpack.c.bf16 %v562_v36, %v538_v33  ;;  %v610_v15 = vld [vmem:[#allocation2 + $0x11c8] sm:$0xff] }
 0x287   :  { %v5559_v38 = vadd.f32 %v5558_v44, %v5557_v52  ;;  %v5560_v14 = vpop.f32.mrb[182].mxu1  ;;  %v5449_v39 = vpop.f32.mrb[183].mxu0  ;;  %v1043_v52 = vpack.c.bf16 %v515_v18, %v491_v6  ;;  %v588_v6 = vld [vmem:[#allocation2 + $0x1118] sm:$0xff] }
 0x288   :  { %v3512_v59 = vadd.f32 %v5447_v43, %v6712_v50  ;;  %v5450_v53 = vadd.f32 %v5449_v39, %v5448_v46  ;;  %v5561_v60 = vpop.f32.mrb[183].mxu1  ;;  %v1068_v46 = vpack.c.bf16 %v564_v40, %v540_v20  ;;  %v612_v18 = vld [vmem:[#allocation2 + $0x11d8] sm:$0xff] }
 0x289   :  { %v5562_v23 = vadd.f32 %v5561_v60, %v5560_v14  ;;  %4114 = vmatmul.mubr.bf16.gmra.mrb[32].mxu0 %v1017_v41  ;;  %v539_v60 = vld [vmem:[#allocation2 + $0xf90] sm:$0xff] }
 0x28a   :  { %v6807_v10 = vadd.f32 %v5559_v38, %v3512_v59  ;;  %v3515_v4 = vadd.f32 %v5450_v53, %v6714_v57  ;;  %4275 = vmatmul.mubr.bf16.gmra.mrb[32].mxu1 %v1019_v27  ;;  %4121 = vmatprep.mubr.bf16.mxu0 %v1042_v54  ;;  %v537_v59 = vld [vmem:[#allocation2 + $0xf80] sm:$0xff] }
 0x28b   :  { %4282 = vmatprep.mubr.bf16.mxu1 %v1044_v5  ;;  %v561_v53 = vld [vmem:[#allocation2 + $0x1040] sm:$0xff] }
 0x28c   :  { %v6810_v25 = vadd.f32 %v5562_v23, %v3515_v4  ;;  %v5451_v50 = vpop.f32.mrb[184].mxu0  ;;  %v563_v23 = vld [vmem:[#allocation2 + $0x1050] sm:$0xff]  ;;  %v586_v4 = vld [vmem:[#allocation2 + $0x1108] sm:$0xff] }
 0x28d   :  { %v5563_v22 = vpop.f32.mrb[184].mxu1  ;;  %v5452_v42 = vpop.f32.mrb[185].mxu0 }
 0x28e   :  { %v5453_v32 = vadd.f32 %v5452_v42, %v5451_v50  ;;  %v5564_v51 = vpop.f32.mrb[185].mxu1  ;;  %v5454_v57 = vpop.f32.mrb[186].mxu0  ;;  %v1065_v50 = vpack.c.bf16 %v561_v53, %v537_v59  ;;  %v1090_v42 = vpack.c.bf16 %v610_v15, %v586_v4  ;;  %v658_v59 = vld [vmem:[#allocation2 + $0x1348] sm:$0xff] }
 0x28f   :  { %v5565_v41 = vadd.f32 %v5564_v51, %v5563_v22  ;;  %v5566_v43 = vpop.f32.mrb[186].mxu1  ;;  %v5455_v44 = vpop.f32.mrb[187].mxu0  ;;  %v1067_v22 = vpack.c.bf16 %v563_v23, %v539_v60  ;;  %v636_v60 = vld [vmem:[#allocation2 + $0x1298] sm:$0xff] }
 0x290   :  { %v3520_v27 = vadd.f32 %v5453_v32, %v6718_v11  ;;  %v5456_v54 = vadd.f32 %v5455_v44, %v5454_v57  ;;  %v5567_v38 = vpop.f32.mrb[187].mxu1  ;;  %v1092_v57 = vpack.c.bf16 %v612_v18, %v588_v6  ;;  %v660_v23 = vld [vmem:[#allocation2 + $0x1358] sm:$0xff] }
 0x291   :  { %v5568_v14 = vadd.f32 %v5567_v38, %v5566_v43  ;;  %4122 = vmatmul.mubr.bf16.gmra.mrb[36].mxu0 %v1041_v30  ;;  %v587_v38 = vld [vmem:[#allocation2 + $0x1110] sm:$0xff] }
 0x292   :  { %v6813_v39 = vadd.f32 %v5565_v41, %v3520_v27  ;;  %v3523_v5 = vadd.f32 %v5456_v54, %v6720_v62  ;;  %4283 = vmatmul.mubr.bf16.gmra.mrb[36].mxu1 %v1043_v52  ;;  %4129 = vmatprep.mubr.bf16.mxu0 %v1066_v34  ;;  %v585_v27 = vld [vmem:[#allocation2 + $0x1100] sm:$0xff] }
 0x293   :  { %4290 = vmatprep.mubr.bf16.mxu1 %v1068_v46  ;;  %v609_v54 = vld [vmem:[#allocation2 + $0x11c0] sm:$0xff] }
 0x294   :  { %v6816_v55 = vadd.f32 %v5568_v14, %v3523_v5  ;;  %v5457_v11 = vpop.f32.mrb[188].mxu0  ;;  %v611_v14 = vld [vmem:[#allocation2 + $0x11d0] sm:$0xff]  ;;  %v634_v5 = vld [vmem:[#allocation2 + $0x1288] sm:$0xff] }
 0x295   :  { %v5569_v33 = vpop.f32.mrb[188].mxu1  ;;  %v5458_v36 = vpop.f32.mrb[189].mxu0 }
 0x296   :  { %v5459_v20 = vadd.f32 %v5458_v36, %v5457_v11  ;;  %v5570_v40 = vpop.f32.mrb[189].mxu1  ;;  %v5460_v62 = vpop.f32.mrb[190].mxu0  ;;  %v1089_v11 = vpack.c.bf16 %v609_v54, %v585_v27  ;;  %v1114_v36 = vpack.c.bf16 %v658_v59, %v634_v5  ;;  %v706_v27 = vld [vmem:[#allocation2 + $0x14c8] sm:$0xff] }
 0x297   :  { %v5571_v30 = vadd.f32 %v5570_v40, %v5569_v33  ;;  %v5572_v32 = vpop.f32.mrb[190].mxu1  ;;  %v5461_v51 = vpop.f32.mrb[191].mxu0  ;;  %v1091_v33 = vpack.c.bf16 %v611_v14, %v587_v38  ;;  %v684_v38 = vld [vmem:[#allocation2 + $0x1418] sm:$0xff] }
 0x298   :  { %v3528_v52 = vadd.f32 %v5459_v20, %v6724_v12  ;;  %v5462_v34 = vadd.f32 %v5461_v51, %v5460_v62  ;;  %v5573_v41 = vpop.f32.mrb[191].mxu1  ;;  %v1116_v62 = vpack.c.bf16 %v660_v23, %v636_v60  ;;  %v708_v14 = vld [vmem:[#allocation2 + $0x14d8] sm:$0xff] }
 0x299   :  { %v5574_v43 = vadd.f32 %v5573_v41, %v5572_v32  ;;  %4130 = vmatmul.mubr.bf16.gmra.mrb[40].mxu0 %v1065_v50  ;;  %v635_v41 = vld [vmem:[#allocation2 + $0x1290] sm:$0xff] }
 0x29a   :  { %v6819_v44 = vadd.f32 %v5571_v30, %v3528_v52  ;;  %v3531_v46 = vadd.f32 %v5462_v34, %v6726_v35  ;;  %4291 = vmatmul.mubr.bf16.gmra.mrb[40].mxu1 %v1067_v22  ;;  %4137 = vmatprep.mubr.bf16.mxu0 %v1090_v42  ;;  %v633_v52 = vld [vmem:[#allocation2 + $0x1280] sm:$0xff] }
 0x29b   :  { %4298 = vmatprep.mubr.bf16.mxu1 %v1092_v57  ;;  %v657_v34 = vld [vmem:[#allocation2 + $0x1340] sm:$0xff] }
 0x29c   :  { %v6822_v53 = vadd.f32 %v5574_v43, %v3531_v46  ;;  %v5591_v12 = vpop.f32.mrb[192].mxu0  ;;  %v659_v43 = vld [vmem:[#allocation2 + $0x1350] sm:$0xff]  ;;  %v682_v46 = vld [vmem:[#allocation2 + $0x1408] sm:$0xff] }
 0x29d   :  { %v5703_v4 = vpop.f32.mrb[192].mxu1  ;;  %v5592_v15 = vpop.f32.mrb[193].mxu0 }
 0x29e   :  { %v5593_v6 = vadd.f32 %v5592_v15, %v5591_v12  ;;  %v5704_v18 = vpop.f32.mrb[193].mxu1  ;;  %v5594_v35 = vpop.f32.mrb[194].mxu0  ;;  %v1113_v12 = vpack.c.bf16 %v657_v34, %v633_v52  ;;  %v1138_v15 = vpack.c.bf16 %v706_v27, %v682_v46  ;;  %v754_v52 = vld [vmem:[#allocation2 + $0x1648] sm:$0xff] }
 0x29f   :  { %v5705_v50 = vadd.f32 %v5704_v18, %v5703_v4  ;;  %v5706_v20 = vpop.f32.mrb[194].mxu1  ;;  %v5595_v40 = vpop.f32.mrb[195].mxu0  ;;  %v1115_v4 = vpack.c.bf16 %v659_v43, %v635_v41  ;;  %v732_v41 = vld [vmem:[#allocation2 + $0x1598] sm:$0xff] }
 0x2a0   :  { %v3730_v22 = vadd.f32 %v5593_v6, %v6729_v0  ;;  %v5596_v42 = vadd.f32 %v5595_v40, %v5594_v35  ;;  %v5707_v30 = vpop.f32.mrb[195].mxu1  ;;  %v1140_v35 = vpack.c.bf16 %v708_v14, %v684_v38  ;;  %v756_v43 = vld [vmem:[#allocation2 + $0x1658] sm:$0xff] }
 0x2a1   :  { %v5708_v32 = vadd.f32 %v5707_v30, %v5706_v20  ;;  %4138 = vmatmul.mubr.bf16.gmra.mrb[44].mxu0 %v1089_v11  ;;  %v683_v30 = vld [vmem:[#allocation2 + $0x1410] sm:$0xff] }
 0x2a2   :  { %v6825_v51 = vadd.f32 %v5705_v50, %v3730_v22  ;;  %v3733_v57 = vadd.f32 %v5596_v42, %v6732_v58  ;;  %4299 = vmatmul.mubr.bf16.gmra.mrb[44].mxu1 %v1091_v33  ;;  %4145 = vmatprep.mubr.bf16.mxu0 %v1114_v36  ;;  %v681_v22 = vld [vmem:[#allocation2 + $0x1400] sm:$0xff] }
 0x2a3   :  { %4306 = vmatprep.mubr.bf16.mxu1 %v1116_v62  ;;  %v705_v42 = vld [vmem:[#allocation2 + $0x14c0] sm:$0xff] }
 0x2a4   :  { %v6828_v54 = vadd.f32 %v5708_v32, %v3733_v57  ;;  %v5597_v0 = vpop.f32.mrb[196].mxu0  ;;  %v707_v32 = vld [vmem:[#allocation2 + $0x14d0] sm:$0xff]  ;;  %v730_v57 = vld [vmem:[#allocation2 + $0x1588] sm:$0xff] }
 0x2a5   :  { %v5709_v5 = vpop.f32.mrb[196].mxu1  ;;  %v5598_v59 = vpop.f32.mrb[197].mxu0 }
 0x2a6   :  { %v5599_v60 = vadd.f32 %v5598_v59, %v5597_v0  ;;  %v5710_v23 = vpop.f32.mrb[197].mxu1  ;;  %v5600_v58 = vpop.f32.mrb[198].mxu0  ;;  %v1137_v0 = vpack.c.bf16 %v705_v42, %v681_v22  ;;  %v1162_v59 = vpack.c.bf16 %v754_v52, %v730_v57  ;;  %v802_v22 = vld [vmem:[#allocation2 + $0x17c8] sm:$0xff] }
 0x2a7   :  { %v5711_v11 = vadd.f32 %v5710_v23, %v5709_v5  ;;  %v5712_v6 = vpop.f32.mrb[198].mxu1  ;;  %v5601_v18 = vpop.f32.mrb[199].mxu0  ;;  %v1139_v5 = vpack.c.bf16 %v707_v32, %v683_v30  ;;  %v780_v30 = vld [vmem:[#allocation2 + $0x1718] sm:$0xff] }
 0x2a8   :  { %v3738_v33 = vadd.f32 %v5599_v60, %v6735_v28  ;;  %v5602_v36 = vadd.f32 %v5601_v18, %v5600_v58  ;;  %v5713_v50 = vpop.f32.mrb[199].mxu1  ;;  %v1164_v58 = vpack.c.bf16 %v756_v43, %v732_v41  ;;  %v804_v32 = vld [vmem:[#allocation2 + $0x17d8] sm:$0xff] }
 0x2a9   :  { %v5714_v20 = vadd.f32 %v5713_v50, %v5712_v6  ;;  %4146 = vmatmul.mubr.bf16.gmra.mrb[48].mxu0 %v1113_v12  ;;  %v731_v50 = vld [vmem:[#allocation2 + $0x1590] sm:$0xff] }
 0x2aa   :  { %v6831_v40 = vadd.f32 %v5711_v11, %v3738_v33  ;;  %v3741_v62 = vadd.f32 %v5602_v36, %v6738_v48  ;;  %4307 = vmatmul.mubr.bf16.gmra.mrb[48].mxu1 %v1115_v4  ;;  %4153 = vmatprep.mubr.bf16.mxu0 %v1138_v15  ;;  %v729_v33 = vld [vmem:[#allocation2 + $0x1580] sm:$0xff] }
 0x2ab   :  { %4314 = vmatprep.mubr.bf16.mxu1 %v1140_v35  ;;  %v753_v36 = vld [vmem:[#allocation2 + $0x1640] sm:$0xff] }
 0x2ac   :  { %v6834_v34 = vadd.f32 %v5714_v20, %v3741_v62  ;;  %v5603_v28 = vpop.f32.mrb[200].mxu0  ;;  %v755_v20 = vld [vmem:[#allocation2 + $0x1650] sm:$0xff]  ;;  %v778_v62 = vld [vmem:[#allocation2 + $0x1708] sm:$0xff] }
 0x2ad   :  { %v5715_v46 = vpop.f32.mrb[200].mxu1  ;;  %v5604_v27 = vpop.f32.mrb[201].mxu0 }
 0x2ae   :  { %v5605_v38 = vadd.f32 %v5604_v27, %v5603_v28  ;;  %v5716_v14 = vpop.f32.mrb[201].mxu1  ;;  %v5606_v48 = vpop.f32.mrb[202].mxu0  ;;  %v1161_v28 = vpack.c.bf16 %v753_v36, %v729_v33  ;;  %v1186_v27 = vpack.c.bf16 %v802_v22, %v778_v62  ;;  %v86_v33 = vld [vmem:[#allocation2 + $0x168] sm:$0xff] }
 0x2af   :  { %v5717_v12 = vadd.f32 %v5716_v14, %v5715_v46  ;;  %v5718_v60 = vpop.f32.mrb[202].mxu1  ;;  %v5607_v23 = vpop.f32.mrb[203].mxu0  ;;  %v1163_v46 = vpack.c.bf16 %v755_v20, %v731_v50  ;;  %v64_v50 = vld [vmem:[#allocation2 + $0xb8] sm:$0xff] }
 0x2b0   :  { %v3746_v4 = vadd.f32 %v5605_v38, %v6741_v16  ;;  %v5608_v15 = vadd.f32 %v5607_v23, %v5606_v48  ;;  %v5719_v11 = vpop.f32.mrb[203].mxu1  ;;  %v1188_v48 = vpack.c.bf16 %v804_v32, %v780_v30  ;;  %v88_v20 = vld [vmem:[#allocation2 + $0x178] sm:$0xff] }
 0x2b1   :  { %v5720_v6 = vadd.f32 %v5719_v11, %v5718_v60  ;;  %4154 = vmatmul.mubr.bf16.gmra.mrb[52].mxu0 %v1137_v0  ;;  %v779_v11 = vld [vmem:[#allocation2 + $0x1710] sm:$0xff] }
 0x2b2   :  { %v6837_v18 = vadd.f32 %v5717_v12, %v3746_v4  ;;  %v3749_v35 = vadd.f32 %v5608_v15, %v6744_v37  ;;  %4315 = vmatmul.mubr.bf16.gmra.mrb[52].mxu1 %v1139_v5  ;;  %4161 = vmatprep.mubr.bf16.mxu0 %v1162_v59  ;;  %v777_v4 = vld [vmem:[#allocation2 + $0x1700] sm:$0xff] }
 0x2b3   :  { %4322 = vmatprep.mubr.bf16.mxu1 %v1164_v58  ;;  %v801_v15 = vld [vmem:[#allocation2 + $0x17c0] sm:$0xff] }
 0x2b4   :  { %v6840_v42 = vadd.f32 %v5720_v6, %v3749_v35  ;;  %v5609_v16 = vpop.f32.mrb[204].mxu0  ;;  %v803_v6 = vld [vmem:[#allocation2 + $0x17d0] sm:$0xff]  ;;  %v62_v35 = vld [vmem:[#allocation2 + $0xa8] sm:$0xff] }
 0x2b5   :  { %v5721_v57 = vpop.f32.mrb[204].mxu1  ;;  %v5610_v52 = vpop.f32.mrb[205].mxu0 }
 0x2b6   :  { %v5611_v41 = vadd.f32 %v5610_v52, %v5609_v16  ;;  %v5722_v43 = vpop.f32.mrb[205].mxu1  ;;  %v5612_v37 = vpop.f32.mrb[206].mxu0  ;;  %v1185_v16 = vpack.c.bf16 %v801_v15, %v777_v4  ;;  %v830_v52 = vpack.c.bf16 %v86_v33, %v62_v35  ;;  %v134_v4 = vld [vmem:[#allocation2 + $0x2e8] sm:$0xff] }
 0x2b7   :  { %v5723_v0 = vadd.f32 %v5722_v43, %v5721_v57  ;;  %v5724_v38 = vpop.f32.mrb[206].mxu1  ;;  %v5613_v14 = vpop.f32.mrb[207].mxu0  ;;  %v1187_v57 = vpack.c.bf16 %v803_v6, %v779_v11  ;;  %v112_v11 = vld [vmem:[#allocation2 + $0x238] sm:$0xff] }
 0x2b8   :  { %v3754_v5 = vadd.f32 %v5611_v41, %v6747_v45  ;;  %v5614_v59 = vadd.f32 %v5613_v14, %v5612_v37  ;;  %v5725_v12 = vpop.f32.mrb[207].mxu1  ;;  %v832_v37 = vpack.c.bf16 %v88_v20, %v64_v50  ;;  %v136_v6 = vld [vmem:[#allocation2 + $0x2f8] sm:$0xff] }
 0x2b9   :  { %v5726_v60 = vadd.f32 %v5725_v12, %v5724_v38  ;;  %4162 = vmatmul.mubr.bf16.gmra.mrb[56].mxu0 %v1161_v28  ;;  %v63_v12 = vld [vmem:[#allocation2 + $0xb0] sm:$0xff] }
 0x2ba   :  { %v6843_v23 = vadd.f32 %v5723_v0, %v3754_v5  ;;  %v3757_v58 = vadd.f32 %v5614_v59, %v6750_v24  ;;  %4323 = vmatmul.mubr.bf16.gmra.mrb[56].mxu1 %v1163_v46  ;;  %4169 = vmatprep.mubr.bf16.mxu0 %v1186_v27  ;;  %v61_v5 = vld [vmem:[#allocation2 + $0xa0] sm:$0xff] }
 0x2bb   :  { %4330 = vmatprep.mubr.bf16.mxu1 %v1188_v48  ;;  %v85_v59 = vld [vmem:[#allocation2 + $0x160] sm:$0xff] }
 0x2bc   :  { %v6846_v36 = vadd.f32 %v5726_v60, %v3757_v58  ;;  %v5615_v45 = vpop.f32.mrb[208].mxu0  ;;  %v87_v60 = vld [vmem:[#allocation2 + $0x170] sm:$0xff]  ;;  %v110_v58 = vld [vmem:[#allocation2 + $0x228] sm:$0xff] }
 0x2bd   :  { %v5727_v62 = vpop.f32.mrb[208].mxu1  ;;  %v5616_v22 = vpop.f32.mrb[209].mxu0 }
 0x2be   :  { %v5617_v30 = vadd.f32 %v5616_v22, %v5615_v45  ;;  %v5728_v32 = vpop.f32.mrb[209].mxu1  ;;  %v5618_v24 = vpop.f32.mrb[210].mxu0  ;;  %v829_v45 = vpack.c.bf16 %v85_v59, %v61_v5  ;;  %v854_v22 = vpack.c.bf16 %v134_v4, %v110_v58  ;;  %v182_v5 = vld [vmem:[#allocation2 + $0x468] sm:$0xff] }
 0x2bf   :  { %v5729_v28 = vadd.f32 %v5728_v32, %v5727_v62  ;;  %v5730_v41 = vpop.f32.mrb[210].mxu1  ;;  %v5619_v43 = vpop.f32.mrb[211].mxu0  ;;  %v831_v62 = vpack.c.bf16 %v87_v60, %v63_v12  ;;  %v160_v12 = vld [vmem:[#allocation2 + $0x3b8] sm:$0xff] }
 0x2c0   :  { %v3762_v46 = vadd.f32 %v5617_v30, %v6753_v8  ;;  %v5620_v27 = vadd.f32 %v5619_v43, %v5618_v24  ;;  %v5731_v0 = vpop.f32.mrb[211].mxu1  ;;  %v856_v24 = vpack.c.bf16 %v136_v6, %v112_v11  ;;  %v184_v60 = vld [vmem:[#allocation2 + $0x478] sm:$0xff] }
 0x2c1   :  { %v5732_v38 = vadd.f32 %v5731_v0, %v5730_v41  ;;  %4170 = vmatmul.mubr.bf16.gmra.mrb[60].mxu0 %v1185_v16  ;;  %v111_v0 = vld [vmem:[#allocation2 + $0x230] sm:$0xff] }
 0x2c2   :  { %v6849_v14 = vadd.f32 %v5729_v28, %v3762_v46  ;;  %v3765_v48 = vadd.f32 %v5620_v27, %v6756_v56  ;;  %4331 = vmatmul.mubr.bf16.gmra.mrb[60].mxu1 %v1187_v57  ;;  %4371 = vmatprep.mubr.bf16.mxu0 %v830_v52  ;;  %v109_v46 = vld [vmem:[#allocation2 + $0x220] sm:$0xff] }
 0x2c3   :  { %4532 = vmatprep.mubr.bf16.mxu1 %v832_v37  ;;  %v133_v27 = vld [vmem:[#allocation2 + $0x2e0] sm:$0xff] }
 0x2c4   :  { %v6852_v15 = vadd.f32 %v5732_v38, %v3765_v48  ;;  %v5621_v8 = vpop.f32.mrb[212].mxu0  ;;  %v135_v38 = vld [vmem:[#allocation2 + $0x2f0] sm:$0xff]  ;;  %v158_v48 = vld [vmem:[#allocation2 + $0x3a8] sm:$0xff] }
 0x2c5   :  { %v5733_v35 = vpop.f32.mrb[212].mxu1  ;;  %v5622_v33 = vpop.f32.mrb[213].mxu0 }
 0x2c6   :  { %v5623_v50 = vadd.f32 %v5622_v33, %v5621_v8  ;;  %v5734_v20 = vpop.f32.mrb[213].mxu1  ;;  %v5624_v56 = vpop.f32.mrb[214].mxu0  ;;  %v853_v8 = vpack.c.bf16 %v133_v27, %v109_v46  ;;  %v878_v33 = vpack.c.bf16 %v182_v5, %v158_v48  ;;  %v230_v46 = vld [vmem:[#allocation2 + $0x5e8] sm:$0xff] }
 0x2c7   :  { %v5735_v16 = vadd.f32 %v5734_v20, %v5733_v35  ;;  %v5736_v30 = vpop.f32.mrb[214].mxu1  ;;  %v5625_v32 = vpop.f32.mrb[215].mxu0  ;;  %v855_v35 = vpack.c.bf16 %v135_v38, %v111_v0  ;;  %v208_v0 = vld [vmem:[#allocation2 + $0x538] sm:$0xff] }
 0x2c8   :  { %v3770_v57 = vadd.f32 %v5623_v50, %v6759_v19  ;;  %v5626_v52 = vadd.f32 %v5625_v32, %v5624_v56  ;;  %v5737_v28 = vpop.f32.mrb[215].mxu1  ;;  %v880_v56 = vpack.c.bf16 %v184_v60, %v160_v12  ;;  %v232_v38 = vld [vmem:[#allocation2 + $0x5f8] sm:$0xff] }
 0x2c9   :  { %v5738_v41 = vadd.f32 %v5737_v28, %v5736_v30  ;;  %4372 = vmatmul.mubr.bf16.vlgmr.msra.gmra.mrb[64].mxu0 %v829_v45  ;;  %v159_v28 = vld [vmem:[#allocation2 + $0x3b0] sm:$0xff] }
 0x2ca   :  { %v6855_v43 = vadd.f32 %v5735_v16, %v3770_v57  ;;  %v3773_v37 = vadd.f32 %v5626_v52, %v6762_v9  ;;  %4533 = vmatmul.mubr.bf16.vlgmr.msra.gmra.mrb[64].mxu1 %v831_v62  ;;  %4379 = vmatprep.mubr.bf16.mxu0 %v854_v22  ;;  %v157_v57 = vld [vmem:[#allocation2 + $0x3a0] sm:$0xff] }
 0x2cb   :  { %4540 = vmatprep.mubr.bf16.mxu1 %v856_v24  ;;  %v181_v52 = vld [vmem:[#allocation2 + $0x460] sm:$0xff] }
 0x2cc   :  { %v6858_v59 = vadd.f32 %v5738_v41, %v3773_v37  ;;  %v5627_v19 = vpop.f32.mrb[216].mxu0  ;;  %v183_v41 = vld [vmem:[#allocation2 + $0x470] sm:$0xff]  ;;  %v206_v37 = vld [vmem:[#allocation2 + $0x528] sm:$0xff] }
 0x2cd   :  { %v5739_v58 = vpop.f32.mrb[216].mxu1  ;;  %v5628_v4 = vpop.f32.mrb[217].mxu0 }
 0x2ce   :  { %v5629_v11 = vadd.f32 %v5628_v4, %v5627_v19  ;;  %v5740_v6 = vpop.f32.mrb[217].mxu1  ;;  %v5630_v9 = vpop.f32.mrb[218].mxu0  ;;  %v877_v19 = vpack.c.bf16 %v181_v52, %v157_v57  ;;  %v902_v4 = vpack.c.bf16 %v230_v46, %v206_v37  ;;  %v278_v57 = vld [vmem:[#allocation2 + $0x768] sm:$0xff] }
 0x2cf   :  { %v5741_v45 = vadd.f32 %v5740_v6, %v5739_v58  ;;  %v5742_v50 = vpop.f32.mrb[218].mxu1  ;;  %v5631_v20 = vpop.f32.mrb[219].mxu0  ;;  %v879_v58 = vpack.c.bf16 %v183_v41, %v159_v28  ;;  %v256_v28 = vld [vmem:[#allocation2 + $0x6b8] sm:$0xff] }
 0x2d0   :  { %v3778_v62 = vadd.f32 %v5629_v11, %v6765_v49  ;;  %v5632_v22 = vadd.f32 %v5631_v20, %v5630_v9  ;;  %v5743_v16 = vpop.f32.mrb[219].mxu1  ;;  %v904_v9 = vpack.c.bf16 %v232_v38, %v208_v0  ;;  %v280_v41 = vld [vmem:[#allocation2 + $0x778] sm:$0xff] }
 0x2d1   :  { %v5744_v30 = vadd.f32 %v5743_v16, %v5742_v50  ;;  %4380 = vmatmul.mubr.bf16.gmra.mrb[68].mxu0 %v853_v8  ;;  %v207_v16 = vld [vmem:[#allocation2 + $0x530] sm:$0xff] }
 0x2d2   :  { %v6861_v32 = vadd.f32 %v5741_v45, %v3778_v62  ;;  %v3781_v24 = vadd.f32 %v5632_v22, %v6768_v63  ;;  %4541 = vmatmul.mubr.bf16.gmra.mrb[68].mxu1 %v855_v35  ;;  %4387 = vmatprep.mubr.bf16.mxu0 %v878_v33  ;;  %v205_v62 = vld [vmem:[#allocation2 + $0x520] sm:$0xff] }
 0x2d3   :  { %4548 = vmatprep.mubr.bf16.mxu1 %v880_v56  ;;  %v229_v22 = vld [vmem:[#allocation2 + $0x5e0] sm:$0xff] }
 0x2d4   :  { %v6864_v27 = vadd.f32 %v5744_v30, %v3781_v24  ;;  %v5633_v49 = vpop.f32.mrb[220].mxu0  ;;  %v231_v30 = vld [vmem:[#allocation2 + $0x5f0] sm:$0xff]  ;;  %v254_v24 = vld [vmem:[#allocation2 + $0x6a8] sm:$0xff] }
 0x2d5   :  { %v5745_v48 = vpop.f32.mrb[220].mxu1  ;;  %v5634_v5 = vpop.f32.mrb[221].mxu0 }
 0x2d6   :  { %v5635_v12 = vadd.f32 %v5634_v5, %v5633_v49  ;;  %v5746_v60 = vpop.f32.mrb[221].mxu1  ;;  %v5636_v63 = vpop.f32.mrb[222].mxu0  ;;  %v901_v49 = vpack.c.bf16 %v229_v22, %v205_v62  ;;  %v926_v5 = vpack.c.bf16 %v278_v57, %v254_v24  ;;  %v326_v62 = vld [vmem:[#allocation2 + $0x8e8] sm:$0xff] }
 0x2d7   :  { %v5747_v8 = vadd.f32 %v5746_v60, %v5745_v48  ;;  %v5748_v11 = vpop.f32.mrb[222].mxu1  ;;  %v5637_v6 = vpop.f32.mrb[223].mxu0  ;;  %v903_v48 = vpack.c.bf16 %v231_v30, %v207_v16  ;;  %v304_v16 = vld [vmem:[#allocation2 + $0x838] sm:$0xff] }
 0x2d8   :  { %v3786_v35 = vadd.f32 %v5635_v12, %v6771_v1  ;;  %v5638_v33 = vadd.f32 %v5637_v6, %v5636_v63  ;;  %v5749_v45 = vpop.f32.mrb[223].mxu1  ;;  %v928_v63 = vpack.c.bf16 %v280_v41, %v256_v28  ;;  %v328_v30 = vld [vmem:[#allocation2 + $0x8f8] sm:$0xff] }
 0x2d9   :  { %v5750_v50 = vadd.f32 %v5749_v45, %v5748_v11  ;;  %4388 = vmatmul.mubr.bf16.gmra.mrb[72].mxu0 %v877_v19  ;;  %v255_v45 = vld [vmem:[#allocation2 + $0x6b0] sm:$0xff] }
 0x2da   :  { %v6867_v20 = vadd.f32 %v5747_v8, %v3786_v35  ;;  %v3789_v56 = vadd.f32 %v5638_v33, %v6774_v29  ;;  %4549 = vmatmul.mubr.bf16.gmra.mrb[72].mxu1 %v879_v58  ;;  %4395 = vmatprep.mubr.bf16.mxu0 %v902_v4  ;;  %v253_v35 = vld [vmem:[#allocation2 + $0x6a0] sm:$0xff] }
 0x2db   :  { %4556 = vmatprep.mubr.bf16.mxu1 %v904_v9  ;;  %v277_v33 = vld [vmem:[#allocation2 + $0x760] sm:$0xff] }
 0x2dc   :  { %v6870_v52 = vadd.f32 %v5750_v50, %v3789_v56  ;;  %v5639_v1 = vpop.f32.mrb[224].mxu0  ;;  %v279_v50 = vld [vmem:[#allocation2 + $0x770] sm:$0xff]  ;;  %v302_v56 = vld [vmem:[#allocation2 + $0x828] sm:$0xff] }
 0x2dd   :  { %v5751_v37 = vpop.f32.mrb[224].mxu1  ;;  %v5640_v46 = vpop.f32.mrb[225].mxu0 }
 0x2de   :  { %v5641_v0 = vadd.f32 %v5640_v46, %v5639_v1  ;;  %v5752_v38 = vpop.f32.mrb[225].mxu1  ;;  %v5642_v29 = vpop.f32.mrb[226].mxu0  ;;  %v925_v1 = vpack.c.bf16 %v277_v33, %v253_v35  ;;  %v950_v46 = vpack.c.bf16 %v326_v62, %v302_v56  ;;  %v374_v35 = vld [vmem:[#allocation2 + $0xa68] sm:$0xff] }
 0x2df   :  { %v5753_v19 = vadd.f32 %v5752_v38, %v5751_v37  ;;  %v5754_v12 = vpop.f32.mrb[226].mxu1  ;;  %v5643_v60 = vpop.f32.mrb[227].mxu0  ;;  %v927_v37 = vpack.c.bf16 %v279_v50, %v255_v45  ;;  %v352_v45 = vld [vmem:[#allocation2 + $0x9b8] sm:$0xff] }
 0x2e0   :  { %v3794_v58 = vadd.f32 %v5641_v0, %v6777_v3  ;;  %v5644_v4 = vadd.f32 %v5643_v60, %v5642_v29  ;;  %v5755_v8 = vpop.f32.mrb[227].mxu1  ;;  %v952_v29 = vpack.c.bf16 %v328_v30, %v304_v16  ;;  %v376_v50 = vld [vmem:[#allocation2 + $0xa78] sm:$0xff] }
 0x2e1   :  { %v5756_v11 = vadd.f32 %v5755_v8, %v5754_v12  ;;  %4396 = vmatmul.mubr.bf16.gmra.mrb[76].mxu0 %v901_v49  ;;  %v303_v8 = vld [vmem:[#allocation2 + $0x830] sm:$0xff] }
 0x2e2   :  { %v6873_v6 = vadd.f32 %v5753_v19, %v3794_v58  ;;  %v3797_v9 = vadd.f32 %v5644_v4, %v6780_v7  ;;  %4557 = vmatmul.mubr.bf16.gmra.mrb[76].mxu1 %v903_v48  ;;  %4403 = vmatprep.mubr.bf16.mxu0 %v926_v5  ;;  %v301_v58 = vld [vmem:[#allocation2 + $0x820] sm:$0xff] }
 0x2e3   :  { %4564 = vmatprep.mubr.bf16.mxu1 %v928_v63  ;;  %v325_v4 = vld [vmem:[#allocation2 + $0x8e0] sm:$0xff] }
 0x2e4   :  { %v6876_v22 = vadd.f32 %v5756_v11, %v3797_v9  ;;  %v5645_v3 = vpop.f32.mrb[228].mxu0  ;;  %v327_v11 = vld [vmem:[#allocation2 + $0x8f0] sm:$0xff]  ;;  %v350_v9 = vld [vmem:[#allocation2 + $0x9a8] sm:$0xff] }
 0x2e5   :  { %v5757_v24 = vpop.f32.mrb[228].mxu1  ;;  %v5646_v57 = vpop.f32.mrb[229].mxu0 }
 0x2e6   :  { %v5647_v28 = vadd.f32 %v5646_v57, %v5645_v3  ;;  %v5758_v41 = vpop.f32.mrb[229].mxu1  ;;  %v5648_v7 = vpop.f32.mrb[230].mxu0  ;;  %v949_v3 = vpack.c.bf16 %v325_v4, %v301_v58  ;;  %v974_v57 = vpack.c.bf16 %v374_v35, %v350_v9  ;;  %v422_v58 = vld [vmem:[#allocation2 + $0xbe8] sm:$0xff] }
 0x2e7   :  { %v5759_v49 = vadd.f32 %v5758_v41, %v5757_v24  ;;  %v5760_v0 = vpop.f32.mrb[230].mxu1  ;;  %v5649_v38 = vpop.f32.mrb[231].mxu0  ;;  %v951_v24 = vpack.c.bf16 %v327_v11, %v303_v8  ;;  %v400_v8 = vld [vmem:[#allocation2 + $0xb38] sm:$0xff] }
 0x2e8   :  { %v3802_v48 = vadd.f32 %v5647_v28, %v6783_v61  ;;  %v5650_v5 = vadd.f32 %v5649_v38, %v5648_v7  ;;  %v5761_v19 = vpop.f32.mrb[231].mxu1  ;;  %v976_v7 = vpack.c.bf16 %v376_v50, %v352_v45  ;;  %v424_v11 = vld [vmem:[#allocation2 + $0xbf8] sm:$0xff] }
 0x2e9   :  { %v5762_v12 = vadd.f32 %v5761_v19, %v5760_v0  ;;  %4404 = vmatmul.mubr.bf16.gmra.mrb[80].mxu0 %v925_v1  ;;  %v351_v19 = vld [vmem:[#allocation2 + $0x9b0] sm:$0xff] }
 0x2ea   :  { %v6879_v60 = vadd.f32 %v5759_v49, %v3802_v48  ;;  %v3805_v63 = vadd.f32 %v5650_v5, %v6786_v17  ;;  %4565 = vmatmul.mubr.bf16.gmra.mrb[80].mxu1 %v927_v37  ;;  %4411 = vmatprep.mubr.bf16.mxu0 %v950_v46  ;;  %v349_v48 = vld [vmem:[#allocation2 + $0x9a0] sm:$0xff] }
 0x2eb   :  { %4572 = vmatprep.mubr.bf16.mxu1 %v952_v29  ;;  %v373_v5 = vld [vmem:[#allocation2 + $0xa60] sm:$0xff] }
 0x2ec   :  { %v6882_v33 = vadd.f32 %v5762_v12, %v3805_v63  ;;  %v5651_v61 = vpop.f32.mrb[232].mxu0  ;;  %v375_v12 = vld [vmem:[#allocation2 + $0xa70] sm:$0xff]  ;;  %v398_v63 = vld [vmem:[#allocation2 + $0xb28] sm:$0xff] }
 0x2ed   :  { %v5763_v56 = vpop.f32.mrb[232].mxu1  ;;  %v5652_v62 = vpop.f32.mrb[233].mxu0 }
 0x2ee   :  { %v5653_v16 = vadd.f32 %v5652_v62, %v5651_v61  ;;  %v5764_v30 = vpop.f32.mrb[233].mxu1  ;;  %v5654_v17 = vpop.f32.mrb[234].mxu0  ;;  %v973_v61 = vpack.c.bf16 %v373_v5, %v349_v48  ;;  %v998_v62 = vpack.c.bf16 %v422_v58, %v398_v63  ;;  %v470_v48 = vld [vmem:[#allocation2 + $0xd68] sm:$0xff] }
 0x2ef   :  { %v5765_v1 = vadd.f32 %v5764_v30, %v5763_v56  ;;  %v5766_v28 = vpop.f32.mrb[234].mxu1  ;;  %v5655_v41 = vpop.f32.mrb[235].mxu0  ;;  %v975_v56 = vpack.c.bf16 %v375_v12, %v351_v19  ;;  %v448_v19 = vld [vmem:[#allocation2 + $0xcb8] sm:$0xff] }
 0x2f0   :  { %v3810_v37 = vadd.f32 %v5653_v16, %v6789_v47  ;;  %v5656_v46 = vadd.f32 %v5655_v41, %v5654_v17  ;;  %v5767_v49 = vpop.f32.mrb[235].mxu1  ;;  %v1000_v17 = vpack.c.bf16 %v424_v11, %v400_v8  ;;  %v472_v12 = vld [vmem:[#allocation2 + $0xd78] sm:$0xff] }
 0x2f1   :  { %v5768_v0 = vadd.f32 %v5767_v49, %v5766_v28  ;;  %4412 = vmatmul.mubr.bf16.gmra.mrb[84].mxu0 %v949_v3  ;;  %v399_v49 = vld [vmem:[#allocation2 + $0xb30] sm:$0xff] }
 0x2f2   :  { %v6885_v38 = vadd.f32 %v5765_v1, %v3810_v37  ;;  %v3813_v29 = vadd.f32 %v5656_v46, %v6792_v13  ;;  %4573 = vmatmul.mubr.bf16.gmra.mrb[84].mxu1 %v951_v24  ;;  %4419 = vmatprep.mubr.bf16.mxu0 %v974_v57  ;;  %v397_v37 = vld [vmem:[#allocation2 + $0xb20] sm:$0xff] }
 0x2f3   :  { %4580 = vmatprep.mubr.bf16.mxu1 %v976_v7  ;;  %v421_v46 = vld [vmem:[#allocation2 + $0xbe0] sm:$0xff] }
 0x2f4   :  { %v6888_v4 = vadd.f32 %v5768_v0, %v3813_v29  ;;  %v5657_v47 = vpop.f32.mrb[236].mxu0  ;;  %v423_v0 = vld [vmem:[#allocation2 + $0xbf0] sm:$0xff]  ;;  %v446_v29 = vld [vmem:[#allocation2 + $0xca8] sm:$0xff] }
 0x2f5   :  { %v5769_v9 = vpop.f32.mrb[236].mxu1  ;;  %v5658_v35 = vpop.f32.mrb[237].mxu0 }
 0x2f6   :  { %v5659_v45 = vadd.f32 %v5658_v35, %v5657_v47  ;;  %v5770_v50 = vpop.f32.mrb[237].mxu1  ;;  %v5660_v13 = vpop.f32.mrb[238].mxu0  ;;  %v997_v47 = vpack.c.bf16 %v421_v46, %v397_v37  ;;  %v1022_v35 = vpack.c.bf16 %v470_v48, %v446_v29  ;;  %v518_v37 = vld [vmem:[#allocation2 + $0xee8] sm:$0xff] }
 0x2f7   :  { %v5771_v3 = vadd.f32 %v5770_v50, %v5769_v9  ;;  %v5772_v16 = vpop.f32.mrb[238].mxu1  ;;  %v5661_v30 = vpop.f32.mrb[239].mxu0  ;;  %v999_v9 = vpack.c.bf16 %v423_v0, %v399_v49  ;;  %v496_v49 = vld [vmem:[#allocation2 + $0xe38] sm:$0xff] }
 0x2f8   :  { %v3818_v24 = vadd.f32 %v5659_v45, %v6795_v26  ;;  %v5662_v57 = vadd.f32 %v5661_v30, %v5660_v13  ;;  %v5773_v1 = vpop.f32.mrb[239].mxu1  ;;  %v1024_v13 = vpack.c.bf16 %v472_v12, %v448_v19  ;;  %v520_v0 = vld [vmem:[#allocation2 + $0xef8] sm:$0xff] }
 0x2f9   :  { %v5774_v28 = vadd.f32 %v5773_v1, %v5772_v16  ;;  %4420 = vmatmul.mubr.bf16.gmra.mrb[88].mxu0 %v973_v61  ;;  %v447_v1 = vld [vmem:[#allocation2 + $0xcb0] sm:$0xff] }
 0x2fa   :  { %v6891_v41 = vadd.f32 %v5771_v3, %v3818_v24  ;;  %v3821_v7 = vadd.f32 %v5662_v57, %v6798_v2  ;;  %4581 = vmatmul.mubr.bf16.gmra.mrb[88].mxu1 %v975_v56  ;;  %4427 = vmatprep.mubr.bf16.mxu0 %v998_v62  ;;  %v445_v24 = vld [vmem:[#allocation2 + $0xca0] sm:$0xff] }
 0x2fb   :  { %4588 = vmatprep.mubr.bf16.mxu1 %v1000_v17  ;;  %v469_v57 = vld [vmem:[#allocation2 + $0xd60] sm:$0xff] }
 0x2fc   :  { %v6894_v5 = vadd.f32 %v5774_v28, %v3821_v7  ;;  %v5663_v26 = vpop.f32.mrb[240].mxu0  ;;  %v471_v28 = vld [vmem:[#allocation2 + $0xd70] sm:$0xff]  ;;  %v494_v7 = vld [vmem:[#allocation2 + $0xe28] sm:$0xff] }
 0x2fd   :  { %v5775_v63 = vpop.f32.mrb[240].mxu1  ;;  %v5664_v58 = vpop.f32.mrb[241].mxu0 }
 0x2fe   :  { %v5665_v8 = vadd.f32 %v5664_v58, %v5663_v26  ;;  %v5776_v11 = vpop.f32.mrb[241].mxu1  ;;  %v5666_v2 = vpop.f32.mrb[242].mxu0  ;;  %v1021_v26 = vpack.c.bf16 %v469_v57, %v445_v24  ;;  %v1046_v58 = vpack.c.bf16 %v518_v37, %v494_v7  ;;  %v566_v24 = vld [vmem:[#allocation2 + $0x1068] sm:$0xff] }
 0x2ff   :  { %v5777_v61 = vadd.f32 %v5776_v11, %v5775_v63  ;;  %v5778_v45 = vpop.f32.mrb[242].mxu1  ;;  %v5667_v50 = vpop.f32.mrb[243].mxu0  ;;  %v1023_v63 = vpack.c.bf16 %v471_v28, %v447_v1  ;;  %v544_v1 = vld [vmem:[#allocation2 + $0xfb8] sm:$0xff] }
 0x300   :  { %v3826_v56 = vadd.f32 %v5665_v8, %v6801_v21  ;;  %v5668_v62 = vadd.f32 %v5667_v50, %v5666_v2  ;;  %v5779_v3 = vpop.f32.mrb[243].mxu1  ;;  %v1048_v2 = vpack.c.bf16 %v520_v0, %v496_v49  ;;  %v568_v28 = vld [vmem:[#allocation2 + $0x1078] sm:$0xff] }
 0x301   :  { %v5780_v16 = vadd.f32 %v5779_v3, %v5778_v45  ;;  %4428 = vmatmul.mubr.bf16.gmra.mrb[92].mxu0 %v997_v47  ;;  %v495_v3 = vld [vmem:[#allocation2 + $0xe30] sm:$0xff] }
 0x302   :  { %v6897_v30 = vadd.f32 %v5777_v61, %v3826_v56  ;;  %v3829_v17 = vadd.f32 %v5668_v62, %v6804_v31  ;;  %4589 = vmatmul.mubr.bf16.gmra.mrb[92].mxu1 %v999_v9  ;;  %4435 = vmatprep.mubr.bf16.mxu0 %v1022_v35  ;;  %v493_v56 = vld [vmem:[#allocation2 + $0xe20] sm:$0xff] }
 0x303   :  { %4596 = vmatprep.mubr.bf16.mxu1 %v1024_v13  ;;  %v517_v62 = vld [vmem:[#allocation2 + $0xee0] sm:$0xff] }
 0x304   :  { %v6900_v46 = vadd.f32 %v5780_v16, %v3829_v17  ;;  %v5669_v21 = vpop.f32.mrb[244].mxu0  ;;  %v519_v16 = vld [vmem:[#allocation2 + $0xef0] sm:$0xff]  ;;  %v542_v17 = vld [vmem:[#allocation2 + $0xfa8] sm:$0xff] }
 0x305   :  { %v5781_v29 = vpop.f32.mrb[244].mxu1  ;;  %v5670_v48 = vpop.f32.mrb[245].mxu0 }
 0x306   :  { %v5671_v19 = vadd.f32 %v5670_v48, %v5669_v21  ;;  %v5782_v12 = vpop.f32.mrb[245].mxu1  ;;  %v5672_v31 = vpop.f32.mrb[246].mxu0  ;;  %v1045_v21 = vpack.c.bf16 %v517_v62, %v493_v56  ;;  %v1070_v48 = vpack.c.bf16 %v566_v24, %v542_v17  ;;  %v614_v56 = vld [vmem:[#allocation2 + $0x11e8] sm:$0xff] }
 0x307   :  { %v5783_v47 = vadd.f32 %v5782_v12, %v5781_v29  ;;  %v5784_v8 = vpop.f32.mrb[246].mxu1  ;;  %v5673_v11 = vpop.f32.mrb[247].mxu0  ;;  %v1047_v29 = vpack.c.bf16 %v519_v16, %v495_v3  ;;  %v592_v3 = vld [vmem:[#allocation2 + $0x1138] sm:$0xff] }
 0x308   :  { %v3834_v9 = vadd.f32 %v5671_v19, %v6807_v10  ;;  %v5674_v35 = vadd.f32 %v5673_v11, %v5672_v31  ;;  %v5785_v61 = vpop.f32.mrb[247].mxu1  ;;  %v1072_v31 = vpack.c.bf16 %v568_v28, %v544_v1  ;;  %v616_v16 = vld [vmem:[#allocation2 + $0x11f8] sm:$0xff] }
 0x309   :  { %v5786_v45 = vadd.f32 %v5785_v61, %v5784_v8  ;;  %4436 = vmatmul.mubr.bf16.gmra.mrb[96].mxu0 %v1021_v26  ;;  %v543_v61 = vld [vmem:[#allocation2 + $0xfb0] sm:$0xff] }
 0x30a   :  { %v6903_v50 = vadd.f32 %v5783_v47, %v3834_v9  ;;  %v3837_v13 = vadd.f32 %v5674_v35, %v6810_v25  ;;  %4597 = vmatmul.mubr.bf16.gmra.mrb[96].mxu1 %v1023_v63  ;;  %4443 = vmatprep.mubr.bf16.mxu0 %v1046_v58  ;;  %v541_v9 = vld [vmem:[#allocation2 + $0xfa0] sm:$0xff] }
 0x30b   :  { %4604 = vmatprep.mubr.bf16.mxu1 %v1048_v2  ;;  %v565_v35 = vld [vmem:[#allocation2 + $0x1060] sm:$0xff] }
 0x30c   :  { %v6906_v57 = vadd.f32 %v5786_v45, %v3837_v13  ;;  %v5675_v10 = vpop.f32.mrb[248].mxu0  ;;  %v567_v45 = vld [vmem:[#allocation2 + $0x1070] sm:$0xff]  ;;  %v590_v13 = vld [vmem:[#allocation2 + $0x1128] sm:$0xff] }
 0x30d   :  { %v5787_v7 = vpop.f32.mrb[248].mxu1  ;;  %v5676_v37 = vpop.f32.mrb[249].mxu0 }
 0x30e   :  { %v5677_v49 = vadd.f32 %v5676_v37, %v5675_v10  ;;  %v5788_v0 = vpop.f32.mrb[249].mxu1  ;;  %v5678_v25 = vpop.f32.mrb[250].mxu0  ;;  %v1069_v10 = vpack.c.bf16 %v565_v35, %v541_v9  ;;  %v1094_v37 = vpack.c.bf16 %v614_v56, %v590_v13  ;;  %v662_v9 = vld [vmem:[#allocation2 + $0x1368] sm:$0xff] }
 0x30f   :  { %v5789_v26 = vadd.f32 %v5788_v0, %v5787_v7  ;;  %v5790_v19 = vpop.f32.mrb[250].mxu1  ;;  %v5679_v12 = vpop.f32.mrb[251].mxu0  ;;  %v1071_v7 = vpack.c.bf16 %v567_v45, %v543_v61  ;;  %v640_v61 = vld [vmem:[#allocation2 + $0x12b8] sm:$0xff] }
 0x310   :  { %v3842_v63 = vadd.f32 %v5677_v49, %v6813_v39  ;;  %v5680_v58 = vadd.f32 %v5679_v12, %v5678_v25  ;;  %v5791_v47 = vpop.f32.mrb[251].mxu1  ;;  %v1096_v25 = vpack.c.bf16 %v616_v16, %v592_v3  ;;  %v664_v45 = vld [vmem:[#allocation2 + $0x1378] sm:$0xff] }
 0x311   :  { %v5792_v8 = vadd.f32 %v5791_v47, %v5790_v19  ;;  %4444 = vmatmul.mubr.bf16.gmra.mrb[100].mxu0 %v1045_v21  ;;  %v591_v47 = vld [vmem:[#allocation2 + $0x1130] sm:$0xff] }
 0x312   :  { %v6909_v11 = vadd.f32 %v5789_v26, %v3842_v63  ;;  %v3845_v2 = vadd.f32 %v5680_v58, %v6816_v55  ;;  %4605 = vmatmul.mubr.bf16.gmra.mrb[100].mxu1 %v1047_v29  ;;  %4451 = vmatprep.mubr.bf16.mxu0 %v1070_v48  ;;  %v589_v63 = vld [vmem:[#allocation2 + $0x1120] sm:$0xff] }
 0x313   :  { %4612 = vmatprep.mubr.bf16.mxu1 %v1072_v31  ;;  %v613_v58 = vld [vmem:[#allocation2 + $0x11e0] sm:$0xff] }
 0x314   :  { %v6912_v62 = vadd.f32 %v5792_v8, %v3845_v2  ;;  %v5681_v39 = vpop.f32.mrb[252].mxu0  ;;  %v615_v8 = vld [vmem:[#allocation2 + $0x11f0] sm:$0xff]  ;;  %v638_v2 = vld [vmem:[#allocation2 + $0x12a8] sm:$0xff] }
 0x315   :  { %v5793_v17 = vpop.f32.mrb[252].mxu1  ;;  %v5682_v24 = vpop.f32.mrb[253].mxu0 }
 0x316   :  { %v5683_v1 = vadd.f32 %v5682_v24, %v5681_v39  ;;  %v5794_v28 = vpop.f32.mrb[253].mxu1  ;;  %v5684_v55 = vpop.f32.mrb[254].mxu0  ;;  %v1093_v39 = vpack.c.bf16 %v613_v58, %v589_v63  ;;  %v1118_v24 = vpack.c.bf16 %v662_v9, %v638_v2  ;;  %v710_v63 = vld [vmem:[#allocation2 + $0x14e8] sm:$0xff] }
 0x317   :  { %v5795_v21 = vadd.f32 %v5794_v28, %v5793_v17  ;;  %v5796_v49 = vpop.f32.mrb[254].mxu1  ;;  %v5685_v0 = vpop.f32.mrb[255].mxu0  ;;  %v1095_v17 = vpack.c.bf16 %v615_v8, %v591_v47  ;;  %v688_v47 = vld [vmem:[#allocation2 + $0x1438] sm:$0xff] }
 0x318   :  { %v3850_v29 = vadd.f32 %v5683_v1, %v6819_v44  ;;  %v5686_v48 = vadd.f32 %v5685_v0, %v5684_v55  ;;  %v5797_v26 = vpop.f32.mrb[255].mxu1  ;;  %v1120_v55 = vpack.c.bf16 %v664_v45, %v640_v61  ;;  %v712_v8 = vld [vmem:[#allocation2 + $0x14f8] sm:$0xff] }
 0x319   :  { %v5798_v19 = vadd.f32 %v5797_v26, %v5796_v49  ;;  %4452 = vmatmul.mubr.bf16.gmra.mrb[104].mxu0 %v1069_v10  ;;  %v639_v26 = vld [vmem:[#allocation2 + $0x12b0] sm:$0xff] }
 0x31a   :  { %v6915_v12 = vadd.f32 %v5795_v21, %v3850_v29  ;;  %v3853_v31 = vadd.f32 %v5686_v48, %v6822_v53  ;;  %4613 = vmatmul.mubr.bf16.gmra.mrb[104].mxu1 %v1071_v7  ;;  %4459 = vmatprep.mubr.bf16.mxu0 %v1094_v37  ;;  %v637_v29 = vld [vmem:[#allocation2 + $0x12a0] sm:$0xff] }
 0x31b   :  { %4620 = vmatprep.mubr.bf16.mxu1 %v1096_v25  ;;  %v661_v48 = vld [vmem:[#allocation2 + $0x1360] sm:$0xff] }
 0x31c   :  { %v6918_v35 = vadd.f32 %v5798_v19, %v3853_v31  ;;  %v5815_v44 = vpop.f32.mrb[0].mxu0  ;;  %v663_v19 = vld [vmem:[#allocation2 + $0x1370] sm:$0xff]  ;;  %v686_v31 = vld [vmem:[#allocation2 + $0x1428] sm:$0xff] }
 0x31d   :  { %v5927_v13 = vpop.f32.mrb[0].mxu1  ;;  %v5816_v56 = vpop.f32.mrb[1].mxu0 }
 0x31e   :  { %v5817_v3 = vadd.f32 %v5816_v56, %v5815_v44  ;;  %v5928_v16 = vpop.f32.mrb[1].mxu1  ;;  %v5818_v53 = vpop.f32.mrb[2].mxu0  ;;  %v1117_v44 = vpack.c.bf16 %v661_v48, %v637_v29  ;;  %v1142_v56 = vpack.c.bf16 %v710_v63, %v686_v31  ;;  %v758_v29 = vld [vmem:[#allocation2 + $0x1668] sm:$0xff] }
 0x31f   :  { %v5929_v10 = vadd.f32 %v5928_v16, %v5927_v13  ;;  %v5930_v1 = vpop.f32.mrb[2].mxu1  ;;  %v5819_v28 = vpop.f32.mrb[3].mxu0  ;;  %v1119_v13 = vpack.c.bf16 %v663_v19, %v639_v26  ;;  %v736_v26 = vld [vmem:[#allocation2 + $0x15b8] sm:$0xff] }
 0x320   :  { %v4052_v7 = vadd.f32 %v5817_v3, %v6825_v51  ;;  %v5820_v37 = vadd.f32 %v5819_v28, %v5818_v53  ;;  %v5931_v21 = vpop.f32.mrb[3].mxu1  ;;  %v1144_v53 = vpack.c.bf16 %v712_v8, %v688_v47  ;;  %v760_v19 = vld [vmem:[#allocation2 + $0x1678] sm:$0xff] }
 0x321   :  { %v5932_v49 = vadd.f32 %v5931_v21, %v5930_v1  ;;  %4460 = vmatmul.mubr.bf16.gmra.mrb[108].mxu0 %v1093_v39  ;;  %v687_v21 = vld [vmem:[#allocation2 + $0x1430] sm:$0xff] }
 0x322   :  { %v6921_v0 = vadd.f32 %v5929_v10, %v4052_v7  ;;  %v4055_v25 = vadd.f32 %v5820_v37, %v6828_v54  ;;  %4621 = vmatmul.mubr.bf16.gmra.mrb[108].mxu1 %v1095_v17  ;;  %4467 = vmatprep.mubr.bf16.mxu0 %v1118_v24  ;;  %v685_v7 = vld [vmem:[#allocation2 + $0x1420] sm:$0xff] }
 0x323   :  { %4628 = vmatprep.mubr.bf16.mxu1 %v1120_v55  ;;  %v709_v37 = vld [vmem:[#allocation2 + $0x14e0] sm:$0xff] }
 0x324   :  { %v6924_v58 = vadd.f32 %v5932_v49, %v4055_v25  ;;  %v5821_v51 = vpop.f32.mrb[4].mxu0  ;;  %v711_v49 = vld [vmem:[#allocation2 + $0x14f0] sm:$0xff]  ;;  %v734_v25 = vld [vmem:[#allocation2 + $0x15a8] sm:$0xff] }
 0x325   :  { %v5933_v2 = vpop.f32.mrb[4].mxu1  ;;  %v5822_v9 = vpop.f32.mrb[5].mxu0 }
 0x326   :  { %v5823_v61 = vadd.f32 %v5822_v9, %v5821_v51  ;;  %v5934_v45 = vpop.f32.mrb[5].mxu1  ;;  %v5824_v54 = vpop.f32.mrb[6].mxu0  ;;  %v1141_v51 = vpack.c.bf16 %v709_v37, %v685_v7  ;;  %v1166_v9 = vpack.c.bf16 %v758_v29, %v734_v25  ;;  %v806_v7 = vld [vmem:[#allocation2 + $0x17e8] sm:$0xff] }
 0x327   :  { %v5935_v39 = vadd.f32 %v5934_v45, %v5933_v2  ;;  %v5936_v3 = vpop.f32.mrb[6].mxu1  ;;  %v5825_v16 = vpop.f32.mrb[7].mxu0  ;;  %v1143_v2 = vpack.c.bf16 %v711_v49, %v687_v21  ;;  %v784_v21 = vld [vmem:[#allocation2 + $0x1738] sm:$0xff] }
 0x328   :  { %v4060_v17 = vadd.f32 %v5823_v61, %v6831_v40  ;;  %v5826_v24 = vadd.f32 %v5825_v16, %v5824_v54  ;;  %v5937_v10 = vpop.f32.mrb[7].mxu1  ;;  %v1168_v54 = vpack.c.bf16 %v760_v19, %v736_v26  ;;  %v808_v49 = vld [vmem:[#allocation2 + $0x17f8] sm:$0xff] }
 0x329   :  { %v5938_v1 = vadd.f32 %v5937_v10, %v5936_v3  ;;  %4468 = vmatmul.mubr.bf16.gmra.mrb[112].mxu0 %v1117_v44  ;;  %v735_v10 = vld [vmem:[#allocation2 + $0x15b0] sm:$0xff] }
 0x32a   :  { %v6927_v28 = vadd.f32 %v5935_v39, %v4060_v17  ;;  %v4063_v55 = vadd.f32 %v5826_v24, %v6834_v34  ;;  %4629 = vmatmul.mubr.bf16.gmra.mrb[112].mxu1 %v1119_v13  ;;  %4475 = vmatprep.mubr.bf16.mxu0 %v1142_v56  ;;  %v733_v17 = vld [vmem:[#allocation2 + $0x15a0] sm:$0xff] }
 0x32b   :  { %4636 = vmatprep.mubr.bf16.mxu1 %v1144_v53  ;;  %v757_v24 = vld [vmem:[#allocation2 + $0x1660] sm:$0xff] }
 0x32c   :  { %v6930_v48 = vadd.f32 %v5938_v1, %v4063_v55  ;;  %v5827_v40 = vpop.f32.mrb[8].mxu0  ;;  %v759_v1 = vld [vmem:[#allocation2 + $0x1670] sm:$0xff]  ;;  %v782_v55 = vld [vmem:[#allocation2 + $0x1728] sm:$0xff] }
 0x32d   :  { %v5939_v31 = vpop.f32.mrb[8].mxu1  ;;  %v5828_v63 = vpop.f32.mrb[9].mxu0 }
 0x32e   :  { %v5829_v47 = vadd.f32 %v5828_v63, %v5827_v40  ;;  %v5940_v8 = vpop.f32.mrb[9].mxu1  ;;  %v5830_v34 = vpop.f32.mrb[10].mxu0  ;;  %v1165_v40 = vpack.c.bf16 %v757_v24, %v733_v17  ;;  %v1190_v63 = vpack.c.bf16 %v806_v7, %v782_v55 }
 0x32f   :  { %v5941_v44 = vadd.f32 %v5940_v8, %v5939_v31  ;;  %v5942_v61 = vpop.f32.mrb[10].mxu1  ;;  %v5831_v45 = vpop.f32.mrb[11].mxu0  ;;  %v1167_v31 = vpack.c.bf16 %v759_v1, %v735_v10 }
 0x330   :  { %v4068_v13 = vadd.f32 %v5829_v47, %v6837_v18  ;;  %v5832_v56 = vadd.f32 %v5831_v45, %v5830_v34  ;;  %v5943_v39 = vpop.f32.mrb[11].mxu1  ;;  %v1192_v34 = vpack.c.bf16 %v808_v49, %v784_v21 }
 0x331   :  { %v5944_v3 = vadd.f32 %v5943_v39, %v5942_v61  ;;  %4476 = vmatmul.mubr.bf16.gmra.mrb[116].mxu0 %v1141_v51  ;;  %v783_v39 = vld [vmem:[#allocation2 + $0x1730] sm:$0xff] }
 0x332   :  { %v6933_v16 = vadd.f32 %v5941_v44, %v4068_v13  ;;  %v4071_v53 = vadd.f32 %v5832_v56, %v6840_v42  ;;  %4637 = vmatmul.mubr.bf16.gmra.mrb[116].mxu1 %v1143_v2  ;;  %4483 = vmatprep.mubr.bf16.mxu0 %v1166_v9  ;;  %v781_v13 = vld [vmem:[#allocation2 + $0x1720] sm:$0xff] }
 0x333   :  { %4644 = vmatprep.mubr.bf16.mxu1 %v1168_v54  ;;  %v805_v56 = vld [vmem:[#allocation2 + $0x17e0] sm:$0xff] }
 0x334   :  { %v6936_v37 = vadd.f32 %v5944_v3, %v4071_v53  ;;  %v5833_v18 = vpop.f32.mrb[12].mxu0  ;;  %v807_v3 = vld [vmem:[#allocation2 + $0x17f0] sm:$0xff]  ;;  %v1189_v10 = vpack.c.bf16 %v805_v56, %v781_v13 }
 0x335   :  { %v5945_v25 = vpop.f32.mrb[12].mxu1  ;;  %v5834_v29 = vpop.f32.mrb[13].mxu0 }
 0x336   :  { %v5835_v26 = vadd.f32 %v5834_v29, %v5833_v18  ;;  %v5946_v19 = vpop.f32.mrb[13].mxu1  ;;  %v5836_v42 = vpop.f32.mrb[14].mxu0  ;;  %v1191_v18 = vpack.c.bf16 %v807_v3, %v783_v39 }
 0x337   :  { %v5947_v51 = vadd.f32 %v5946_v19, %v5945_v25  ;;  %v5948_v47 = vpop.f32.mrb[14].mxu1  ;;  %v5837_v8 = vpop.f32.mrb[15].mxu0 }
 0x338   :  { %v4076_v2 = vadd.f32 %v5835_v26, %v6843_v23  ;;  %v5838_v9 = vadd.f32 %v5837_v8, %v5836_v42  ;;  %v5949_v44 = vpop.f32.mrb[15].mxu1 }
 0x339   :  { %v5950_v61 = vadd.f32 %v5949_v44, %v5948_v47  ;;  %4484 = vmatmul.mubr.bf16.gmra.mrb[120].mxu0 %v1165_v40 }
 0x33a   :  { %v6939_v45 = vadd.f32 %v5947_v51, %v4076_v2  ;;  %v4079_v54 = vadd.f32 %v5838_v9, %v6846_v36  ;;  %4645 = vmatmul.mubr.bf16.gmra.mrb[120].mxu1 %v1167_v31  ;;  %4491 = vmatprep.mubr.bf16.mxu0 %v1190_v63 }
 0x33b   :  { %4652 = vmatprep.mubr.bf16.mxu1 %v1192_v34 }
 0x33c   :  { %v6942_v53 = vadd.f32 %v5950_v61, %v4079_v54  ;;  %v5839_v17 = vpop.f32.mrb[16].mxu0 }
 0x33d   :  { %v5951_v24 = vpop.f32.mrb[16].mxu1  ;;  %v5840_v23 = vpop.f32.mrb[17].mxu0 }
 0x33e   :  { %v5841_v1 = vadd.f32 %v5840_v23, %v5839_v17  ;;  %v5952_v55 = vpop.f32.mrb[17].mxu1  ;;  %v5842_v7 = vpop.f32.mrb[18].mxu0 }
 0x33f   :  { %v5953_v21 = vadd.f32 %v5952_v55, %v5951_v24  ;;  %v5954_v49 = vpop.f32.mrb[18].mxu1  ;;  %v5843_v36 = vpop.f32.mrb[19].mxu0 }
 0x340   :  { %v4084_v25 = vadd.f32 %v5841_v1, %v6849_v14  ;;  %v5844_v29 = vadd.f32 %v5843_v36, %v5842_v7  ;;  %v5955_v40 = vpop.f32.mrb[19].mxu1 }
 0x341   :  { %v5956_v26 = vadd.f32 %v5955_v40, %v5954_v49  ;;  %4492 = vmatmul.mubr.bf16.gmra.mrb[124].mxu0 %v1189_v10 }
 0x342   :  { %v6945_v19 = vadd.f32 %v5953_v21, %v4084_v25  ;;  %v4087_v42 = vadd.f32 %v5844_v29, %v6852_v15  ;;  %4653 = vmatmul.mubr.bf16.gmra.mrb[124].mxu1 %v1191_v18 }
 0x344   :  { %v6948_v31 = vadd.f32 %v5956_v26, %v4087_v42  ;;  %v5845_v63 = vpop.f32.mrb[20].mxu0 }
 0x345   :  { %v5957_v51 = vpop.f32.mrb[20].mxu1  ;;  %v5846_v47 = vpop.f32.mrb[21].mxu0 }
 0x346   :  { %v5847_v8 = vadd.f32 %v5846_v47, %v5845_v63  ;;  %v5958_v34 = vpop.f32.mrb[21].mxu1  ;;  %v5848_v2 = vpop.f32.mrb[22].mxu0 }
 0x347   :  { %v5959_v9 = vadd.f32 %v5958_v34, %v5957_v51  ;;  %v5960_v44 = vpop.f32.mrb[22].mxu1  ;;  %v5849_v14 = vpop.f32.mrb[23].mxu0 }
 0x348   :  { %v4092_v61 = vadd.f32 %v5847_v8, %v6855_v43  ;;  %v5850_v54 = vadd.f32 %v5849_v14, %v5848_v2  ;;  %v5961_v13 = vpop.f32.mrb[23].mxu1 }
 0x349   :  { %v5962_v56 = vadd.f32 %v5961_v13, %v5960_v44 }
 0x34a   :  { %v6951_v39 = vadd.f32 %v5959_v9, %v4092_v61  ;;  %v4095_v15 = vadd.f32 %v5850_v54, %v6858_v59 }
 0x34c   :  { %v6954_v3 = vadd.f32 %v5962_v56, %v4095_v15  ;;  %v5851_v17 = vpop.f32.mrb[24].mxu0 }
 0x34d   :  { %v5963_v24 = vpop.f32.mrb[24].mxu1  ;;  %v5852_v23 = vpop.f32.mrb[25].mxu0 }
 0x34e   :  { %v5853_v10 = vadd.f32 %v5852_v23, %v5851_v17  ;;  %v5964_v1 = vpop.f32.mrb[25].mxu1  ;;  %v5854_v55 = vpop.f32.mrb[26].mxu0 }
 0x34f   :  { %v5965_v7 = vadd.f32 %v5964_v1, %v5963_v24  ;;  %v5966_v18 = vpop.f32.mrb[26].mxu1  ;;  %v5855_v21 = vpop.f32.mrb[27].mxu0 }
 0x350   :  { %v4100_v43 = vadd.f32 %v5853_v10, %v6861_v32  ;;  %v5856_v49 = vadd.f32 %v5855_v21, %v5854_v55  ;;  %v5967_v36 = vpop.f32.mrb[27].mxu1 }
 0x351   :  { %v5968_v25 = vadd.f32 %v5967_v36, %v5966_v18 }
 0x352   :  { %v6957_v29 = vadd.f32 %v5965_v7, %v4100_v43  ;;  %v4103_v59 = vadd.f32 %v5856_v49, %v6864_v27 }
 0x354   :  { %v6960_v40 = vadd.f32 %v5968_v25, %v4103_v59  ;;  %v5857_v26 = vpop.f32.mrb[28].mxu0 }
 0x355   :  { %v5969_v42 = vpop.f32.mrb[28].mxu1  ;;  %v5858_v63 = vpop.f32.mrb[29].mxu0 }
 0x356   :  { %v5859_v51 = vadd.f32 %v5858_v63, %v5857_v26  ;;  %v5970_v47 = vpop.f32.mrb[29].mxu1  ;;  %v5860_v8 = vpop.f32.mrb[30].mxu0 }
 0x357   :  { %v5971_v34 = vadd.f32 %v5970_v47, %v5969_v42  ;;  %v5972_v2 = vpop.f32.mrb[30].mxu1  ;;  %v5861_v9 = vpop.f32.mrb[31].mxu0 }
 0x358   :  { %v4108_v32 = vadd.f32 %v5859_v51, %v6867_v20  ;;  %v5862_v44 = vadd.f32 %v5861_v9, %v5860_v8  ;;  %v5973_v14 = vpop.f32.mrb[31].mxu1 }
 0x359   :  { %v5974_v61 = vadd.f32 %v5973_v14, %v5972_v2 }
 0x35a   :  { %v6963_v54 = vadd.f32 %v5971_v34, %v4108_v32  ;;  %v4111_v27 = vadd.f32 %v5862_v44, %v6870_v52 }
 0x35c   :  { %v6966_v13 = vadd.f32 %v5974_v61, %v4111_v27  ;;  %v5863_v56 = vpop.f32.mrb[32].mxu0 }
 0x35d   :  { %v5975_v15 = vpop.f32.mrb[32].mxu1  ;;  %v5864_v17 = vpop.f32.mrb[33].mxu0 }
 0x35e   :  { %v5865_v24 = vadd.f32 %v5864_v17, %v5863_v56  ;;  %v5976_v23 = vpop.f32.mrb[33].mxu1  ;;  %v5866_v10 = vpop.f32.mrb[34].mxu0 }
 0x35f   :  { %v5977_v1 = vadd.f32 %v5976_v23, %v5975_v15  ;;  %v5978_v55 = vpop.f32.mrb[34].mxu1  ;;  %v5867_v7 = vpop.f32.mrb[35].mxu0 }
 0x360   :  { %v4116_v20 = vadd.f32 %v5865_v24, %v6873_v6  ;;  %v5868_v18 = vadd.f32 %v5867_v7, %v5866_v10  ;;  %v5979_v21 = vpop.f32.mrb[35].mxu1 }
 0x361   :  { %v5980_v43 = vadd.f32 %v5979_v21, %v5978_v55 }
 0x362   :  { %v6969_v49 = vadd.f32 %v5977_v1, %v4116_v20  ;;  %v4119_v52 = vadd.f32 %v5868_v18, %v6876_v22 }
 0x364   :  { %v6972_v36 = vadd.f32 %v5980_v43, %v4119_v52  ;;  %v5869_v25 = vpop.f32.mrb[36].mxu0 }
 0x365   :  { %v5981_v59 = vpop.f32.mrb[36].mxu1  ;;  %v5870_v26 = vpop.f32.mrb[37].mxu0 }
 0x366   :  { %v5871_v42 = vadd.f32 %v5870_v26, %v5869_v25  ;;  %v5982_v63 = vpop.f32.mrb[37].mxu1  ;;  %v5872_v51 = vpop.f32.mrb[38].mxu0 }
 0x367   :  { %v5983_v47 = vadd.f32 %v5982_v63, %v5981_v59  ;;  %v5984_v8 = vpop.f32.mrb[38].mxu1  ;;  %v5873_v34 = vpop.f32.mrb[39].mxu0 }
 0x368   :  { %v4124_v6 = vadd.f32 %v5871_v42, %v6879_v60  ;;  %v5874_v2 = vadd.f32 %v5873_v34, %v5872_v51  ;;  %v5985_v9 = vpop.f32.mrb[39].mxu1 }
 0x369   :  { %v5986_v32 = vadd.f32 %v5985_v9, %v5984_v8 }
 0x36a   :  { %v6975_v44 = vadd.f32 %v5983_v47, %v4124_v6  ;;  %v4127_v22 = vadd.f32 %v5874_v2, %v6882_v33 }
 0x36c   :  { %v6978_v14 = vadd.f32 %v5986_v32, %v4127_v22  ;;  %v5875_v61 = vpop.f32.mrb[40].mxu0 }
 0x36d   :  { %v5987_v27 = vpop.f32.mrb[40].mxu1  ;;  %v5876_v56 = vpop.f32.mrb[41].mxu0 }
 0x36e   :  { %v5877_v15 = vadd.f32 %v5876_v56, %v5875_v61  ;;  %v5988_v17 = vpop.f32.mrb[41].mxu1  ;;  %v5878_v24 = vpop.f32.mrb[42].mxu0 }
 0x36f   :  { %v5989_v23 = vadd.f32 %v5988_v17, %v5987_v27  ;;  %v5990_v10 = vpop.f32.mrb[42].mxu1  ;;  %v5879_v1 = vpop.f32.mrb[43].mxu0 }
 0x370   :  { %v4132_v60 = vadd.f32 %v5877_v15, %v6885_v38  ;;  %v5880_v55 = vadd.f32 %v5879_v1, %v5878_v24  ;;  %v5991_v7 = vpop.f32.mrb[43].mxu1 }
 0x371   :  { %v5992_v20 = vadd.f32 %v5991_v7, %v5990_v10 }
 0x372   :  { %v6981_v18 = vadd.f32 %v5989_v23, %v4132_v60  ;;  %v4135_v33 = vadd.f32 %v5880_v55, %v6888_v4 }
 0x374   :  { %v6984_v21 = vadd.f32 %v5992_v20, %v4135_v33  ;;  %v5881_v43 = vpop.f32.mrb[44].mxu0 }
 0x375   :  { %v5993_v52 = vpop.f32.mrb[44].mxu1  ;;  %v5882_v25 = vpop.f32.mrb[45].mxu0 }
 0x376   :  { %v5883_v59 = vadd.f32 %v5882_v25, %v5881_v43  ;;  %v5994_v26 = vpop.f32.mrb[45].mxu1  ;;  %v5884_v42 = vpop.f32.mrb[46].mxu0 }
 0x377   :  { %v5995_v63 = vadd.f32 %v5994_v26, %v5993_v52  ;;  %v5996_v51 = vpop.f32.mrb[46].mxu1  ;;  %v5885_v47 = vpop.f32.mrb[47].mxu0 }
 0x378   :  { %v4140_v38 = vadd.f32 %v5883_v59, %v6891_v41  ;;  %v5886_v8 = vadd.f32 %v5885_v47, %v5884_v42  ;;  %v5997_v34 = vpop.f32.mrb[47].mxu1 }
 0x379   :  { %v5998_v6 = vadd.f32 %v5997_v34, %v5996_v51 }
 0x37a   :  { %v6987_v2 = vadd.f32 %v5995_v63, %v4140_v38  ;;  %v4143_v4 = vadd.f32 %v5886_v8, %v6894_v5 }
 0x37c   :  { %v6990_v9 = vadd.f32 %v5998_v6, %v4143_v4  ;;  %v5887_v32 = vpop.f32.mrb[48].mxu0 }
 0x37d   :  { %v5999_v22 = vpop.f32.mrb[48].mxu1  ;;  %v5888_v61 = vpop.f32.mrb[49].mxu0 }
 0x37e   :  { %v5889_v27 = vadd.f32 %v5888_v61, %v5887_v32  ;;  %v6000_v56 = vpop.f32.mrb[49].mxu1  ;;  %v5890_v15 = vpop.f32.mrb[50].mxu0 }
 0x37f   :  { %v6001_v17 = vadd.f32 %v6000_v56, %v5999_v22  ;;  %v6002_v24 = vpop.f32.mrb[50].mxu1  ;;  %v5891_v23 = vpop.f32.mrb[51].mxu0 }
 0x380   :  { %v4148_v41 = vadd.f32 %v5889_v27, %v6897_v30  ;;  %v5892_v10 = vadd.f32 %v5891_v23, %v5890_v15  ;;  %v6003_v1 = vpop.f32.mrb[51].mxu1 }
 0x381   :  { %v6004_v60 = vadd.f32 %v6003_v1, %v6002_v24 }
 0x382   :  { %v6993_v55 = vadd.f32 %v6001_v17, %v4148_v41  ;;  %v4151_v5 = vadd.f32 %v5892_v10, %v6900_v46 }
 0x384   :  { %v6996_v7 = vadd.f32 %v6004_v60, %v4151_v5  ;;  %v5893_v20 = vpop.f32.mrb[52].mxu0 }
 0x385   :  { %v6005_v33 = vpop.f32.mrb[52].mxu1  ;;  %v5894_v43 = vpop.f32.mrb[53].mxu0 }
 0x386   :  { %v5895_v52 = vadd.f32 %v5894_v43, %v5893_v20  ;;  %v6006_v25 = vpop.f32.mrb[53].mxu1  ;;  %v5896_v59 = vpop.f32.mrb[54].mxu0 }
 0x387   :  { %v6007_v26 = vadd.f32 %v6006_v25, %v6005_v33  ;;  %v6008_v42 = vpop.f32.mrb[54].mxu1  ;;  %v5897_v63 = vpop.f32.mrb[55].mxu0 }
 0x388   :  { %v4156_v30 = vadd.f32 %v5895_v52, %v6903_v50  ;;  %v5898_v51 = vadd.f32 %v5897_v63, %v5896_v59  ;;  %v6009_v47 = vpop.f32.mrb[55].mxu1 }
 0x389   :  { %v6010_v38 = vadd.f32 %v6009_v47, %v6008_v42 }
 0x38a   :  { %v6999_v8 = vadd.f32 %v6007_v26, %v4156_v30  ;;  %v4159_v46 = vadd.f32 %v5898_v51, %v6906_v57 }
 0x38c   :  { %v7002_v34 = vadd.f32 %v6010_v38, %v4159_v46  ;;  %v5899_v6 = vpop.f32.mrb[56].mxu0 }
 0x38d   :  { %v6011_v4 = vpop.f32.mrb[56].mxu1  ;;  %v5900_v32 = vpop.f32.mrb[57].mxu0 }
 0x38e   :  { %v5901_v22 = vadd.f32 %v5900_v32, %v5899_v6  ;;  %v6012_v61 = vpop.f32.mrb[57].mxu1  ;;  %v5902_v27 = vpop.f32.mrb[58].mxu0 }
 0x38f   :  { %v6013_v56 = vadd.f32 %v6012_v61, %v6011_v4  ;;  %v6014_v15 = vpop.f32.mrb[58].mxu1  ;;  %v5903_v17 = vpop.f32.mrb[59].mxu0 }
 0x390   :  { %v4164_v50 = vadd.f32 %v5901_v22, %v6909_v11  ;;  %v5904_v24 = vadd.f32 %v5903_v17, %v5902_v27  ;;  %v6015_v23 = vpop.f32.mrb[59].mxu1 }
 0x391   :  { %v6016_v41 = vadd.f32 %v6015_v23, %v6014_v15 }
 0x392   :  { %v7005_v10 = vadd.f32 %v6013_v56, %v4164_v50  ;;  %v4167_v57 = vadd.f32 %v5904_v24, %v6912_v62 }
 0x394   :  { %v7008_v1 = vadd.f32 %v6016_v41, %v4167_v57  ;;  %v5905_v60 = vpop.f32.mrb[60].mxu0 }
 0x395   :  { %v6017_v5 = vpop.f32.mrb[60].mxu1  ;;  %v5906_v20 = vpop.f32.mrb[61].mxu0 }
 0x396   :  { %v5907_v33 = vadd.f32 %v5906_v20, %v5905_v60  ;;  %v6018_v43 = vpop.f32.mrb[61].mxu1  ;;  %v5908_v52 = vpop.f32.mrb[62].mxu0 }
 0x397   :  { %v6019_v25 = vadd.f32 %v6018_v43, %v6017_v5  ;;  %v6020_v59 = vpop.f32.mrb[62].mxu1  ;;  %v5909_v26 = vpop.f32.mrb[63].mxu0 }
 0x398   :  { %v4172_v11 = vadd.f32 %v5907_v33, %v6915_v12  ;;  %v5910_v42 = vadd.f32 %v5909_v26, %v5908_v52  ;;  %v6021_v63 = vpop.f32.mrb[63].mxu1 }
 0x399   :  { %v6022_v30 = vadd.f32 %v6021_v63, %v6020_v59 }
 0x39a   :  { %v7011_v51 = vadd.f32 %v6019_v25, %v4172_v11  ;;  %v4175_v62 = vadd.f32 %v5910_v42, %v6918_v35 }
 0x39c   :  { %v7014_v47 = vadd.f32 %v6022_v30, %v4175_v62  ;;  %v6039_v38 = vpop.f32.mrb[64].mxu0 }
 0x39d   :  { %v6151_v46 = vpop.f32.mrb[64].mxu1  ;;  %v6040_v6 = vpop.f32.mrb[65].mxu0 }
 0x39e   :  { %v6041_v4 = vadd.f32 %v6040_v6, %v6039_v38  ;;  %v6152_v32 = vpop.f32.mrb[65].mxu1  ;;  %v6042_v22 = vpop.f32.mrb[66].mxu0 }
 0x39f   :  { %v6153_v61 = vadd.f32 %v6152_v32, %v6151_v46  ;;  %v6154_v27 = vpop.f32.mrb[66].mxu1  ;;  %v6043_v56 = vpop.f32.mrb[67].mxu0 }
 0x3a0   :  { %v4374_v12 = vadd.f32 %v6041_v4, %v6921_v0  ;;  %v6044_v15 = vadd.f32 %v6043_v56, %v6042_v22  ;;  %v6155_v17 = vpop.f32.mrb[67].mxu1 }
 0x3a1   :  { %v6156_v50 = vadd.f32 %v6155_v17, %v6154_v27 }
 0x3a2   :  { %v4535_v24 = vadd.f32 %v6153_v61, %v4374_v12  ;;  %v4377_v23 = vadd.f32 %v6044_v15, %v6924_v58 }
 0x3a4   :  { %4661 = vst [vmem:[#allocation7] sm:$0xff] %v4535_v24  ;;  %v4538_v35 = vadd.f32 %v6156_v50, %v4377_v23  ;;  %v6045_v41 = vpop.f32.mrb[68].mxu0 }
 0x3a5   :  { %v6157_v57 = vpop.f32.mrb[68].mxu1  ;;  %v6046_v60 = vpop.f32.mrb[69].mxu0 }
 0x3a6   :  { %4662 = vst [vmem:[#allocation7 + $0x8] sm:$0xff] %v4538_v35  ;;  %v6047_v5 = vadd.f32 %v6046_v60, %v6045_v41  ;;  %v6158_v20 = vpop.f32.mrb[69].mxu1  ;;  %v6048_v33 = vpop.f32.mrb[70].mxu0 }
 0x3a7   :  { %v6159_v43 = vadd.f32 %v6158_v20, %v6157_v57  ;;  %v6160_v52 = vpop.f32.mrb[70].mxu1  ;;  %v6049_v25 = vpop.f32.mrb[71].mxu0 }
 0x3a8   :  { %v4382_v0 = vadd.f32 %v6047_v5, %v6927_v28  ;;  %v6050_v59 = vadd.f32 %v6049_v25, %v6048_v33  ;;  %v6161_v26 = vpop.f32.mrb[71].mxu1 }
 0x3a9   :  { %v6162_v11 = vadd.f32 %v6161_v26, %v6160_v52 }
 0x3aa   :  { %v4543_v42 = vadd.f32 %v6159_v43, %v4382_v0  ;;  %v4385_v58 = vadd.f32 %v6050_v59, %v6930_v48 }
 0x3ac   :  { %4663 = vst [vmem:[#allocation7 + $0x10] sm:$0xff] %v4543_v42  ;;  %v4546_v63 = vadd.f32 %v6162_v11, %v4385_v58  ;;  %v6051_v30 = vpop.f32.mrb[72].mxu0 }
 0x3ad   :  { %v6163_v62 = vpop.f32.mrb[72].mxu1  ;;  %v6052_v38 = vpop.f32.mrb[73].mxu0 }
 0x3ae   :  { %4664 = vst [vmem:[#allocation7 + $0x18] sm:$0xff] %v4546_v63  ;;  %v6053_v46 = vadd.f32 %v6052_v38, %v6051_v30  ;;  %v6164_v6 = vpop.f32.mrb[73].mxu1  ;;  %v6054_v4 = vpop.f32.mrb[74].mxu0 }
 0x3af   :  { %v6165_v32 = vadd.f32 %v6164_v6, %v6163_v62  ;;  %v6166_v22 = vpop.f32.mrb[74].mxu1  ;;  %v6055_v61 = vpop.f32.mrb[75].mxu0 }
 0x3b0   :  { %v4390_v28 = vadd.f32 %v6053_v46, %v6933_v16  ;;  %v6056_v27 = vadd.f32 %v6055_v61, %v6054_v4  ;;  %v6167_v56 = vpop.f32.mrb[75].mxu1 }
 0x3b1   :  { %v6168_v12 = vadd.f32 %v6167_v56, %v6166_v22 }
 0x3b2   :  { %v4551_v15 = vadd.f32 %v6165_v32, %v4390_v28  ;;  %v4393_v48 = vadd.f32 %v6056_v27, %v6936_v37 }
 0x3b4   :  { %4665 = vst [vmem:[#allocation7 + $0x20] sm:$0xff] %v4551_v15  ;;  %v4554_v17 = vadd.f32 %v6168_v12, %v4393_v48  ;;  %v6057_v50 = vpop.f32.mrb[76].mxu0 }
 0x3b5   :  { %v6169_v24 = vpop.f32.mrb[76].mxu1  ;;  %v6058_v23 = vpop.f32.mrb[77].mxu0 }
 0x3b6   :  { %4666 = vst [vmem:[#allocation7 + $0x28] sm:$0xff] %v4554_v17  ;;  %v6059_v35 = vadd.f32 %v6058_v23, %v6057_v50  ;;  %v6170_v41 = vpop.f32.mrb[77].mxu1  ;;  %v6060_v57 = vpop.f32.mrb[78].mxu0 }
 0x3b7   :  { %v6171_v60 = vadd.f32 %v6170_v41, %v6169_v24  ;;  %v6172_v5 = vpop.f32.mrb[78].mxu1  ;;  %v6061_v20 = vpop.f32.mrb[79].mxu0 }
 0x3b8   :  { %v4398_v16 = vadd.f32 %v6059_v35, %v6939_v45  ;;  %v6062_v33 = vadd.f32 %v6061_v20, %v6060_v57  ;;  %v6173_v43 = vpop.f32.mrb[79].mxu1 }
 0x3b9   :  { %v6174_v52 = vadd.f32 %v6173_v43, %v6172_v5 }
 0x3ba   :  { %v4559_v25 = vadd.f32 %v6171_v60, %v4398_v16  ;;  %v4401_v37 = vadd.f32 %v6062_v33, %v6942_v53 }
 0x3bc   :  { %4667 = vst [vmem:[#allocation7 + $0x30] sm:$0xff] %v4559_v25  ;;  %v4562_v0 = vadd.f32 %v6174_v52, %v4401_v37  ;;  %v6063_v59 = vpop.f32.mrb[80].mxu0 }
 0x3bd   :  { %v6175_v26 = vpop.f32.mrb[80].mxu1  ;;  %v6064_v11 = vpop.f32.mrb[81].mxu0 }
 0x3be   :  { %4668 = vst [vmem:[#allocation7 + $0x38] sm:$0xff] %v4562_v0  ;;  %v6065_v42 = vadd.f32 %v6064_v11, %v6063_v59  ;;  %v6176_v58 = vpop.f32.mrb[81].mxu1  ;;  %v6066_v63 = vpop.f32.mrb[82].mxu0 }
 0x3bf   :  { %v6177_v30 = vadd.f32 %v6176_v58, %v6175_v26  ;;  %v6178_v62 = vpop.f32.mrb[82].mxu1  ;;  %v6067_v38 = vpop.f32.mrb[83].mxu0 }
 0x3c0   :  { %v4406_v45 = vadd.f32 %v6065_v42, %v6945_v19  ;;  %v6068_v46 = vadd.f32 %v6067_v38, %v6066_v63  ;;  %v6179_v6 = vpop.f32.mrb[83].mxu1 }
 0x3c1   :  { %v6180_v4 = vadd.f32 %v6179_v6, %v6178_v62 }
 0x3c2   :  { %v4567_v32 = vadd.f32 %v6177_v30, %v4406_v45  ;;  %v4409_v53 = vadd.f32 %v6068_v46, %v6948_v31 }
 0x3c4   :  { %4669 = vst [vmem:[#allocation7 + $0x40] sm:$0xff] %v4567_v32  ;;  %v4570_v22 = vadd.f32 %v6180_v4, %v4409_v53  ;;  %v6069_v61 = vpop.f32.mrb[84].mxu0 }
 0x3c5   :  { %v6181_v28 = vpop.f32.mrb[84].mxu1  ;;  %v6070_v27 = vpop.f32.mrb[85].mxu0 }
 0x3c6   :  { %4670 = vst [vmem:[#allocation7 + $0x48] sm:$0xff] %v4570_v22  ;;  %v6071_v56 = vadd.f32 %v6070_v27, %v6069_v61  ;;  %v6182_v12 = vpop.f32.mrb[85].mxu1  ;;  %v6072_v15 = vpop.f32.mrb[86].mxu0 }
 0x3c7   :  { %v6183_v48 = vadd.f32 %v6182_v12, %v6181_v28  ;;  %v6184_v17 = vpop.f32.mrb[86].mxu1  ;;  %v6073_v50 = vpop.f32.mrb[87].mxu0 }
 0x3c8   :  { %v4414_v19 = vadd.f32 %v6071_v56, %v6951_v39  ;;  %v6074_v24 = vadd.f32 %v6073_v50, %v6072_v15  ;;  %v6185_v23 = vpop.f32.mrb[87].mxu1 }
 0x3c9   :  { %v6186_v35 = vadd.f32 %v6185_v23, %v6184_v17 }
 0x3ca   :  { %v4575_v41 = vadd.f32 %v6183_v48, %v4414_v19  ;;  %v4417_v31 = vadd.f32 %v6074_v24, %v6954_v3 }
 0x3cc   :  { %4671 = vst [vmem:[#allocation7 + $0x50] sm:$0xff] %v4575_v41  ;;  %v4578_v57 = vadd.f32 %v6186_v35, %v4417_v31  ;;  %v6075_v60 = vpop.f32.mrb[88].mxu0 }
 0x3cd   :  { %v6187_v5 = vpop.f32.mrb[88].mxu1  ;;  %v6076_v20 = vpop.f32.mrb[89].mxu0 }
 0x3ce   :  { %4672 = vst [vmem:[#allocation7 + $0x58] sm:$0xff] %v4578_v57  ;;  %v6077_v16 = vadd.f32 %v6076_v20, %v6075_v60  ;;  %v6188_v33 = vpop.f32.mrb[89].mxu1  ;;  %v6078_v43 = vpop.f32.mrb[90].mxu0 }
 0x3cf   :  { %v6189_v52 = vadd.f32 %v6188_v33, %v6187_v5  ;;  %v6190_v25 = vpop.f32.mrb[90].mxu1  ;;  %v6079_v37 = vpop.f32.mrb[91].mxu0 }
 0x3d0   :  { %v4422_v39 = vadd.f32 %v6077_v16, %v6957_v29  ;;  %v6080_v0 = vadd.f32 %v6079_v37, %v6078_v43  ;;  %v6191_v59 = vpop.f32.mrb[91].mxu1 }
 0x3d1   :  { %v6192_v26 = vadd.f32 %v6191_v59, %v6190_v25 }
 0x3d2   :  { %v4583_v11 = vadd.f32 %v6189_v52, %v4422_v39  ;;  %v4425_v3 = vadd.f32 %v6080_v0, %v6960_v40 }
 0x3d4   :  { %4673 = vst [vmem:[#allocation7 + $0x60] sm:$0xff] %v4583_v11  ;;  %v4586_v42 = vadd.f32 %v6192_v26, %v4425_v3  ;;  %v6081_v58 = vpop.f32.mrb[92].mxu0 }
 0x3d5   :  { %v6193_v63 = vpop.f32.mrb[92].mxu1  ;;  %v6082_v30 = vpop.f32.mrb[93].mxu0 }
 0x3d6   :  { %4674 = vst [vmem:[#allocation7 + $0x68] sm:$0xff] %v4586_v42  ;;  %v6083_v62 = vadd.f32 %v6082_v30, %v6081_v58  ;;  %v6194_v38 = vpop.f32.mrb[93].mxu1  ;;  %v6084_v45 = vpop.f32.mrb[94].mxu0 }
 0x3d7   :  { %v6195_v46 = vadd.f32 %v6194_v38, %v6193_v63  ;;  %v6196_v6 = vpop.f32.mrb[94].mxu1  ;;  %v6085_v4 = vpop.f32.mrb[95].mxu0 }
 0x3d8   :  { %v4430_v29 = vadd.f32 %v6083_v62, %v6963_v54  ;;  %v6086_v32 = vadd.f32 %v6085_v4, %v6084_v45  ;;  %v6197_v53 = vpop.f32.mrb[95].mxu1 }
 0x3d9   :  { %v6198_v22 = vadd.f32 %v6197_v53, %v6196_v6 }
 0x3da   :  { %v4591_v61 = vadd.f32 %v6195_v46, %v4430_v29  ;;  %v4433_v40 = vadd.f32 %v6086_v32, %v6966_v13 }
 0x3dc   :  { %4675 = vst [vmem:[#allocation7 + $0x70] sm:$0xff] %v4591_v61  ;;  %v4594_v28 = vadd.f32 %v6198_v22, %v4433_v40  ;;  %v6087_v27 = vpop.f32.mrb[96].mxu0 }
 0x3dd   :  { %v6199_v56 = vpop.f32.mrb[96].mxu1  ;;  %v6088_v12 = vpop.f32.mrb[97].mxu0 }
 0x3de   :  { %4676 = vst [vmem:[#allocation7 + $0x78] sm:$0xff] %v4594_v28  ;;  %v6089_v15 = vadd.f32 %v6088_v12, %v6087_v27  ;;  %v6200_v48 = vpop.f32.mrb[97].mxu1  ;;  %v6090_v17 = vpop.f32.mrb[98].mxu0 }
 0x3df   :  { %v6201_v50 = vadd.f32 %v6200_v48, %v6199_v56  ;;  %v6202_v19 = vpop.f32.mrb[98].mxu1  ;;  %v6091_v24 = vpop.f32.mrb[99].mxu0 }
 0x3e0   :  { %v4438_v54 = vadd.f32 %v6089_v15, %v6969_v49  ;;  %v6092_v23 = vadd.f32 %v6091_v24, %v6090_v17  ;;  %v6203_v35 = vpop.f32.mrb[99].mxu1 }
 0x3e1   :  { %v6204_v41 = vadd.f32 %v6203_v35, %v6202_v19 }
 0x3e2   :  { %v4599_v31 = vadd.f32 %v6201_v50, %v4438_v54  ;;  %v4441_v13 = vadd.f32 %v6092_v23, %v6972_v36 }
 0x3e4   :  { %4677 = vst [vmem:[#allocation7 + $0x80] sm:$0xff] %v4599_v31  ;;  %v4602_v57 = vadd.f32 %v6204_v41, %v4441_v13  ;;  %v6093_v60 = vpop.f32.mrb[100].mxu0 }
 0x3e5   :  { %v6205_v5 = vpop.f32.mrb[100].mxu1  ;;  %v6094_v20 = vpop.f32.mrb[101].mxu0 }
 0x3e6   :  { %4678 = vst [vmem:[#allocation7 + $0x88] sm:$0xff] %v4602_v57  ;;  %v6095_v16 = vadd.f32 %v6094_v20, %v6093_v60  ;;  %v6206_v33 = vpop.f32.mrb[101].mxu1  ;;  %v6096_v43 = vpop.f32.mrb[102].mxu0 }
 0x3e7   :  { %v6207_v52 = vadd.f32 %v6206_v33, %v6205_v5  ;;  %v6208_v25 = vpop.f32.mrb[102].mxu1  ;;  %v6097_v37 = vpop.f32.mrb[103].mxu0 }
 0x3e8   :  { %v4446_v49 = vadd.f32 %v6095_v16, %v6975_v44  ;;  %v6098_v39 = vadd.f32 %v6097_v37, %v6096_v43  ;;  %v6209_v0 = vpop.f32.mrb[103].mxu1 }
 0x3e9   :  { %v6210_v59 = vadd.f32 %v6209_v0, %v6208_v25 }
 0x3ea   :  { %v4607_v26 = vadd.f32 %v6207_v52, %v4446_v49  ;;  %v4449_v36 = vadd.f32 %v6098_v39, %v6978_v14 }
 0x3ec   :  { %4679 = vst [vmem:[#allocation7 + $0x90] sm:$0xff] %v4607_v26  ;;  %v4610_v11 = vadd.f32 %v6210_v59, %v4449_v36  ;;  %v6099_v3 = vpop.f32.mrb[104].mxu0 }
 0x3ed   :  { %v6211_v42 = vpop.f32.mrb[104].mxu1  ;;  %v6100_v58 = vpop.f32.mrb[105].mxu0 }
 0x3ee   :  { %4680 = vst [vmem:[#allocation7 + $0x98] sm:$0xff] %v4610_v11  ;;  %v6101_v63 = vadd.f32 %v6100_v58, %v6099_v3  ;;  %v6212_v30 = vpop.f32.mrb[105].mxu1  ;;  %v6102_v62 = vpop.f32.mrb[106].mxu0 }
 0x3ef   :  { %v6213_v38 = vadd.f32 %v6212_v30, %v6211_v42  ;;  %v6214_v45 = vpop.f32.mrb[106].mxu1  ;;  %v6103_v46 = vpop.f32.mrb[107].mxu0 }
 0x3f0   :  { %v4454_v44 = vadd.f32 %v6101_v63, %v6981_v18  ;;  %v6104_v6 = vadd.f32 %v6103_v46, %v6102_v62  ;;  %v6215_v4 = vpop.f32.mrb[107].mxu1 }
 0x3f1   :  { %v6216_v29 = vadd.f32 %v6215_v4, %v6214_v45 }
 0x3f2   :  { %v4615_v32 = vadd.f32 %v6213_v38, %v4454_v44  ;;  %v4457_v14 = vadd.f32 %v6104_v6, %v6984_v21 }
 0x3f4   :  { %4681 = vst [vmem:[#allocation7 + $0xa0] sm:$0xff] %v4615_v32  ;;  %v4618_v53 = vadd.f32 %v6216_v29, %v4457_v14  ;;  %v6105_v22 = vpop.f32.mrb[108].mxu0 }
 0x3f5   :  { %v6217_v61 = vpop.f32.mrb[108].mxu1  ;;  %v6106_v40 = vpop.f32.mrb[109].mxu0 }
 0x3f6   :  { %4682 = vst [vmem:[#allocation7 + $0xa8] sm:$0xff] %v4618_v53  ;;  %v6107_v28 = vadd.f32 %v6106_v40, %v6105_v22  ;;  %v6218_v27 = vpop.f32.mrb[109].mxu1  ;;  %v6108_v56 = vpop.f32.mrb[110].mxu0 }
 0x3f7   :  { %v6219_v12 = vadd.f32 %v6218_v27, %v6217_v61  ;;  %v6220_v15 = vpop.f32.mrb[110].mxu1  ;;  %v6109_v48 = vpop.f32.mrb[111].mxu0 }
 0x3f8   :  { %v4462_v18 = vadd.f32 %v6107_v28, %v6987_v2  ;;  %v6110_v17 = vadd.f32 %v6109_v48, %v6108_v56  ;;  %v6221_v50 = vpop.f32.mrb[111].mxu1 }
 0x3f9   :  { %v6222_v19 = vadd.f32 %v6221_v50, %v6220_v15 }
 0x3fa   :  { %v4623_v24 = vadd.f32 %v6219_v12, %v4462_v18  ;;  %v4465_v21 = vadd.f32 %v6110_v17, %v6990_v9 }
 0x3fc   :  { %4683 = vst [vmem:[#allocation7 + $0xb0] sm:$0xff] %v4623_v24  ;;  %v4626_v54 = vadd.f32 %v6222_v19, %v4465_v21  ;;  %v6111_v23 = vpop.f32.mrb[112].mxu0 }
 0x3fd   :  { %v6223_v35 = vpop.f32.mrb[112].mxu1  ;;  %v6112_v41 = vpop.f32.mrb[113].mxu0 }
 0x3fe   :  { %4684 = vst [vmem:[#allocation7 + $0xb8] sm:$0xff] %v4626_v54  ;;  %v6113_v31 = vadd.f32 %v6112_v41, %v6111_v23  ;;  %v6224_v13 = vpop.f32.mrb[113].mxu1  ;;  %v6114_v57 = vpop.f32.mrb[114].mxu0 }
 0x3ff   :  { %v6225_v60 = vadd.f32 %v6224_v13, %v6223_v35  ;;  %v6226_v5 = vpop.f32.mrb[114].mxu1  ;;  %v6115_v20 = vpop.f32.mrb[115].mxu0 }
 0x400   :  { %v4470_v2 = vadd.f32 %v6113_v31, %v6993_v55  ;;  %v6116_v16 = vadd.f32 %v6115_v20, %v6114_v57  ;;  %v6227_v33 = vpop.f32.mrb[115].mxu1 }
 0x401   :  { %v6228_v43 = vadd.f32 %v6227_v33, %v6226_v5 }
 0x402   :  { %v4631_v52 = vadd.f32 %v6225_v60, %v4470_v2  ;;  %v4473_v9 = vadd.f32 %v6116_v16, %v6996_v7 }
 0x404   :  { %4685 = vst [vmem:[#allocation7 + $0xc0] sm:$0xff] %v4631_v52  ;;  %v4634_v25 = vadd.f32 %v6228_v43, %v4473_v9  ;;  %v6117_v37 = vpop.f32.mrb[116].mxu0 }
 0x405   :  { %v6229_v49 = vpop.f32.mrb[116].mxu1  ;;  %v6118_v39 = vpop.f32.mrb[117].mxu0 }
 0x406   :  { %4686 = vst [vmem:[#allocation7 + $0xc8] sm:$0xff] %v4634_v25  ;;  %v6119_v0 = vadd.f32 %v6118_v39, %v6117_v37  ;;  %v6230_v59 = vpop.f32.mrb[117].mxu1  ;;  %v6120_v26 = vpop.f32.mrb[118].mxu0 }
 0x407   :  { %v6231_v36 = vadd.f32 %v6230_v59, %v6229_v49  ;;  %v6232_v11 = vpop.f32.mrb[118].mxu1  ;;  %v6121_v3 = vpop.f32.mrb[119].mxu0 }
 0x408   :  { %v4478_v55 = vadd.f32 %v6119_v0, %v6999_v8  ;;  %v6122_v42 = vadd.f32 %v6121_v3, %v6120_v26  ;;  %v6233_v58 = vpop.f32.mrb[119].mxu1 }
 0x409   :  { %v6234_v63 = vadd.f32 %v6233_v58, %v6232_v11 }
 0x40a   :  { %v4639_v30 = vadd.f32 %v6231_v36, %v4478_v55  ;;  %v4481_v7 = vadd.f32 %v6122_v42, %v7002_v34 }
 0x40c   :  { %4687 = vst [vmem:[#allocation7 + $0xd0] sm:$0xff] %v4639_v30  ;;  %v4642_v62 = vadd.f32 %v6234_v63, %v4481_v7  ;;  %v6123_v38 = vpop.f32.mrb[120].mxu0 }
 0x40d   :  { %v6235_v45 = vpop.f32.mrb[120].mxu1  ;;  %v6124_v46 = vpop.f32.mrb[121].mxu0 }
 0x40e   :  { %4688 = vst [vmem:[#allocation7 + $0xd8] sm:$0xff] %v4642_v62  ;;  %v6125_v44 = vadd.f32 %v6124_v46, %v6123_v38  ;;  %v6236_v6 = vpop.f32.mrb[121].mxu1  ;;  %v6126_v4 = vpop.f32.mrb[122].mxu0 }
 0x40f   :  { %v6237_v29 = vadd.f32 %v6236_v6, %v6235_v45  ;;  %v6238_v32 = vpop.f32.mrb[122].mxu1  ;;  %v6127_v14 = vpop.f32.mrb[123].mxu0 }
 0x410   :  { %v4486_v8 = vadd.f32 %v6125_v44, %v7005_v10  ;;  %v6128_v53 = vadd.f32 %v6127_v14, %v6126_v4  ;;  %v6239_v22 = vpop.f32.mrb[123].mxu1 }
 0x411   :  { %v6240_v61 = vadd.f32 %v6239_v22, %v6238_v32 }
 0x412   :  { %v4647_v40 = vadd.f32 %v6237_v29, %v4486_v8  ;;  %v4489_v34 = vadd.f32 %v6128_v53, %v7008_v1 }
 0x414   :  { %4689 = vst [vmem:[#allocation7 + $0xe0] sm:$0xff] %v4647_v40  ;;  %v4650_v28 = vadd.f32 %v6240_v61, %v4489_v34  ;;  %v6129_v27 = vpop.f32.mrb[124].mxu0 }
 0x415   :  { %v6241_v56 = vpop.f32.mrb[124].mxu1  ;;  %v6130_v12 = vpop.f32.mrb[125].mxu0 }
 0x416   :  { %4690 = vst [vmem:[#allocation7 + $0xe8] sm:$0xff] %v4650_v28  ;;  %v6131_v15 = vadd.f32 %v6130_v12, %v6129_v27  ;;  %v6242_v48 = vpop.f32.mrb[125].mxu1  ;;  %v6132_v18 = vpop.f32.mrb[126].mxu0 }
 0x417   :  { %v6243_v17 = vadd.f32 %v6242_v48, %v6241_v56  ;;  %v6244_v50 = vpop.f32.mrb[126].mxu1  ;;  %v6133_v19 = vpop.f32.mrb[127].mxu0 }
 0x418   :  { %v4494_v10 = vadd.f32 %v6131_v15, %v7011_v51  ;;  %v6134_v24 = vadd.f32 %v6133_v19, %v6132_v18  ;;  %v6245_v21 = vpop.f32.mrb[127].mxu1 }
 0x419   :  { %v6246_v54 = vadd.f32 %v6245_v21, %v6244_v50 }
 0x41a   :  { %v4655_v1 = vadd.f32 %v6243_v17, %v4494_v10  ;;  %v4497_v23 = vadd.f32 %v6134_v24, %v7014_v47 }
 0x41c   :  { %4691 = vst [vmem:[#allocation7 + $0xf0] sm:$0xff] %v4655_v1  ;;  %v4658_v35 = vadd.f32 %v6246_v54, %v4497_v23 }
 0x41e   :  { %4692 = vst [vmem:[#allocation7 + $0xf8] sm:$0xff] %v4658_v35 }
 0x41f   :  { %6503 = shalt.err (!%p6500_p6)
}
 0x420   :  { %s6504_s12 = scalar_lea.hbm %s7062_s2, 4096 }
 0x421   :  { %p6505_p7 = scmp.ne.s32.totalorder %s7062_s2, %s6504_s12  ;;  %p6508_p8 = scmp.lt.u32.totalorder %s6504_s12, %s7062_s2 }
 0x423   :  { %p6510_p9 = pnand %p6508_p8, %p6505_p7 }
 0x425   :  { %6513 = shalt.err (!%p6510_p9)
}
 0x426   :  { %s6527_s17 = smov 128   ;;  %s6528_s18 = smov 8  }
 0x427   :  { %4704 = dma.vmem_to_hbm [thread:$0]  %s4699_s8, 4096, %s7062_s2, [#allocation4], %s6527_s17, %s6527_s17, %s6528_s18  }
 0x428   :  { %6518 = dma.done.wait [#allocation4], 4096  }
 0x429   :  { %6519 = vsyncadd [#allocation4], 4294963200 }
 0x42a   :  { %4708 = vsyncpa [#allocation3], 1 }
 0x42b   :  { %4709 = vsyncpa [#allocation6], 1 }
 0x42c   :  { %4710 = vsyncpa [#allocation4], 1 }

</bundles_post_ra>
